<compile_context>
chip_gen: v7x
topology: tpu7x:2x2x1
jax: 0.10.0
libtpu: 0.0.40
codegen_flags: <defaults>
</compile_context>

<pallas_src>
import functools
import math

import jax
import jax.numpy as jnp
from jax import lax
from jax.experimental import pallas as pl
from jax.experimental.pallas import tpu as pltpu

BN_EPS = 1e-5
MATMUL_DTYPE = jnp.bfloat16   # MXU input dtype; accumulation / epilogue stay f32.


def _round_up(x, m):
    return ((x + m - 1) // m) * m


# ---------------------------------------------------------------------------
# Pallas kernels
# ---------------------------------------------------------------------------

def _linear_kernel(relu, x_ref, w_ref, b_ref, o_ref):
    """One row-tile of (x @ w) + bias [+ ReLU]  (BN scale pre-folded into w)."""
    x = x_ref[...].astype(w_ref.dtype)
    y = jnp.dot(x, w_ref[...], preferred_element_type=jnp.float32)
    y = y + b_ref[...]
    if relu:
        y = jnp.maximum(y, 0.0)
    o_ref[...] = y.astype(o_ref.dtype)


def _edge_mlp_pool_kernel(num_layers, K, *refs):
    """Fused EdgeConv MLP + max-over-K pooling.

    refs = (feat_ref, w1, b1, [w2, b2, w3, b3], o_ref)
    feat_ref block: [K, gp, 2F]  (K-major edge features for gp groups)
    o_ref block:    [gp, Cout]   (per-group max over the K neighbors)
    """
    feat_ref = refs[0]
    o_ref = refs[-1]
    wb = refs[1:-1]
    gp = feat_ref.shape[1]

    # Hoist weight loads / bias broadcasts out of the unrolled loops.
    ws, bs = [], []
    for i in range(num_layers):
        w = wb[2 * i][...]
        b = wb[2 * i + 1][...]
        ws.append(w)
        bs.append(jnp.broadcast_to(b, (gp, w.shape[1])))

    acc = None
    for k in range(K):                       # K is small & static -> unrolled
        h = feat_ref[k]                      # [gp, 2F]  (f32)
        for i in range(num_layers):
            h = jnp.dot(h.astype(ws[i].dtype), ws[i],
                        preferred_element_type=jnp.float32)
            h = jnp.maximum(h + bs[i], 0.0)
        acc = h if acc is None else jnp.maximum(acc, h)
    o_ref[...] = acc.astype(o_ref.dtype)


def _conv_maxpool_kernel(n_valid, x_ref, w_ref, b_ref, o_ref):
    """Fused conv_block_3 (k=1 conv + BN + ReLU) with global max-pool over N.

    Grid = (B, num_row_tiles); output block is resident across the row-tile
    axis (accumulator), initialized at j == 0 via pl.when.
    """
    j = pl.program_id(1)
    x = x_ref[0]                                             # [tn, Cin]
    tn = x.shape[0]
    y = jnp.dot(x.astype(w_ref.dtype), w_ref[...],
                preferred_element_type=jnp.float32)
    y = jnp.maximum(y + b_ref[...], 0.0)                     # [tn, Cout]
    # Mask padded rows so they never win the max.
    row = lax.broadcasted_iota(jnp.int32, y.shape, 0) + j * tn
    y = jnp.where(row < n_valid, y, -jnp.inf)
    tile_max = jnp.max(y, axis=0, keepdims=True)             # [1, Cout]

    @pl.when(j == 0)
    def _():
        o_ref[0] = tile_max

    @pl.when(j > 0)
    def _():
        o_ref[0] = jnp.maximum(o_ref[0], tile_max)


def _pdist_kernel(q_ref, x_ref, ksq_ref, o_ref):
    """Pairwise squared distances for a tile of query rows vs. all keys.

    d(i,j) = ||qi||^2 + ||xj||^2 - 2 <qi, xj>   (f32, no explicit transpose).
    """
    q = q_ref[0]                                             # [tn, F]
    x = x_ref[0]                                             # [N, F]
    qsq = jnp.sum(q * q, axis=1, keepdims=True)              # [tn, 1]
    cross = lax.dot_general(q, x, (((1,), (1,)), ((), ())),
                            preferred_element_type=jnp.float32)  # [tn, N]
    o_ref[0] = qsq + ksq_ref[0] - 2.0 * cross


def _log_softmax_kernel(x_ref, o_ref):
    x = x_ref[...]
    m = jnp.max(x, axis=-1, keepdims=True)
    s = x - m
    lse = jnp.log(jnp.sum(jnp.exp(s), axis=-1, keepdims=True))
    o_ref[...] = s - lse


# ---------------------------------------------------------------------------
# Pallas wrappers
# ---------------------------------------------------------------------------

def fused_linear(x, w, bias, relu=True, row_tile=512):
    """x: [M, Cin] f32, w: [Cin, Cout] (bf16, BN-folded), bias: [Cout] f32."""
    M, Cin = x.shape
    Cout = w.shape[1]
    tm = min(row_tile, _round_up(M, 8))          # multiple of 8, <= row_tile
    Mp = _round_up(M, tm)
    if Mp != M:
        x = jnp.pad(x, ((0, Mp - M), (0, 0)))
    out = pl.pallas_call(
        functools.partial(_linear_kernel, relu),
        out_shape=jax.ShapeDtypeStruct((Mp, Cout), jnp.float32),
        grid=(Mp // tm,),
        in_specs=[
            pl.BlockSpec((tm, Cin), lambda i: (i, 0)),
            pl.BlockSpec((Cin, Cout), lambda i: (0, 0)),
            pl.BlockSpec((1, Cout), lambda i: (0, 0)),
        ],
        out_specs=pl.BlockSpec((tm, Cout), lambda i: (i, 0)),
        compiler_params=pltpu.CompilerParams(
            dimension_semantics=("parallel",)),
    )(x, w, bias.reshape(1, Cout))
    return out[:M] if Mp != M else out


def edge_mlp_maxpool(feat_k, wb_list, K, G):
    """feat_k: [K, G, 2F] edge features (K-major). Returns [G, Cout]."""
    _, _, F2 = feat_k.shape
    Cout = wb_list[-1][0].shape[1]
    gp = min(256, _round_up(G, 8))               # groups per tile (mult of 8)
    Gp = _round_up(G, gp)
    if Gp != G:
        feat_k = jnp.pad(feat_k, ((0, 0), (0, Gp - G), (0, 0)))

    in_specs = [pl.BlockSpec((K, gp, F2), lambda i: (0, i, 0))]
    args = [feat_k]
    for (w, bias) in wb_list:
        cin, cout = w.shape
        in_specs.append(pl.BlockSpec((cin, cout), lambda i: (0, 0)))
        in_specs.append(pl.BlockSpec((1, cout), lambda i: (0, 0)))
        args.append(w)
        args.append(bias.reshape(1, cout))

    out = pl.pallas_call(
        functools.partial(_edge_mlp_pool_kernel, len(wb_list), K),
        out_shape=jax.ShapeDtypeStruct((Gp, Cout), jnp.float32),
        grid=(Gp // gp,),
        in_specs=in_specs,
        out_specs=pl.BlockSpec((gp, Cout), lambda i: (i, 0)),
        compiler_params=pltpu.CompilerParams(
            dimension_semantics=("parallel",)),
    )(*args)
    return out[:G] if Gp != G else out


def conv3_global_maxpool(x, w, bias, row_tile=256):
    """x: [B, N, Cin] -> [B, Cout]: conv1x1+BN+ReLU fused with max over N."""
    B, N, Cin = x.shape
    Cout = w.shape[1]
    tn = min(row_tile, _round_up(N, 8))
    Np = _round_up(N, tn)
    if Np != N:
        x = jnp.pad(x, ((0, 0), (0, Np - N), (0, 0)))
    out = pl.pallas_call(
        functools.partial(_conv_maxpool_kernel, N),
        out_shape=jax.ShapeDtypeStruct((B, 1, Cout), jnp.float32),
        grid=(B, Np // tn),
        in_specs=[
            pl.BlockSpec((1, tn, Cin), lambda b, j: (b, j, 0)),
            pl.BlockSpec((Cin, Cout), lambda b, j: (0, 0)),
            pl.BlockSpec((1, Cout), lambda b, j: (0, 0)),
        ],
        out_specs=pl.BlockSpec((1, 1, Cout), lambda b, j: (b, 0, 0)),
        compiler_params=pltpu.CompilerParams(
            dimension_semantics=("parallel", "arbitrary")),
    )(x, w, bias.reshape(1, Cout))
    return out.reshape(B, Cout)


def pairwise_sq_dist(x, row_tile=128):
    """x: [B, N, F] f32 -> [B, N, N] squared distances (f32)."""
    B, N, F = x.shape
    tn = min(row_tile, _round_up(N, 8))
    Np = _round_up(N, tn)
    xq = jnp.pad(x, ((0, 0), (0, Np - N), (0, 0))) if Np != N else x
    ksq = jnp.sum(x * x, axis=-1).reshape(B, 1, N)           # [B, 1, N]
    out = pl.pallas_call(
        _pdist_kernel,
        out_shape=jax.ShapeDtypeStruct((B, Np, N), jnp.float32),
        grid=(B, Np // tn),
        in_specs=[
            pl.BlockSpec((1, tn, F), lambda b, i: (b, i, 0)),
            pl.BlockSpec((1, N, F), lambda b, i: (b, 0, 0)),
            pl.BlockSpec((1, 1, N), lambda b, i: (b, 0, 0)),
        ],
        out_specs=pl.BlockSpec((1, tn, N), lambda b, i: (b, i, 0)),
        compiler_params=pltpu.CompilerParams(
            dimension_semantics=("parallel", "parallel")),
    )(xq, x, ksq)
    return out[:, :N, :] if Np != N else out


def log_softmax_pallas(x):
    B, C = x.shape
    return pl.pallas_call(
        _log_softmax_kernel,
        out_shape=jax.ShapeDtypeStruct((B, C), jnp.float32),
    )(x)


# ---------------------------------------------------------------------------
# Model (parameters + forward orchestration)
# ---------------------------------------------------------------------------

def _xavier_normal(key, cin, cout):
    std = math.sqrt(2.0 / (cin + cout))
    return std * jax.random.normal(key, (cin, cout), jnp.float32)


def _make_conv_bn(key, cin, cout):
    """Conv/Linear weight with eval-mode BN (mean=0, var=1, gamma=1, beta=0)
    folded into the weight; conv bias (=0) + BN shift (=0) kept as bias."""
    w = _xavier_normal(key, cin, cout)
    scale = 1.0 / math.sqrt(1.0 + BN_EPS)
    w_folded = (w * scale).astype(MATMUL_DTYPE)
    bias = jnp.zeros((cout,), jnp.float32)
    return (w_folded, bias)


def init_params(key, num_classes):
    ks = jax.random.split(key, 8)
    params = {}
    # EdgeConv 1: layers [3, 64, 64, 64] -> mlp dims (2*3 -> 64 -> 64 -> 64)
    params["ec1"] = [
        _make_conv_bn(ks[0], 6, 64),
        _make_conv_bn(ks[1], 64, 64),
        _make_conv_bn(ks[2], 64, 64),
    ]
    # EdgeConv 2: layers [64, 128] -> mlp dims (2*64 -> 128)
    params["ec2"] = [_make_conv_bn(ks[3], 128, 128)]
    # conv_block_3: 128 -> 1024
    params["conv3"] = _make_conv_bn(ks[4], 128, 1024)
    # fc_block_4 / fc_block_5
    params["fc4"] = _make_conv_bn(ks[5], 1024, 512)
    params["fc5"] = _make_conv_bn(ks[6], 512, 256)
    # fc_6 (no BN, no ReLU, bias initialized to 0)
    w6 = _xavier_normal(ks[7], 256, num_classes).astype(MATMUL_DTYPE)
    params["fc6"] = (w6, jnp.zeros((num_classes,), jnp.float32))
    return params


def edge_conv(x, mlp_wb, K):
    """x: [B, N, F] -> [B, N, an]. Reproduces EdgeConv.forward (eval mode)."""
    B, N, F = x.shape
    # kNN graph: distances in Pallas, K-nearest selection + gather in XLA glue.
    dist = pairwise_sq_dist(x)                               # [B, N, N]
    # TODO(synk): top_k/gather (torch.sort + fancy indexing) stays in XLA glue;
    # tie-handling for coincident points may differ marginally from torch.sort.
    _, idx = lax.top_k(-dist, K + 1)                         # K+1 smallest dists
    idx = idx[..., 1:]                                       # drop self -> [B, N, K]
    knn = jax.vmap(lambda pts, ind: pts[ind])(x, idx)        # [B, N, K, F]

    x1 = jnp.broadcast_to(x[:, :, None, :], (B, N, K, F))
    feat = jnp.concatenate([x1, knn - x1], axis=-1)          # [B, N, K, 2F]
    # K-major layout so the fused kernel pools with a running max (no relayout).
    feat_k = jnp.transpose(feat, (2, 0, 1, 3)).reshape(K, B * N, 2 * F)

    pooled = edge_mlp_maxpool(feat_k, mlp_wb, K, B * N)      # [B*N, an]
    return pooled.reshape(B, N, -1)


def dgcnn_forward(params, x, K):
    """x: [B, N, 3] -> log-probabilities [B, num_classes]."""
    B, N, C = x.shape
    assert C == 3, "dimension of x does not match"

    x = edge_conv(x, params["ec1"], K)             # [B, N, 64]
    x = edge_conv(x, params["ec2"], K)             # [B, N, 128]

    # conv_block_3 + global MaxPool1d(N), fused.
    w3, b3 = params["conv3"]
    h = conv3_global_maxpool(x, w3, b3)            # [B, 1024]

    w4, b4 = params["fc4"]
    h = fused_linear(h, w4, b4, relu=True)         # [B, 512]
    # drop_4: eval-mode Dropout == identity
    w5, b5 = params["fc5"]
    h = fused_linear(h, w5, b5, relu=True)         # [B, 256]
    # drop_5: eval-mode Dropout == identity
    w6, b6 = params["fc6"]
    h = fused_linear(h, w6, b6, relu=False)        # [B, num_classes]

    return log_softmax_pallas(h)


# ---------------------------------------------------------------------------
# Main
# ---------------------------------------------------------------------------

if __name__ == "__main__":
    B, N, K_NN, NUM_CLASSES = 2, 16, 4, 10

    key = jax.random.PRNGKey(0)
    k_param, k_data = jax.random.split(key)
    params = init_params(k_param, NUM_CLASSES)
    x = jax.random.normal(k_data, (B, N, 3), dtype=jnp.float32)

    fwd = jax.jit(dgcnn_forward, static_argnums=(2,))
    out = jax.block_until_ready(fwd(params, x, K_NN))

    assert out.shape == (B, NUM_CLASSES)
    assert bool(jnp.all(jnp.isfinite(out)))
    print("KERNEL_OK")
</pallas_src>

<mosaic_0001>
module attributes {stable_mosaic.version = 11 : i64} {
  func.func @_pdist_kernel(%arg0: i32, %arg1: i32, %arg2: memref<1x16x3xf32, #tpu.memory_space<vmem>>, %arg3: memref<1x16x3xf32, #tpu.memory_space<vmem>>, %arg4: memref<1x1x16xf32, #tpu.memory_space<vmem>>, %arg5: memref<1x16x16xf32, #tpu.memory_space<vmem>>) attributes {dimension_semantics = [#tpu.dimension_semantics<parallel>, #tpu.dimension_semantics<parallel>], iteration_bounds = array<i64: 2, 1>, scalar_prefetch = 0 : i64, scratch_operands = 0 : i64, tpu.core_type = #tpu.core_type<tc>, window_params = [{transform_indices = @transform_0, window_bounds = array<i64: 1, 16, 3>}, {transform_indices = @transform_1, window_bounds = array<i64: 1, 16, 3>}, {transform_indices = @transform_2, window_bounds = array<i64: 1, 1, 16>}, {transform_indices = @transform_3, window_bounds = array<i64: 1, 16, 16>}]} {
    %c0 = arith.constant 0 : index
    %c0_0 = arith.constant 0 : index
    %c0_1 = arith.constant 0 : index
    %0 = vector.load %arg2[%c0, %c0_0, %c0_1] : memref<1x16x3xf32, #tpu.memory_space<vmem>>, vector<1x16x3xf32>
    %1 = vector.shape_cast %0 : vector<1x16x3xf32> to vector<16x3xf32>
    %c0_2 = arith.constant 0 : index
    %c0_3 = arith.constant 0 : index
    %c0_4 = arith.constant 0 : index
    %2 = vector.load %arg3[%c0_2, %c0_3, %c0_4] : memref<1x16x3xf32, #tpu.memory_space<vmem>>, vector<1x16x3xf32>
    %3 = vector.shape_cast %2 : vector<1x16x3xf32> to vector<16x3xf32>
    %4 = arith.mulf %1, %1 : vector<16x3xf32>
    %cst = arith.constant dense<0.000000e+00> : vector<16xf32>
    %5 = vector.multi_reduction <add>, %4, %cst [1] : vector<16x3xf32> to vector<16xf32>
    %6 = vector.shape_cast %5 : vector<16xf32> to vector<16x1xf32>
    %cst_5 = arith.constant dense<0.000000e+00> : vector<16x16xf32>
    %7 = tpu.matmul %1, %3, %cst_5 {dimension_numbers = #tpu.dot_dimension_numbers<[1], [1], [0], [0], [0, 0, 1, 0], [], []>} : vector<16x3xf32>, vector<16x3xf32>, vector<16x16xf32> -> vector<16x16xf32>
    %c0_6 = arith.constant 0 : index
    %c0_7 = arith.constant 0 : index
    %c0_8 = arith.constant 0 : index
    %8 = vector.load %arg4[%c0_6, %c0_7, %c0_8] : memref<1x1x16xf32, #tpu.memory_space<vmem>>, vector<1x1x16xf32>
    %9 = vector.shape_cast %8 : vector<1x1x16xf32> to vector<1x16xf32>
    %10 = vector.broadcast %6 : vector<16x1xf32> to vector<16x16xf32>
    %11 = vector.broadcast %9 : vector<1x16xf32> to vector<16x16xf32>
    %12 = arith.addf %10, %11 : vector<16x16xf32>
    %cst_9 = arith.constant 2.000000e+00 : f32
    %13 = vector.broadcast %cst_9 : f32 to vector<16x16xf32>
    %14 = arith.mulf %13, %7 : vector<16x16xf32>
    %15 = arith.subf %12, %14 : vector<16x16xf32>
    %c0_10 = arith.constant 0 : index
    %c0_11 = arith.constant 0 : index
    %c0_12 = arith.constant 0 : index
    %16 = vector.load %arg5[%c0_10, %c0_11, %c0_12] : memref<1x16x16xf32, #tpu.memory_space<vmem>>, vector<1x16x16xf32>
    %17 = vector.shape_cast %16 : vector<1x16x16xf32> to vector<16x16xf32>
    %18 = vector.shape_cast %15 : vector<16x16xf32> to vector<1x16x16xf32>
    tpu.vector_store %arg5[%c0_10, %c0_11, %c0_12], %18 {strides = array<i32>} : memref<1x16x16xf32, #tpu.memory_space<vmem>>, vector<1x16x16xf32>,
    return
  }
  func.func @transform_0(%arg0: i32, %arg1: i32) -> (i32, i32, i32) {
    %c0_i32 = arith.constant 0 : i32
    %c0_i32_0 = arith.constant 0 : i32
    return %arg0, %arg1, %c0_i32 : i32, i32, i32
  }
  func.func @transform_1(%arg0: i32, %arg1: i32) -> (i32, i32, i32) {
    %c0_i32 = arith.constant 0 : i32
    %c0_i32_0 = arith.constant 0 : i32
    %c0_i32_1 = arith.constant 0 : i32
    return %arg0, %c0_i32, %c0_i32_0 : i32, i32, i32
  }
  func.func @transform_2(%arg0: i32, %arg1: i32) -> (i32, i32, i32) {
    %c0_i32 = arith.constant 0 : i32
    %c0_i32_0 = arith.constant 0 : i32
    %c0_i32_1 = arith.constant 0 : i32
    return %arg0, %c0_i32, %c0_i32_0 : i32, i32, i32
  }
  func.func @transform_3(%arg0: i32, %arg1: i32) -> (i32, i32, i32) {
    %c0_i32 = arith.constant 0 : i32
    %c0_i32_0 = arith.constant 0 : i32
    return %arg0, %arg1, %c0_i32 : i32, i32, i32
  }
}

module attributes {stable_mosaic.version = 11 : i64} {
  func.func @_edge_mlp_pool_kernel(%arg0: i32, %arg1: memref<4x32x6xf32, #tpu.memory_space<vmem>>, %arg2: memref<6x64xbf16, #tpu.memory_space<vmem>>, %arg3: memref<1x64xf32, #tpu.memory_space<vmem>>, %arg4: memref<64x64xbf16, #tpu.memory_space<vmem>>, %arg5: memref<1x64xf32, #tpu.memory_space<vmem>>, %arg6: memref<64x64xbf16, #tpu.memory_space<vmem>>, %arg7: memref<1x64xf32, #tpu.memory_space<vmem>>, %arg8: memref<32x64xf32, #tpu.memory_space<vmem>>) attributes {dimension_semantics = [#tpu.dimension_semantics<parallel>], iteration_bounds = array<i64: 1>, scalar_prefetch = 0 : i64, scratch_operands = 0 : i64, tpu.core_type = #tpu.core_type<tc>, window_params = [{transform_indices = @transform_0, window_bounds = array<i64: 4, 32, 6>}, {pipeline_mode = #tpu.pipeline_mode<synchronous>, transform_indices = @transform_1, window_bounds = array<i64: 6, 64>}, {pipeline_mode = #tpu.pipeline_mode<synchronous>, transform_indices = @transform_2, window_bounds = array<i64: 1, 64>}, {pipeline_mode = #tpu.pipeline_mode<synchronous>, transform_indices = @transform_3, window_bounds = array<i64: 64, 64>}, {pipeline_mode = #tpu.pipeline_mode<synchronous>, transform_indices = @transform_4, window_bounds = array<i64: 1, 64>}, {pipeline_mode = #tpu.pipeline_mode<synchronous>, transform_indices = @transform_5, window_bounds = array<i64: 64, 64>}, {pipeline_mode = #tpu.pipeline_mode<synchronous>, transform_indices = @transform_6, window_bounds = array<i64: 1, 64>}, {transform_indices = @transform_7, window_bounds = array<i64: 32, 64>}]} {
    %c0 = arith.constant 0 : index
    %c0_0 = arith.constant 0 : index
    %0 = vector.load %arg2[%c0, %c0_0] : memref<6x64xbf16, #tpu.memory_space<vmem>>, vector<6x64xbf16>
    %c0_1 = arith.constant 0 : index
    %c0_2 = arith.constant 0 : index
    %1 = vector.load %arg3[%c0_1, %c0_2] : memref<1x64xf32, #tpu.memory_space<vmem>>, vector<1x64xf32>
    %2 = vector.shape_cast %1 : vector<1x64xf32> to vector<1x64xf32>
    %3 = vector.broadcast %2 : vector<1x64xf32> to vector<32x64xf32>
    %c0_3 = arith.constant 0 : index
    %c0_4 = arith.constant 0 : index
    %4 = vector.load %arg4[%c0_3, %c0_4] : memref<64x64xbf16, #tpu.memory_space<vmem>>, vector<64x64xbf16>
    %c0_5 = arith.constant 0 : index
    %c0_6 = arith.constant 0 : index
    %5 = vector.load %arg5[%c0_5, %c0_6] : memref<1x64xf32, #tpu.memory_space<vmem>>, vector<1x64xf32>
    %6 = vector.shape_cast %5 : vector<1x64xf32> to vector<1x64xf32>
    %7 = vector.broadcast %6 : vector<1x64xf32> to vector<32x64xf32>
    %c0_7 = arith.constant 0 : index
    %c0_8 = arith.constant 0 : index
    %8 = vector.load %arg6[%c0_7, %c0_8] : memref<64x64xbf16, #tpu.memory_space<vmem>>, vector<64x64xbf16>
    %c0_9 = arith.constant 0 : index
    %c0_10 = arith.constant 0 : index
    %9 = vector.load %arg7[%c0_9, %c0_10] : memref<1x64xf32, #tpu.memory_space<vmem>>, vector<1x64xf32>
    %10 = vector.shape_cast %9 : vector<1x64xf32> to vector<1x64xf32>
    %11 = vector.broadcast %10 : vector<1x64xf32> to vector<32x64xf32>
    %c0_11 = arith.constant 0 : index
    %c0_12 = arith.constant 0 : index
    %c0_13 = arith.constant 0 : index
    %12 = vector.load %arg1[%c0_11, %c0_12, %c0_13] : memref<4x32x6xf32, #tpu.memory_space<vmem>>, vector<1x32x6xf32>
    %13 = vector.shape_cast %12 : vector<1x32x6xf32> to vector<32x6xf32>
    %14 = arith.truncf %13 : vector<32x6xf32> to vector<32x6xbf16>
    %cst = arith.constant dense<0.000000e+00> : vector<32x64xf32>
    %15 = tpu.matmul %14, %0, %cst {dimension_numbers = #tpu.dot_dimension_numbers<[1], [0], [0], [1], [0, 0, 1, 1], [], []>} : vector<32x6xbf16>, vector<6x64xbf16>, vector<32x64xf32> -> vector<32x64xf32>
    %16 = arith.addf %15, %3 : vector<32x64xf32>
    %cst_14 = arith.constant 0.000000e+00 : f32
    %17 = vector.broadcast %cst_14 : f32 to vector<32x64xf32>
    %18 = arith.maximumf %16, %17 : vector<32x64xf32>
    %19 = arith.truncf %18 : vector<32x64xf32> to vector<32x64xbf16>
    %cst_15 = arith.constant dense<0.000000e+00> : vector<32x64xf32>
    %20 = tpu.matmul %19, %4, %cst_15 {dimension_numbers = #tpu.dot_dimension_numbers<[1], [0], [0], [1], [0, 0, 1, 1], [], []>} : vector<32x64xbf16>, vector<64x64xbf16>, vector<32x64xf32> -> vector<32x64xf32>
    %21 = arith.addf %20, %7 : vector<32x64xf32>
    %cst_16 = arith.constant 0.000000e+00 : f32
    %22 = vector.broadcast %cst_16 : f32 to vector<32x64xf32>
    %23 = arith.maximumf %21, %22 : vector<32x64xf32>
    %24 = arith.truncf %23 : vector<32x64xf32> to vector<32x64xbf16>
    %cst_17 = arith.constant dense<0.000000e+00> : vector<32x64xf32>
    %25 = tpu.matmul %24, %8, %cst_17 {dimension_numbers = #tpu.dot_dimension_numbers<[1], [0], [0], [1], [0, 0, 1, 1], [], []>} : vector<32x64xbf16>, vector<64x64xbf16>, vector<32x64xf32> -> vector<32x64xf32>
    %26 = arith.addf %25, %11 : vector<32x64xf32>
    %cst_18 = arith.constant 0.000000e+00 : f32
    %27 = vector.broadcast %cst_18 : f32 to vector<32x64xf32>
    %28 = arith.maximumf %26, %27 : vector<32x64xf32>
    %c1 = arith.constant 1 : index
    %c0_19 = arith.constant 0 : index
    %c0_20 = arith.constant 0 : index
    %29 = vector.load %arg1[%c1, %c0_19, %c0_20] : memref<4x32x6xf32, #tpu.memory_space<vmem>>, vector<1x32x6xf32>
    %30 = vector.shape_cast %29 : vector<1x32x6xf32> to vector<32x6xf32>
    %31 = arith.truncf %30 : vector<32x6xf32> to vector<32x6xbf16>
    %cst_21 = arith.constant dense<0.000000e+00> : vector<32x64xf32>
    %32 = tpu.matmul %31, %0, %cst_21 {dimension_numbers = #tpu.dot_dimension_numbers<[1], [0], [0], [1], [0, 0, 1, 1], [], []>} : vector<32x6xbf16>, vector<6x64xbf16>, vector<32x64xf32> -> vector<32x64xf32>
    %33 = arith.addf %32, %3 : vector<32x64xf32>
    %cst_22 = arith.constant 0.000000e+00 : f32
    %34 = vector.broadcast %cst_22 : f32 to vector<32x64xf32>
    %35 = arith.maximumf %33, %34 : vector<32x64xf32>
    %36 = arith.truncf %35 : vector<32x64xf32> to vector<32x64xbf16>
    %cst_23 = arith.constant dense<0.000000e+00> : vector<32x64xf32>
    %37 = tpu.matmul %36, %4, %cst_23 {dimension_numbers = #tpu.dot_dimension_numbers<[1], [0], [0], [1], [0, 0, 1, 1], [], []>} : vector<32x64xbf16>, vector<64x64xbf16>, vector<32x64xf32> -> vector<32x64xf32>
    %38 = arith.addf %37, %7 : vector<32x64xf32>
    %cst_24 = arith.constant 0.000000e+00 : f32
    %39 = vector.broadcast %cst_24 : f32 to vector<32x64xf32>
    %40 = arith.maximumf %38, %39 : vector<32x64xf32>
    %41 = arith.truncf %40 : vector<32x64xf32> to vector<32x64xbf16>
    %cst_25 = arith.constant dense<0.000000e+00> : vector<32x64xf32>
    %42 = tpu.matmul %41, %8, %cst_25 {dimension_numbers = #tpu.dot_dimension_numbers<[1], [0], [0], [1], [0, 0, 1, 1], [], []>} : vector<32x64xbf16>, vector<64x64xbf16>, vector<32x64xf32> -> vector<32x64xf32>
    %43 = arith.addf %42, %11 : vector<32x64xf32>
    %cst_26 = arith.constant 0.000000e+00 : f32
    %44 = vector.broadcast %cst_26 : f32 to vector<32x64xf32>
    %45 = arith.maximumf %43, %44 : vector<32x64xf32>
    %46 = arith.maximumf %28, %45 : vector<32x64xf32>
    %c2 = arith.constant 2 : index
    %c0_27 = arith.constant 0 : index
    %c0_28 = arith.constant 0 : index
    %47 = vector.load %arg1[%c2, %c0_27, %c0_28] : memref<4x32x6xf32, #tpu.memory_space<vmem>>, vector<1x32x6xf32>
    %48 = vector.shape_cast %47 : vector<1x32x6xf32> to vector<32x6xf32>
    %49 = arith.truncf %48 : vector<32x6xf32> to vector<32x6xbf16>
    %cst_29 = arith.constant dense<0.000000e+00> : vector<32x64xf32>
    %50 = tpu.matmul %49, %0, %cst_29 {dimension_numbers = #tpu.dot_dimension_numbers<[1], [0], [0], [1], [0, 0, 1, 1], [], []>} : vector<32x6xbf16>, vector<6x64xbf16>, vector<32x64xf32> -> vector<32x64xf32>
    %51 = arith.addf %50, %3 : vector<32x64xf32>
    %cst_30 = arith.constant 0.000000e+00 : f32
    %52 = vector.broadcast %cst_30 : f32 to vector<32x64xf32>
    %53 = arith.maximumf %51, %52 : vector<32x64xf32>
    %54 = arith.truncf %53 : vector<32x64xf32> to vector<32x64xbf16>
    %cst_31 = arith.constant dense<0.000000e+00> : vector<32x64xf32>
    %55 = tpu.matmul %54, %4, %cst_31 {dimension_numbers = #tpu.dot_dimension_numbers<[1], [0], [0], [1], [0, 0, 1, 1], [], []>} : vector<32x64xbf16>, vector<64x64xbf16>, vector<32x64xf32> -> vector<32x64xf32>
    %56 = arith.addf %55, %7 : vector<32x64xf32>
    %cst_32 = arith.constant 0.000000e+00 : f32
    %57 = vector.broadcast %cst_32 : f32 to vector<32x64xf32>
    %58 = arith.maximumf %56, %57 : vector<32x64xf32>
    %59 = arith.truncf %58 : vector<32x64xf32> to vector<32x64xbf16>
    %cst_33 = arith.constant dense<0.000000e+00> : vector<32x64xf32>
    %60 = tpu.matmul %59, %8, %cst_33 {dimension_numbers = #tpu.dot_dimension_numbers<[1], [0], [0], [1], [0, 0, 1, 1], [], []>} : vector<32x64xbf16>, vector<64x64xbf16>, vector<32x64xf32> -> vector<32x64xf32>
    %61 = arith.addf %60, %11 : vector<32x64xf32>
    %cst_34 = arith.constant 0.000000e+00 : f32
    %62 = vector.broadcast %cst_34 : f32 to vector<32x64xf32>
    %63 = arith.maximumf %61, %62 : vector<32x64xf32>
    %64 = arith.maximumf %46, %63 : vector<32x64xf32>
    %c3 = arith.constant 3 : index
    %c0_35 = arith.constant 0 : index
    %c0_36 = arith.constant 0 : index
    %65 = vector.load %arg1[%c3, %c0_35, %c0_36] : memref<4x32x6xf32, #tpu.memory_space<vmem>>, vector<1x32x6xf32>
    %66 = vector.shape_cast %65 : vector<1x32x6xf32> to vector<32x6xf32>
    %67 = arith.truncf %66 : vector<32x6xf32> to vector<32x6xbf16>
    %cst_37 = arith.constant dense<0.000000e+00> : vector<32x64xf32>
    %68 = tpu.matmul %67, %0, %cst_37 {dimension_numbers = #tpu.dot_dimension_numbers<[1], [0], [0], [1], [0, 0, 1, 1], [], []>} : vector<32x6xbf16>, vector<6x64xbf16>, vector<32x64xf32> -> vector<32x64xf32>
    %69 = arith.addf %68, %3 : vector<32x64xf32>
    %cst_38 = arith.constant 0.000000e+00 : f32
    %70 = vector.broadcast %cst_38 : f32 to vector<32x64xf32>
    %71 = arith.maximumf %69, %70 : vector<32x64xf32>
    %72 = arith.truncf %71 : vector<32x64xf32> to vector<32x64xbf16>
    %cst_39 = arith.constant dense<0.000000e+00> : vector<32x64xf32>
    %73 = tpu.matmul %72, %4, %cst_39 {dimension_numbers = #tpu.dot_dimension_numbers<[1], [0], [0], [1], [0, 0, 1, 1], [], []>} : vector<32x64xbf16>, vector<64x64xbf16>, vector<32x64xf32> -> vector<32x64xf32>
    %74 = arith.addf %73, %7 : vector<32x64xf32>
    %cst_40 = arith.constant 0.000000e+00 : f32
    %75 = vector.broadcast %cst_40 : f32 to vector<32x64xf32>
    %76 = arith.maximumf %74, %75 : vector<32x64xf32>
    %77 = arith.truncf %76 : vector<32x64xf32> to vector<32x64xbf16>
    %cst_41 = arith.constant dense<0.000000e+00> : vector<32x64xf32>
    %78 = tpu.matmul %77, %8, %cst_41 {dimension_numbers = #tpu.dot_dimension_numbers<[1], [0], [0], [1], [0, 0, 1, 1], [], []>} : vector<32x64xbf16>, vector<64x64xbf16>, vector<32x64xf32> -> vector<32x64xf32>
    %79 = arith.addf %78, %11 : vector<32x64xf32>
    %cst_42 = arith.constant 0.000000e+00 : f32
    %80 = vector.broadcast %cst_42 : f32 to vector<32x64xf32>
    %81 = arith.maximumf %79, %80 : vector<32x64xf32>
    %82 = arith.maximumf %64, %81 : vector<32x64xf32>
    %c0_43 = arith.constant 0 : index
    %c0_44 = arith.constant 0 : index
    %83 = vector.load %arg8[%c0_43, %c0_44] : memref<32x64xf32, #tpu.memory_space<vmem>>, vector<32x64xf32>
    tpu.vector_store %arg8[%c0_43, %c0_44], %82 {strides = array<i32>} : memref<32x64xf32, #tpu.memory_space<vmem>>, vector<32x64xf32>,
    return
  }
  func.func @transform_0(%arg0: i32) -> (i32, i32, i32) {
    %c0_i32 = arith.constant 0 : i32
    %c0_i32_0 = arith.constant 0 : i32
    %c0_i32_1 = arith.constant 0 : i32
    return %c0_i32, %arg0, %c0_i32_0 : i32, i32, i32
  }
  func.func @transform_1(%arg0: i32) -> (i32, i32) {
    %c0_i32 = arith.constant 0 : i32
    %c0_i32_0 = arith.constant 0 : i32
    %c0_i32_1 = arith.constant 0 : i32
    return %c0_i32, %c0_i32_0 : i32, i32
  }
  func.func @transform_2(%arg0: i32) -> (i32, i32) {
    %c0_i32 = arith.constant 0 : i32
    %c0_i32_0 = arith.constant 0 : i32
    %c0_i32_1 = arith.constant 0 : i32
    return %c0_i32, %c0_i32_0 : i32, i32
  }
  func.func @transform_3(%arg0: i32) -> (i32, i32) {
    %c0_i32 = arith.constant 0 : i32
    %c0_i32_0 = arith.constant 0 : i32
    %c0_i32_1 = arith.constant 0 : i32
    return %c0_i32, %c0_i32_0 : i32, i32
  }
  func.func @transform_4(%arg0: i32) -> (i32, i32) {
    %c0_i32 = arith.constant 0 : i32
    %c0_i32_0 = arith.constant 0 : i32
    %c0_i32_1 = arith.constant 0 : i32
    return %c0_i32, %c0_i32_0 : i32, i32
  }
  func.func @transform_5(%arg0: i32) -> (i32, i32) {
    %c0_i32 = arith.constant 0 : i32
    %c0_i32_0 = arith.constant 0 : i32
    %c0_i32_1 = arith.constant 0 : i32
    return %c0_i32, %c0_i32_0 : i32, i32
  }
  func.func @transform_6(%arg0: i32) -> (i32, i32) {
    %c0_i32 = arith.constant 0 : i32
    %c0_i32_0 = arith.constant 0 : i32
    %c0_i32_1 = arith.constant 0 : i32
    return %c0_i32, %c0_i32_0 : i32, i32
  }
  func.func @transform_7(%arg0: i32) -> (i32, i32) {
    %c0_i32 = arith.constant 0 : i32
    %c0_i32_0 = arith.constant 0 : i32
    return %arg0, %c0_i32 : i32, i32
  }
}

module attributes {stable_mosaic.version = 11 : i64} {
  func.func @_pdist_kernel(%arg0: i32, %arg1: i32, %arg2: memref<1x16x64xf32, #tpu.memory_space<vmem>>, %arg3: memref<1x16x64xf32, #tpu.memory_space<vmem>>, %arg4: memref<1x1x16xf32, #tpu.memory_space<vmem>>, %arg5: memref<1x16x16xf32, #tpu.memory_space<vmem>>) attributes {dimension_semantics = [#tpu.dimension_semantics<parallel>, #tpu.dimension_semantics<parallel>], iteration_bounds = array<i64: 2, 1>, scalar_prefetch = 0 : i64, scratch_operands = 0 : i64, tpu.core_type = #tpu.core_type<tc>, window_params = [{transform_indices = @transform_0, window_bounds = array<i64: 1, 16, 64>}, {transform_indices = @transform_1, window_bounds = array<i64: 1, 16, 64>}, {transform_indices = @transform_2, window_bounds = array<i64: 1, 1, 16>}, {transform_indices = @transform_3, window_bounds = array<i64: 1, 16, 16>}]} {
    %c0 = arith.constant 0 : index
    %c0_0 = arith.constant 0 : index
    %c0_1 = arith.constant 0 : index
    %0 = vector.load %arg2[%c0, %c0_0, %c0_1] : memref<1x16x64xf32, #tpu.memory_space<vmem>>, vector<1x16x64xf32>
    %1 = vector.shape_cast %0 : vector<1x16x64xf32> to vector<16x64xf32>
    %c0_2 = arith.constant 0 : index
    %c0_3 = arith.constant 0 : index
    %c0_4 = arith.constant 0 : index
    %2 = vector.load %arg3[%c0_2, %c0_3, %c0_4] : memref<1x16x64xf32, #tpu.memory_space<vmem>>, vector<1x16x64xf32>
    %3 = vector.shape_cast %2 : vector<1x16x64xf32> to vector<16x64xf32>
    %4 = arith.mulf %1, %1 : vector<16x64xf32>
    %cst = arith.constant dense<0.000000e+00> : vector<16xf32>
    %5 = vector.multi_reduction <add>, %4, %cst [1] : vector<16x64xf32> to vector<16xf32>
    %6 = vector.shape_cast %5 : vector<16xf32> to vector<16x1xf32>
    %cst_5 = arith.constant dense<0.000000e+00> : vector<16x16xf32>
    %7 = tpu.matmul %1, %3, %cst_5 {dimension_numbers = #tpu.dot_dimension_numbers<[1], [1], [0], [0], [0, 0, 1, 0], [], []>} : vector<16x64xf32>, vector<16x64xf32>, vector<16x16xf32> -> vector<16x16xf32>
    %c0_6 = arith.constant 0 : index
    %c0_7 = arith.constant 0 : index
    %c0_8 = arith.constant 0 : index
    %8 = vector.load %arg4[%c0_6, %c0_7, %c0_8] : memref<1x1x16xf32, #tpu.memory_space<vmem>>, vector<1x1x16xf32>
    %9 = vector.shape_cast %8 : vector<1x1x16xf32> to vector<1x16xf32>
    %10 = vector.broadcast %6 : vector<16x1xf32> to vector<16x16xf32>
    %11 = vector.broadcast %9 : vector<1x16xf32> to vector<16x16xf32>
    %12 = arith.addf %10, %11 : vector<16x16xf32>
    %cst_9 = arith.constant 2.000000e+00 : f32
    %13 = vector.broadcast %cst_9 : f32 to vector<16x16xf32>
    %14 = arith.mulf %13, %7 : vector<16x16xf32>
    %15 = arith.subf %12, %14 : vector<16x16xf32>
    %c0_10 = arith.constant 0 : index
    %c0_11 = arith.constant 0 : index
    %c0_12 = arith.constant 0 : index
    %16 = vector.load %arg5[%c0_10, %c0_11, %c0_12] : memref<1x16x16xf32, #tpu.memory_space<vmem>>, vector<1x16x16xf32>
    %17 = vector.shape_cast %16 : vector<1x16x16xf32> to vector<16x16xf32>
    %18 = vector.shape_cast %15 : vector<16x16xf32> to vector<1x16x16xf32>
    tpu.vector_store %arg5[%c0_10, %c0_11, %c0_12], %18 {strides = array<i32>} : memref<1x16x16xf32, #tpu.memory_space<vmem>>, vector<1x16x16xf32>,
    return
  }
  func.func @transform_0(%arg0: i32, %arg1: i32) -> (i32, i32, i32) {
    %c0_i32 = arith.constant 0 : i32
    %c0_i32_0 = arith.constant 0 : i32
    return %arg0, %arg1, %c0_i32 : i32, i32, i32
  }
  func.func @transform_1(%arg0: i32, %arg1: i32) -> (i32, i32, i32) {
    %c0_i32 = arith.constant 0 : i32
    %c0_i32_0 = arith.constant 0 : i32
    %c0_i32_1 = arith.constant 0 : i32
    return %arg0, %c0_i32, %c0_i32_0 : i32, i32, i32
  }
  func.func @transform_2(%arg0: i32, %arg1: i32) -> (i32, i32, i32) {
    %c0_i32 = arith.constant 0 : i32
    %c0_i32_0 = arith.constant 0 : i32
    %c0_i32_1 = arith.constant 0 : i32
    return %arg0, %c0_i32, %c0_i32_0 : i32, i32, i32
  }
  func.func @transform_3(%arg0: i32, %arg1: i32) -> (i32, i32, i32) {
    %c0_i32 = arith.constant 0 : i32
    %c0_i32_0 = arith.constant 0 : i32
    return %arg0, %arg1, %c0_i32 : i32, i32, i32
  }
}

module attributes {stable_mosaic.version = 11 : i64} {
  func.func @_edge_mlp_pool_kernel(%arg0: i32, %arg1: memref<4x32x128xf32, #tpu.memory_space<vmem>>, %arg2: memref<128x128xbf16, #tpu.memory_space<vmem>>, %arg3: memref<1x128xf32, #tpu.memory_space<vmem>>, %arg4: memref<32x128xf32, #tpu.memory_space<vmem>>) attributes {dimension_semantics = [#tpu.dimension_semantics<parallel>], iteration_bounds = array<i64: 1>, scalar_prefetch = 0 : i64, scratch_operands = 0 : i64, tpu.core_type = #tpu.core_type<tc>, window_params = [{transform_indices = @transform_0, window_bounds = array<i64: 4, 32, 128>}, {pipeline_mode = #tpu.pipeline_mode<synchronous>, transform_indices = @transform_1, window_bounds = array<i64: 128, 128>}, {pipeline_mode = #tpu.pipeline_mode<synchronous>, transform_indices = @transform_2, window_bounds = array<i64: 1, 128>}, {transform_indices = @transform_3, window_bounds = array<i64: 32, 128>}]} {
    %c0 = arith.constant 0 : index
    %c0_0 = arith.constant 0 : index
    %0 = vector.load %arg2[%c0, %c0_0] : memref<128x128xbf16, #tpu.memory_space<vmem>>, vector<128x128xbf16>
    %c0_1 = arith.constant 0 : index
    %c0_2 = arith.constant 0 : index
    %1 = vector.load %arg3[%c0_1, %c0_2] : memref<1x128xf32, #tpu.memory_space<vmem>>, vector<1x128xf32>
    %2 = vector.shape_cast %1 : vector<1x128xf32> to vector<1x128xf32>
    %3 = vector.broadcast %2 : vector<1x128xf32> to vector<32x128xf32>
    %c0_3 = arith.constant 0 : index
    %c0_4 = arith.constant 0 : index
    %c0_5 = arith.constant 0 : index
    %4 = vector.load %arg1[%c0_3, %c0_4, %c0_5] : memref<4x32x128xf32, #tpu.memory_space<vmem>>, vector<1x32x128xf32>
    %5 = vector.shape_cast %4 : vector<1x32x128xf32> to vector<32x128xf32>
    %6 = arith.truncf %5 : vector<32x128xf32> to vector<32x128xbf16>
    %cst = arith.constant dense<0.000000e+00> : vector<32x128xf32>
    %7 = tpu.matmul %6, %0, %cst {dimension_numbers = #tpu.dot_dimension_numbers<[1], [0], [0], [1], [0, 0, 1, 1], [], []>} : vector<32x128xbf16>, vector<128x128xbf16>, vector<32x128xf32> -> vector<32x128xf32>
    %8 = arith.addf %7, %3 : vector<32x128xf32>
    %cst_6 = arith.constant 0.000000e+00 : f32
    %9 = vector.broadcast %cst_6 : f32 to vector<32x128xf32>
    %10 = arith.maximumf %8, %9 : vector<32x128xf32>
    %c1 = arith.constant 1 : index
    %c0_7 = arith.constant 0 : index
    %c0_8 = arith.constant 0 : index
    %11 = vector.load %arg1[%c1, %c0_7, %c0_8] : memref<4x32x128xf32, #tpu.memory_space<vmem>>, vector<1x32x128xf32>
    %12 = vector.shape_cast %11 : vector<1x32x128xf32> to vector<32x128xf32>
    %13 = arith.truncf %12 : vector<32x128xf32> to vector<32x128xbf16>
    %cst_9 = arith.constant dense<0.000000e+00> : vector<32x128xf32>
    %14 = tpu.matmul %13, %0, %cst_9 {dimension_numbers = #tpu.dot_dimension_numbers<[1], [0], [0], [1], [0, 0, 1, 1], [], []>} : vector<32x128xbf16>, vector<128x128xbf16>, vector<32x128xf32> -> vector<32x128xf32>
    %15 = arith.addf %14, %3 : vector<32x128xf32>
    %cst_10 = arith.constant 0.000000e+00 : f32
    %16 = vector.broadcast %cst_10 : f32 to vector<32x128xf32>
    %17 = arith.maximumf %15, %16 : vector<32x128xf32>
    %18 = arith.maximumf %10, %17 : vector<32x128xf32>
    %c2 = arith.constant 2 : index
    %c0_11 = arith.constant 0 : index
    %c0_12 = arith.constant 0 : index
    %19 = vector.load %arg1[%c2, %c0_11, %c0_12] : memref<4x32x128xf32, #tpu.memory_space<vmem>>, vector<1x32x128xf32>
    %20 = vector.shape_cast %19 : vector<1x32x128xf32> to vector<32x128xf32>
    %21 = arith.truncf %20 : vector<32x128xf32> to vector<32x128xbf16>
    %cst_13 = arith.constant dense<0.000000e+00> : vector<32x128xf32>
    %22 = tpu.matmul %21, %0, %cst_13 {dimension_numbers = #tpu.dot_dimension_numbers<[1], [0], [0], [1], [0, 0, 1, 1], [], []>} : vector<32x128xbf16>, vector<128x128xbf16>, vector<32x128xf32> -> vector<32x128xf32>
    %23 = arith.addf %22, %3 : vector<32x128xf32>
    %cst_14 = arith.constant 0.000000e+00 : f32
    %24 = vector.broadcast %cst_14 : f32 to vector<32x128xf32>
    %25 = arith.maximumf %23, %24 : vector<32x128xf32>
    %26 = arith.maximumf %18, %25 : vector<32x128xf32>
    %c3 = arith.constant 3 : index
    %c0_15 = arith.constant 0 : index
    %c0_16 = arith.constant 0 : index
    %27 = vector.load %arg1[%c3, %c0_15, %c0_16] : memref<4x32x128xf32, #tpu.memory_space<vmem>>, vector<1x32x128xf32>
    %28 = vector.shape_cast %27 : vector<1x32x128xf32> to vector<32x128xf32>
    %29 = arith.truncf %28 : vector<32x128xf32> to vector<32x128xbf16>
    %cst_17 = arith.constant dense<0.000000e+00> : vector<32x128xf32>
    %30 = tpu.matmul %29, %0, %cst_17 {dimension_numbers = #tpu.dot_dimension_numbers<[1], [0], [0], [1], [0, 0, 1, 1], [], []>} : vector<32x128xbf16>, vector<128x128xbf16>, vector<32x128xf32> -> vector<32x128xf32>
    %31 = arith.addf %30, %3 : vector<32x128xf32>
    %cst_18 = arith.constant 0.000000e+00 : f32
    %32 = vector.broadcast %cst_18 : f32 to vector<32x128xf32>
    %33 = arith.maximumf %31, %32 : vector<32x128xf32>
    %34 = arith.maximumf %26, %33 : vector<32x128xf32>
    %c0_19 = arith.constant 0 : index
    %c0_20 = arith.constant 0 : index
    %35 = vector.load %arg4[%c0_19, %c0_20] : memref<32x128xf32, #tpu.memory_space<vmem>>, vector<32x128xf32>
    tpu.vector_store %arg4[%c0_19, %c0_20], %34 {strides = array<i32>} : memref<32x128xf32, #tpu.memory_space<vmem>>, vector<32x128xf32>,
    return
  }
  func.func @transform_0(%arg0: i32) -> (i32, i32, i32) {
    %c0_i32 = arith.constant 0 : i32
    %c0_i32_0 = arith.constant 0 : i32
    %c0_i32_1 = arith.constant 0 : i32
    return %c0_i32, %arg0, %c0_i32_0 : i32, i32, i32
  }
  func.func @transform_1(%arg0: i32) -> (i32, i32) {
    %c0_i32 = arith.constant 0 : i32
    %c0_i32_0 = arith.constant 0 : i32
    %c0_i32_1 = arith.constant 0 : i32
    return %c0_i32, %c0_i32_0 : i32, i32
  }
  func.func @transform_2(%arg0: i32) -> (i32, i32) {
    %c0_i32 = arith.constant 0 : i32
    %c0_i32_0 = arith.constant 0 : i32
    %c0_i32_1 = arith.constant 0 : i32
    return %c0_i32, %c0_i32_0 : i32, i32
  }
  func.func @transform_3(%arg0: i32) -> (i32, i32) {
    %c0_i32 = arith.constant 0 : i32
    %c0_i32_0 = arith.constant 0 : i32
    return %arg0, %c0_i32 : i32, i32
  }
}

module attributes {stable_mosaic.version = 11 : i64} {
  func.func @_conv_maxpool_kernel(%arg0: i32, %arg1: i32, %arg2: memref<1x16x128xf32, #tpu.memory_space<vmem>>, %arg3: memref<128x1024xbf16, #tpu.memory_space<vmem>>, %arg4: memref<1x1024xf32, #tpu.memory_space<vmem>>, %arg5: memref<1x1x1024xf32, #tpu.memory_space<vmem>>) attributes {dimension_semantics = [#tpu.dimension_semantics<parallel>, #tpu.dimension_semantics<arbitrary>], iteration_bounds = array<i64: 2, 1>, scalar_prefetch = 0 : i64, scratch_operands = 0 : i64, tpu.core_type = #tpu.core_type<tc>, window_params = [{transform_indices = @transform_0, window_bounds = array<i64: 1, 16, 128>}, {pipeline_mode = #tpu.pipeline_mode<synchronous>, transform_indices = @transform_1, window_bounds = array<i64: 128, 1024>}, {pipeline_mode = #tpu.pipeline_mode<synchronous>, transform_indices = @transform_2, window_bounds = array<i64: 1, 1024>}, {transform_indices = @transform_3, window_bounds = array<i64: 1, 1, 1024>}]} {
    %c0 = arith.constant 0 : index
    %c0_0 = arith.constant 0 : index
    %c0_1 = arith.constant 0 : index
    %0 = vector.load %arg2[%c0, %c0_0, %c0_1] : memref<1x16x128xf32, #tpu.memory_space<vmem>>, vector<1x16x128xf32>
    %1 = vector.shape_cast %0 : vector<1x16x128xf32> to vector<16x128xf32>
    %2 = arith.truncf %1 : vector<16x128xf32> to vector<16x128xbf16>
    %c0_2 = arith.constant 0 : index
    %c0_3 = arith.constant 0 : index
    %3 = vector.load %arg3[%c0_2, %c0_3] : memref<128x1024xbf16, #tpu.memory_space<vmem>>, vector<128x1024xbf16>
    %cst = arith.constant dense<0.000000e+00> : vector<16x1024xf32>
    %4 = tpu.matmul %2, %3, %cst {dimension_numbers = #tpu.dot_dimension_numbers<[1], [0], [0], [1], [0, 0, 1, 1], [], []>} : vector<16x128xbf16>, vector<128x1024xbf16>, vector<16x1024xf32> -> vector<16x1024xf32>
    %c0_4 = arith.constant 0 : index
    %c0_5 = arith.constant 0 : index
    %5 = vector.load %arg4[%c0_4, %c0_5] : memref<1x1024xf32, #tpu.memory_space<vmem>>, vector<1x1024xf32>
    %6 = vector.broadcast %5 : vector<1x1024xf32> to vector<16x1024xf32>
    %7 = arith.addf %4, %6 : vector<16x1024xf32>
    %cst_6 = arith.constant 0.000000e+00 : f32
    %8 = vector.broadcast %cst_6 : f32 to vector<16x1024xf32>
    %9 = arith.maximumf %7, %8 : vector<16x1024xf32>
    %10 = tpu.iota {dimensions = array<i32: 0>} : vector<16x1024xi32>
    %c16_i32 = arith.constant 16 : i32
    %11 = arith.muli %arg1, %c16_i32 : i32
    %12 = vector.broadcast %11 : i32 to vector<16x1024xi32>
    %13 = arith.addi %10, %12 : vector<16x1024xi32>
    %c16_i32_7 = arith.constant 16 : i32
    %14 = vector.broadcast %c16_i32_7 : i32 to vector<16x1024xi32>
    %15 = arith.cmpi slt, %13, %14 : vector<16x1024xi32>
    %cst_8 = arith.constant 0xFF800000 : f32
    %16 = vector.broadcast %cst_8 : f32 to vector<16x1024xf32>
    %17 = arith.select %15, %9, %16 : vector<16x1024xi1>, vector<16x1024xf32>
    %cst_9 = arith.constant dense<0xFF800000> : vector<1024xf32>
    %18 = vector.multi_reduction <maximumf>, %17, %cst_9 [0] : vector<16x1024xf32> to vector<1024xf32>
    %19 = vector.shape_cast %18 : vector<1024xf32> to vector<1x1024xf32>
    %c0_i32 = arith.constant 0 : i32
    %20 = arith.cmpi eq, %arg1, %c0_i32 : i32
    %21 = arith.extui %20 : i1 to i32
    %c0_i32_10 = arith.constant 0 : i32
    %22 = arith.cmpi ne, %21, %c0_i32_10 : i32
    scf.if %22 {
      %c0_13 = arith.constant 0 : index
      %c0_14 = arith.constant 0 : index
      %c0_15 = arith.constant 0 : index
      %26 = vector.load %arg5[%c0_13, %c0_14, %c0_15] : memref<1x1x1024xf32, #tpu.memory_space<vmem>>, vector<1x1x1024xf32>
      %27 = vector.shape_cast %26 : vector<1x1x1024xf32> to vector<1x1024xf32>
      %28 = vector.shape_cast %19 : vector<1x1024xf32> to vector<1x1x1024xf32>
      tpu.vector_store %arg5[%c0_13, %c0_14, %c0_15], %28 {strides = array<i32>} : memref<1x1x1024xf32, #tpu.memory_space<vmem>>, vector<1x1x1024xf32>,
    } else {
    }
    %c0_i32_11 = arith.constant 0 : i32
    %23 = arith.cmpi sgt, %arg1, %c0_i32_11 : i32
    %24 = arith.extui %23 : i1 to i32
    %c0_i32_12 = arith.constant 0 : i32
    %25 = arith.cmpi ne, %24, %c0_i32_12 : i32
    scf.if %25 {
      %c0_13 = arith.constant 0 : index
      %c0_14 = arith.constant 0 : index
      %c0_15 = arith.constant 0 : index
      %26 = vector.load %arg5[%c0_13, %c0_14, %c0_15] : memref<1x1x1024xf32, #tpu.memory_space<vmem>>, vector<1x1x1024xf32>
      %27 = vector.shape_cast %26 : vector<1x1x1024xf32> to vector<1x1024xf32>
      %28 = arith.maximumf %27, %19 : vector<1x1024xf32>
      %c0_16 = arith.constant 0 : index
      %c0_17 = arith.constant 0 : index
      %c0_18 = arith.constant 0 : index
      %29 = vector.load %arg5[%c0_16, %c0_17, %c0_18] : memref<1x1x1024xf32, #tpu.memory_space<vmem>>, vector<1x1x1024xf32>
      %30 = vector.shape_cast %29 : vector<1x1x1024xf32> to vector<1x1024xf32>
      %31 = vector.shape_cast %28 : vector<1x1024xf32> to vector<1x1x1024xf32>
      tpu.vector_store %arg5[%c0_16, %c0_17, %c0_18], %31 {strides = array<i32>} : memref<1x1x1024xf32, #tpu.memory_space<vmem>>, vector<1x1x1024xf32>,
    } else {
    }
    return
  }
  func.func @transform_0(%arg0: i32, %arg1: i32) -> (i32, i32, i32) {
    %c0_i32 = arith.constant 0 : i32
    %c0_i32_0 = arith.constant 0 : i32
    return %arg0, %arg1, %c0_i32 : i32, i32, i32
  }
  func.func @transform_1(%arg0: i32, %arg1: i32) -> (i32, i32) {
    %c0_i32 = arith.constant 0 : i32
    %c0_i32_0 = arith.constant 0 : i32
    %c0_i32_1 = arith.constant 0 : i32
    return %c0_i32, %c0_i32_0 : i32, i32
  }
  func.func @transform_2(%arg0: i32, %arg1: i32) -> (i32, i32) {
    %c0_i32 = arith.constant 0 : i32
    %c0_i32_0 = arith.constant 0 : i32
    %c0_i32_1 = arith.constant 0 : i32
    return %c0_i32, %c0_i32_0 : i32, i32
  }
  func.func @transform_3(%arg0: i32, %arg1: i32) -> (i32, i32, i32) {
    %c0_i32 = arith.constant 0 : i32
    %c0_i32_0 = arith.constant 0 : i32
    %c0_i32_1 = arith.constant 0 : i32
    return %arg0, %c0_i32, %c0_i32_0 : i32, i32, i32
  }
}

module attributes {stable_mosaic.version = 11 : i64} {
  func.func @_linear_kernel(%arg0: i32, %arg1: memref<8x1024xf32, #tpu.memory_space<vmem>>, %arg2: memref<1024x512xbf16, #tpu.memory_space<vmem>>, %arg3: memref<1x512xf32, #tpu.memory_space<vmem>>, %arg4: memref<8x512xf32, #tpu.memory_space<vmem>>) attributes {dimension_semantics = [#tpu.dimension_semantics<parallel>], iteration_bounds = array<i64: 1>, scalar_prefetch = 0 : i64, scratch_operands = 0 : i64, tpu.core_type = #tpu.core_type<tc>, window_params = [{transform_indices = @transform_0, window_bounds = array<i64: 8, 1024>}, {pipeline_mode = #tpu.pipeline_mode<synchronous>, transform_indices = @transform_1, window_bounds = array<i64: 1024, 512>}, {pipeline_mode = #tpu.pipeline_mode<synchronous>, transform_indices = @transform_2, window_bounds = array<i64: 1, 512>}, {transform_indices = @transform_3, window_bounds = array<i64: 8, 512>}]} {
    %c0 = arith.constant 0 : index
    %c0_0 = arith.constant 0 : index
    %0 = vector.load %arg1[%c0, %c0_0] : memref<8x1024xf32, #tpu.memory_space<vmem>>, vector<8x1024xf32>
    %1 = arith.truncf %0 : vector<8x1024xf32> to vector<8x1024xbf16>
    %c0_1 = arith.constant 0 : index
    %c0_2 = arith.constant 0 : index
    %2 = vector.load %arg2[%c0_1, %c0_2] : memref<1024x512xbf16, #tpu.memory_space<vmem>>, vector<1024x512xbf16>
    %cst = arith.constant dense<0.000000e+00> : vector<8x512xf32>
    %3 = tpu.matmul %1, %2, %cst {dimension_numbers = #tpu.dot_dimension_numbers<[1], [0], [0], [1], [0, 0, 1, 1], [], []>} : vector<8x1024xbf16>, vector<1024x512xbf16>, vector<8x512xf32> -> vector<8x512xf32>
    %c0_3 = arith.constant 0 : index
    %c0_4 = arith.constant 0 : index
    %4 = vector.load %arg3[%c0_3, %c0_4] : memref<1x512xf32, #tpu.memory_space<vmem>>, vector<1x512xf32>
    %5 = vector.broadcast %4 : vector<1x512xf32> to vector<8x512xf32>
    %6 = arith.addf %3, %5 : vector<8x512xf32>
    %cst_5 = arith.constant 0.000000e+00 : f32
    %7 = vector.broadcast %cst_5 : f32 to vector<8x512xf32>
    %8 = arith.maximumf %6, %7 : vector<8x512xf32>
    %c0_6 = arith.constant 0 : index
    %c0_7 = arith.constant 0 : index
    %9 = vector.load %arg4[%c0_6, %c0_7] : memref<8x512xf32, #tpu.memory_space<vmem>>, vector<8x512xf32>
    tpu.vector_store %arg4[%c0_6, %c0_7], %8 {strides = array<i32>} : memref<8x512xf32, #tpu.memory_space<vmem>>, vector<8x512xf32>,
    return
  }
  func.func @transform_0(%arg0: i32) -> (i32, i32) {
    %c0_i32 = arith.constant 0 : i32
    %c0_i32_0 = arith.constant 0 : i32
    return %arg0, %c0_i32 : i32, i32
  }
  func.func @transform_1(%arg0: i32) -> (i32, i32) {
    %c0_i32 = arith.constant 0 : i32
    %c0_i32_0 = arith.constant 0 : i32
    %c0_i32_1 = arith.constant 0 : i32
    return %c0_i32, %c0_i32_0 : i32, i32
  }
  func.func @transform_2(%arg0: i32) -> (i32, i32) {
    %c0_i32 = arith.constant 0 : i32
    %c0_i32_0 = arith.constant 0 : i32
    %c0_i32_1 = arith.constant 0 : i32
    return %c0_i32, %c0_i32_0 : i32, i32
  }
  func.func @transform_3(%arg0: i32) -> (i32, i32) {
    %c0_i32 = arith.constant 0 : i32
    %c0_i32_0 = arith.constant 0 : i32
    return %arg0, %c0_i32 : i32, i32
  }
}

module attributes {stable_mosaic.version = 11 : i64} {
  func.func @_linear_kernel(%arg0: i32, %arg1: memref<8x512xf32, #tpu.memory_space<vmem>>, %arg2: memref<512x256xbf16, #tpu.memory_space<vmem>>, %arg3: memref<1x256xf32, #tpu.memory_space<vmem>>, %arg4: memref<8x256xf32, #tpu.memory_space<vmem>>) attributes {dimension_semantics = [#tpu.dimension_semantics<parallel>], iteration_bounds = array<i64: 1>, scalar_prefetch = 0 : i64, scratch_operands = 0 : i64, tpu.core_type = #tpu.core_type<tc>, window_params = [{transform_indices = @transform_0, window_bounds = array<i64: 8, 512>}, {pipeline_mode = #tpu.pipeline_mode<synchronous>, transform_indices = @transform_1, window_bounds = array<i64: 512, 256>}, {pipeline_mode = #tpu.pipeline_mode<synchronous>, transform_indices = @transform_2, window_bounds = array<i64: 1, 256>}, {transform_indices = @transform_3, window_bounds = array<i64: 8, 256>}]} {
    %c0 = arith.constant 0 : index
    %c0_0 = arith.constant 0 : index
    %0 = vector.load %arg1[%c0, %c0_0] : memref<8x512xf32, #tpu.memory_space<vmem>>, vector<8x512xf32>
    %1 = arith.truncf %0 : vector<8x512xf32> to vector<8x512xbf16>
    %c0_1 = arith.constant 0 : index
    %c0_2 = arith.constant 0 : index
    %2 = vector.load %arg2[%c0_1, %c0_2] : memref<512x256xbf16, #tpu.memory_space<vmem>>, vector<512x256xbf16>
    %cst = arith.constant dense<0.000000e+00> : vector<8x256xf32>
    %3 = tpu.matmul %1, %2, %cst {dimension_numbers = #tpu.dot_dimension_numbers<[1], [0], [0], [1], [0, 0, 1, 1], [], []>} : vector<8x512xbf16>, vector<512x256xbf16>, vector<8x256xf32> -> vector<8x256xf32>
    %c0_3 = arith.constant 0 : index
    %c0_4 = arith.constant 0 : index
    %4 = vector.load %arg3[%c0_3, %c0_4] : memref<1x256xf32, #tpu.memory_space<vmem>>, vector<1x256xf32>
    %5 = vector.broadcast %4 : vector<1x256xf32> to vector<8x256xf32>
    %6 = arith.addf %3, %5 : vector<8x256xf32>
    %cst_5 = arith.constant 0.000000e+00 : f32
    %7 = vector.broadcast %cst_5 : f32 to vector<8x256xf32>
    %8 = arith.maximumf %6, %7 : vector<8x256xf32>
    %c0_6 = arith.constant 0 : index
    %c0_7 = arith.constant 0 : index
    %9 = vector.load %arg4[%c0_6, %c0_7] : memref<8x256xf32, #tpu.memory_space<vmem>>, vector<8x256xf32>
    tpu.vector_store %arg4[%c0_6, %c0_7], %8 {strides = array<i32>} : memref<8x256xf32, #tpu.memory_space<vmem>>, vector<8x256xf32>,
    return
  }
  func.func @transform_0(%arg0: i32) -> (i32, i32) {
    %c0_i32 = arith.constant 0 : i32
    %c0_i32_0 = arith.constant 0 : i32
    return %arg0, %c0_i32 : i32, i32
  }
  func.func @transform_1(%arg0: i32) -> (i32, i32) {
    %c0_i32 = arith.constant 0 : i32
    %c0_i32_0 = arith.constant 0 : i32
    %c0_i32_1 = arith.constant 0 : i32
    return %c0_i32, %c0_i32_0 : i32, i32
  }
  func.func @transform_2(%arg0: i32) -> (i32, i32) {
    %c0_i32 = arith.constant 0 : i32
    %c0_i32_0 = arith.constant 0 : i32
    %c0_i32_1 = arith.constant 0 : i32
    return %c0_i32, %c0_i32_0 : i32, i32
  }
  func.func @transform_3(%arg0: i32) -> (i32, i32) {
    %c0_i32 = arith.constant 0 : i32
    %c0_i32_0 = arith.constant 0 : i32
    return %arg0, %c0_i32 : i32, i32
  }
}

module attributes {stable_mosaic.version = 11 : i64} {
  func.func @_linear_kernel(%arg0: i32, %arg1: memref<8x256xf32, #tpu.memory_space<vmem>>, %arg2: memref<256x10xbf16, #tpu.memory_space<vmem>>, %arg3: memref<1x10xf32, #tpu.memory_space<vmem>>, %arg4: memref<8x10xf32, #tpu.memory_space<vmem>>) attributes {dimension_semantics = [#tpu.dimension_semantics<parallel>], iteration_bounds = array<i64: 1>, scalar_prefetch = 0 : i64, scratch_operands = 0 : i64, tpu.core_type = #tpu.core_type<tc>, window_params = [{transform_indices = @transform_0, window_bounds = array<i64: 8, 256>}, {pipeline_mode = #tpu.pipeline_mode<synchronous>, transform_indices = @transform_1, window_bounds = array<i64: 256, 10>}, {pipeline_mode = #tpu.pipeline_mode<synchronous>, transform_indices = @transform_2, window_bounds = array<i64: 1, 10>}, {transform_indices = @transform_3, window_bounds = array<i64: 8, 10>}]} {
    %c0 = arith.constant 0 : index
    %c0_0 = arith.constant 0 : index
    %0 = vector.load %arg1[%c0, %c0_0] : memref<8x256xf32, #tpu.memory_space<vmem>>, vector<8x256xf32>
    %1 = arith.truncf %0 : vector<8x256xf32> to vector<8x256xbf16>
    %c0_1 = arith.constant 0 : index
    %c0_2 = arith.constant 0 : index
    %2 = vector.load %arg2[%c0_1, %c0_2] : memref<256x10xbf16, #tpu.memory_space<vmem>>, vector<256x10xbf16>
    %cst = arith.constant dense<0.000000e+00> : vector<8x10xf32>
    %3 = tpu.matmul %1, %2, %cst {dimension_numbers = #tpu.dot_dimension_numbers<[1], [0], [0], [1], [0, 0, 1, 1], [], []>} : vector<8x256xbf16>, vector<256x10xbf16>, vector<8x10xf32> -> vector<8x10xf32>
    %c0_3 = arith.constant 0 : index
    %c0_4 = arith.constant 0 : index
    %4 = vector.load %arg3[%c0_3, %c0_4] : memref<1x10xf32, #tpu.memory_space<vmem>>, vector<1x10xf32>
    %5 = vector.broadcast %4 : vector<1x10xf32> to vector<8x10xf32>
    %6 = arith.addf %3, %5 : vector<8x10xf32>
    %c0_5 = arith.constant 0 : index
    %c0_6 = arith.constant 0 : index
    %7 = vector.load %arg4[%c0_5, %c0_6] : memref<8x10xf32, #tpu.memory_space<vmem>>, vector<8x10xf32>
    tpu.vector_store %arg4[%c0_5, %c0_6], %6 {strides = array<i32>} : memref<8x10xf32, #tpu.memory_space<vmem>>, vector<8x10xf32>,
    return
  }
  func.func @transform_0(%arg0: i32) -> (i32, i32) {
    %c0_i32 = arith.constant 0 : i32
    %c0_i32_0 = arith.constant 0 : i32
    return %arg0, %c0_i32 : i32, i32
  }
  func.func @transform_1(%arg0: i32) -> (i32, i32) {
    %c0_i32 = arith.constant 0 : i32
    %c0_i32_0 = arith.constant 0 : i32
    %c0_i32_1 = arith.constant 0 : i32
    return %c0_i32, %c0_i32_0 : i32, i32
  }
  func.func @transform_2(%arg0: i32) -> (i32, i32) {
    %c0_i32 = arith.constant 0 : i32
    %c0_i32_0 = arith.constant 0 : i32
    %c0_i32_1 = arith.constant 0 : i32
    return %c0_i32, %c0_i32_0 : i32, i32
  }
  func.func @transform_3(%arg0: i32) -> (i32, i32) {
    %c0_i32 = arith.constant 0 : i32
    %c0_i32_0 = arith.constant 0 : i32
    return %arg0, %c0_i32 : i32, i32
  }
}

module attributes {stable_mosaic.version = 11 : i64} {
  func.func @_log_softmax_kernel(%arg0: memref<2x10xf32, #tpu.memory_space<vmem>>, %arg1: memref<2x10xf32, #tpu.memory_space<vmem>>) attributes {dimension_semantics = [], scalar_prefetch = 0 : i64, scratch_operands = 0 : i64, tpu.core_type = #tpu.core_type<tc>} {
    %c0 = arith.constant 0 : index
    %c0_0 = arith.constant 0 : index
    %0 = vector.load %arg0[%c0, %c0_0] : memref<2x10xf32, #tpu.memory_space<vmem>>, vector<2x10xf32>
    %cst = arith.constant dense<0xFF800000> : vector<2xf32>
    %1 = vector.multi_reduction <maximumf>, %0, %cst [1] : vector<2x10xf32> to vector<2xf32>
    %2 = vector.shape_cast %1 : vector<2xf32> to vector<2x1xf32>
    %3 = vector.broadcast %2 : vector<2x1xf32> to vector<2x10xf32>
    %4 = arith.subf %0, %3 : vector<2x10xf32>
    %5 = math.exp %4 : vector<2x10xf32>
    %cst_1 = arith.constant dense<0.000000e+00> : vector<2xf32>
    %6 = vector.multi_reduction <add>, %5, %cst_1 [1] : vector<2x10xf32> to vector<2xf32>
    %7 = vector.shape_cast %6 : vector<2xf32> to vector<2x1xf32>
    %8 = math.log %7 : vector<2x1xf32>
    %9 = vector.broadcast %8 : vector<2x1xf32> to vector<2x10xf32>
    %10 = arith.subf %4, %9 : vector<2x10xf32>
    %c0_2 = arith.constant 0 : index
    %c0_3 = arith.constant 0 : index
    %11 = vector.load %arg1[%c0_2, %c0_3] : memref<2x10xf32, #tpu.memory_space<vmem>>, vector<2x10xf32>
    tpu.vector_store %arg1[%c0_2, %c0_3], %10 {strides = array<i32>} : memref<2x10xf32, #tpu.memory_space<vmem>>, vector<2x10xf32>,
    return
  }
}

</mosaic_0001>

<bundles_post_ra>
// kernel: neg.2
= control target key start
LH: loop header
LB: loop body
LE: loop exit
PB: predicated region body
PF: predicated region fallthrough
CT: control target
= control target key end

     0   :  { %s72_s0 = inlined_call_operand.vmem [shape: f32[2,16,16], index: 0, kind: input, shape index: {}]   ;;  %s73_s1 = inlined_call_operand.vmem [shape: f32[2,16,16], index: 1, kind: output, shape index: {}]  }
   0x1   :  { %v2_v0 = vld [vmem:[%s72_s0] sm:$0xff]  ;;  %v32_v1 = vld [vmem:[%s72_s0 + $0x10] sm:$0xff]  ;;  %v34_v2 = vld [vmem:[%s72_s0 + $0x8] sm:$0xff] }
   0x2   :  { %v5_v3 = vxor.u32 2147483648, %v2_v0  ;;  %v12_v4 = vxor.u32 2147483648, %v32_v1  ;;  %v20_v5 = vxor.u32 2147483648, %v34_v2  ;;  %v36_v6 = vld [vmem:[%s72_s0 + $0x18] sm:$0xff] }
   0x3   :  { %v28_v7 = vxor.u32 2147483648, %v36_v6 }
   0x4   :  { %7 = vst [vmem:[%s73_s1] sm:$0xff] %v5_v3  ;;  %33 = vst [vmem:[%s73_s1 + $0x10] sm:$0xff] %v12_v4 }
   0x5   :  { %35 = vst [vmem:[%s73_s1 + $0x8] sm:$0xff] %v20_v5  ;;  %37 = vst [vmem:[%s73_s1 + $0x18] sm:$0xff] %v28_v7 }

// kernel: dgcnn_forward.9
= control target key start
LH: loop header
LB: loop body
LE: loop exit
PB: predicated region body
PF: predicated region fallthrough
CT: control target
= control target key end

     0   :  { %s574_s12 = smov 0   ;;  %s576_s13 = smov 0   ;;  %s619_s0 = inlined_call_operand.vmem [shape: f32[2,16,3], index: 0, kind: input, shape index: {}, may-alias: {0,1}]   ;;  %s620_s1 = inlined_call_operand.vmem [shape: f32[2,16,3], index: 1, kind: input, shape index: {}, may-alias: {0,1}]   ;;  %s621_s2 = inlined_call_operand.vmem [shape: f32[2,1,16], index: 2, kind: input, shape index: {}]   ;;  %s622_s3 = inlined_call_operand.vmem [shape: f32[2,16,16], index: 3, kind: output, shape index: {}]  }
   0x1   :  { %s578_s14 = smov 0  }
   0x2 LB: > { %s25_s15 = sadd.s32 1, %s548_s13  ;;  %p472_p0 = scmp.ge.s32.totalorder %s552_s14, 1  ;;  %s552_s14 = sphi %s578_s14, %s13_s14   ;;  %s548_s13 = sphi %s576_s13, %s624_s13   ;;  %s544_s12 = sphi %s574_s12, %s623_s12  }
   0x3   : > { %p27_p1 = scmp.ge.s32.totalorder %s25_s15, 2  ;;  %p176_p2 = scmp.lt.s32.totalorder %s552_s14, 3 }
   0x5   : > { %s626_s15 = smov (%p27_p1, %s25_s15), 0  ;;  %p177_p3 = pnand %p472_p0, %p176_p2 }
   0x6   : > { %p217_p4 = scmp.lt.s32.totalorder (!%p177_p3), %s544_s12, 1  ;;  %vm250_vm0 = vcmask (!%p177_p3), 23552   ;;  %vm357_vm2 = vcmask (!%p177_p3), 130048  }
   0x7   : > { %180 = sbr.rel (%p177_p3) target bundleno = 246 (0xf6), region = 32  ;;  %vm501_vm1 = vmpackc.low (!%p177_p3), %vm250_vm0, %vm250_vm0 }
   0xe   : > { %s628_s12 = smov (!%p217_p4, %s544_s12), 1 }
   0xf   : > { %s486_s16 = sshll.u32 %s628_s12, 4  ;;  %s233_s25 = scalar_lea.vmem %s621_s2, %s628_s12 }
  0x10   : > { %s230_s19 = scalar_lea.vmem %s620_s1, %s486_s16  ;;  %s224_s22 = scalar_lea.vmem %s619_s0, %s486_s16  ;;  %v483_v11 = vld [vmem:[%s233_s25] ss:$0 sm:$0xff] }
  0x11   : > { %v246_v0 = vld [vmem:[%s230_s19] sm:$0xff]  ;;  %v247_v1 = vld [vmem:[%s230_s19 + $0x8] sm:$0xff]  ;;  %s242_s28 = scalar_lea.vmem %s622_s3, %s486_s16 }
  0x12   : > { %v500_v2 = vpack.c.bf16 %v247_v1, %v246_v0  ;;  %v244_v3 = vld [vmem:[%s224_s22] sm:$0xff]  ;;  %v245_v4 = vld [vmem:[%s224_s22 + $0x8] sm:$0xff] }
  0x13   : > { %v248_v5 = vmul.f32 %v244_v3, %v244_v3  ;;  %497 = vmatprep.mubr.msk.f32.mxu0 %vm250_vm0, %v244_v3  ;;  %v249_v6 = vmul.f32 %v245_v4, %v245_v4 }
  0x14   : > { %502 = vmatprep.subr.msk.bf16.mxu0 %vm501_vm1, %v500_v2 }
  0x15   : > { %505 = vmatpush3.bf16.xpose.msk.msra.mxu0 %vm501_vm1, %v500_v2  ;;  %v251_v7 = vsel %vm250_vm0, %v248_v5, 0.0  ;;  %v254_v8 = vsel %vm250_vm0, %v249_v6, 0.0 }
  0x16   : > { %252 = vadd.xlane.f32.xlu0 %v251_v7 }
  0x1a   : > { %255 = vadd.xlane.f32.xlu0 %v254_v8 }
  0x1c   : > { %498 = vmatmul.mubr.msk.f32.vlgmr.msra.gmra.mrb[0].mxu0 %vm250_vm0, %v245_v4 }
  0xa3   : > { %v253_v9 = vpop.xlane.xlu0 %252 }
  0xa4   : > { %v351_v16 = vadd.f32 %v483_v11, %v253_v9 }
  0xa7   : > { %v256_v10 = vpop.xlane.xlu0 %255 }
  0xa8   : > { %v352_v12 = vadd.f32 %v483_v11, %v256_v10 }
  0xef   : > { %v499_v13 = vpop.f32.mrb[0].mxu0 }
  0xf0   : > { %v354_v14 = vmul.f32 2.0, %v499_v13  ;;  %v335_v15 = vpop.f32.mrb[1].mxu0 }
  0xf1   : > { %v353_v17 = vmul.f32 2.0, %v335_v15 }
  0xf2   : > { %v356_v18 = vsub.f32 %v352_v12, %v354_v14 }
  0xf3   : > { %v355_v19 = vsub.f32 %v351_v16, %v353_v17 }
  0xf4   : > { %359 = vst.msk [vmem:[%s242_s28 + $0x8] sm:$0xff] %vm357_vm2, %v356_v18 }
  0xf5   : > { %358 = vst.msk [vmem:[%s242_s28] sm:$0xff] %vm357_vm2, %v355_v19 }
  0xf6 PF: > { %s13_s14 = sadd.s32 1, %s552_s14   ;;  %s623_s12 = smov %s548_s13 }
  0xf7   : > { %p10_p5 = scmp.ge.s32.totalorder %s13_s14, 4   ;;  %s624_s13 = smov %s626_s15 }
  0xf9   :  { %12 = sbr.rel (!%p10_p5) target bundleno = 2 (0x2), region = 68 }

// kernel: dgcnn_forward.11
= control target key start
LH: loop header
LB: loop body
LE: loop exit
PB: predicated region body
PF: predicated region fallthrough
CT: control target
= control target key end

     0   :  { %s574_s12 = smov 0   ;;  %s576_s13 = smov 0   ;;  %s619_s0 = inlined_call_operand.vmem [shape: f32[2,16,64], index: 0, kind: input, shape index: {}, may-alias: {0,1}]   ;;  %s620_s1 = inlined_call_operand.vmem [shape: f32[2,16,64], index: 1, kind: input, shape index: {}, may-alias: {0,1}]   ;;  %s621_s2 = inlined_call_operand.vmem [shape: f32[2,1,16], index: 2, kind: input, shape index: {}]   ;;  %s622_s3 = inlined_call_operand.vmem [shape: f32[2,16,16], index: 3, kind: output, shape index: {}]  }
   0x1   :  { %s578_s14 = smov 0  }
   0x2 LB: > { %s25_s15 = sadd.s32 1, %s548_s13  ;;  %p472_p0 = scmp.ge.s32.totalorder %s552_s14, 1  ;;  %s552_s14 = sphi %s578_s14, %s13_s14   ;;  %s548_s13 = sphi %s576_s13, %s624_s13   ;;  %s544_s12 = sphi %s574_s12, %s623_s12  }
   0x3   : > { %p27_p1 = scmp.ge.s32.totalorder %s25_s15, 2  ;;  %p176_p2 = scmp.lt.s32.totalorder %s552_s14, 3 }
   0x5   : > { %s626_s15 = smov (%p27_p1, %s25_s15), 0  ;;  %p177_p3 = pnand %p472_p0, %p176_p2 }
   0x6   : > { %p217_p4 = scmp.lt.s32.totalorder (!%p177_p3), %s544_s12, 1  ;;  %vm250_vm0 = vcmask (!%p177_p3), 523264   ;;  %vm357_vm2 = vcmask (!%p177_p3), 130048  }
   0x7   : > { %180 = sbr.rel (%p177_p3) target bundleno = 246 (0xf6), region = 32  ;;  %vm501_vm1 = vmpackc.low (!%p177_p3), %vm250_vm0, %vm250_vm0 }
   0xe   : > { %s628_s12 = smov (!%p217_p4, %s544_s12), 1 }
   0xf   : > { %s486_s16 = sshll.u32 %s628_s12, 4  ;;  %s233_s25 = scalar_lea.vmem %s621_s2, %s628_s12 }
  0x10   : > { %s230_s19 = scalar_lea.vmem %s620_s1, %s486_s16  ;;  %s224_s22 = scalar_lea.vmem %s619_s0, %s486_s16  ;;  %v483_v11 = vld [vmem:[%s233_s25] ss:$0 sm:$0xff] }
  0x11   : > { %v246_v0 = vld [vmem:[%s230_s19] sm:$0xff]  ;;  %v247_v1 = vld [vmem:[%s230_s19 + $0x8] sm:$0xff]  ;;  %s242_s28 = scalar_lea.vmem %s622_s3, %s486_s16 }
  0x12   : > { %v500_v2 = vpack.c.bf16 %v247_v1, %v246_v0  ;;  %v244_v3 = vld [vmem:[%s224_s22] sm:$0xff]  ;;  %v245_v4 = vld [vmem:[%s224_s22 + $0x8] sm:$0xff] }
  0x13   : > { %v248_v5 = vmul.f32 %v244_v3, %v244_v3  ;;  %497 = vmatprep.mubr.msk.f32.mxu0 %vm250_vm0, %v244_v3  ;;  %v249_v6 = vmul.f32 %v245_v4, %v245_v4 }
  0x14   : > { %502 = vmatprep.subr.msk.bf16.mxu0 %vm501_vm1, %v500_v2 }
  0x15   : > { %505 = vmatpush3.bf16.xpose.msk.msra.mxu0 %vm501_vm1, %v500_v2  ;;  %v251_v7 = vsel %vm250_vm0, %v248_v5, 0.0  ;;  %v254_v8 = vsel %vm250_vm0, %v249_v6, 0.0 }
  0x16   : > { %252 = vadd.xlane.f32.xlu0 %v251_v7 }
  0x1a   : > { %255 = vadd.xlane.f32.xlu0 %v254_v8 }
  0x1c   : > { %498 = vmatmul.mubr.msk.f32.vlgmr.msra.gmra.mrb[0].mxu0 %vm250_vm0, %v245_v4 }
  0xa3   : > { %v253_v9 = vpop.xlane.xlu0 %252 }
  0xa4   : > { %v351_v16 = vadd.f32 %v483_v11, %v253_v9 }
  0xa7   : > { %v256_v10 = vpop.xlane.xlu0 %255 }
  0xa8   : > { %v352_v12 = vadd.f32 %v483_v11, %v256_v10 }
  0xef   : > { %v499_v13 = vpop.f32.mrb[0].mxu0 }
  0xf0   : > { %v354_v14 = vmul.f32 2.0, %v499_v13  ;;  %v335_v15 = vpop.f32.mrb[1].mxu0 }
  0xf1   : > { %v353_v17 = vmul.f32 2.0, %v335_v15 }
  0xf2   : > { %v356_v18 = vsub.f32 %v352_v12, %v354_v14 }
  0xf3   : > { %v355_v19 = vsub.f32 %v351_v16, %v353_v17 }
  0xf4   : > { %359 = vst.msk [vmem:[%s242_s28 + $0x8] sm:$0xff] %vm357_vm2, %v356_v18 }
  0xf5   : > { %358 = vst.msk [vmem:[%s242_s28] sm:$0xff] %vm357_vm2, %v355_v19 }
  0xf6 PF: > { %s13_s14 = sadd.s32 1, %s552_s14   ;;  %s623_s12 = smov %s548_s13 }
  0xf7   : > { %p10_p5 = scmp.ge.s32.totalorder %s13_s14, 4   ;;  %s624_s13 = smov %s626_s15 }
  0xf9   :  { %12 = sbr.rel (!%p10_p5) target bundleno = 2 (0x2), region = 68 }

// kernel: dgcnn_forward.10
= control target key start
LH: loop header
LB: loop body
LE: loop exit
PB: predicated region body
PF: predicated region fallthrough
CT: control target
= control target key end

     0   :  { %vm78_vm0 = vcmask 1042432   ;;  %vm71_vm1 = vcmask 48128   ;;  %vm161_vm2 = vcmask 523264   ;;  %s1457_s1 = inlined_call_operand.vmem [shape: bf16[6,64], index: 1, kind: input, shape index: {}]   ;;  %s1458_s0 = inlined_call_operand.vmem [shape: f32[4,32,6], index: 0, kind: input, shape index: {}]   ;;  %s1459_s3 = inlined_call_operand.vmem [shape: bf16[64,64], index: 3, kind: input, shape index: {}]   ;;  %s1460_s5 = inlined_call_operand.vmem [shape: bf16[64,64], index: 5, kind: input, shape index: {}]   ;;  %s1461_s2 = inlined_call_operand.vmem [shape: f32[1,64], index: 2, kind: input, shape index: {}]   ;;  %s1462_s4 = inlined_call_operand.vmem [shape: f32[1,64], index: 4, kind: input, shape index: {}]   ;;  %s1463_s6 = inlined_call_operand.vmem [shape: f32[1,64], index: 6, kind: input, shape index: {}]   ;;  %s1464_s7 = inlined_call_operand.vmem [shape: f32[32,64], index: 7, kind: output, shape index: {}]  }
   0x1   :  { %v1172_v0 = vld [vmem:[%s1457_s1] sm:$0x7]  ;;  %v66_v2 = vld [vmem:[%s1458_s0 + $0x8] sm:$0xff]  ;;  %v67_v5 = vld [vmem:[%s1458_s0 + $0x10] sm:$0xff] }
   0x2   :  { %v65_v1 = vld [vmem:[%s1458_s0] sm:$0xff]  ;;  %1117 = vmatprep.subr.msk.bf16.mxu0 %vm78_vm0, %v1172_v0  ;;  %v1184_v3 = vsel %vm78_vm0, %v1172_v0, 0  ;;  %v68_v6 = vld [vmem:[%s1458_s0 + $0x18] sm:$0xff]  ;;  %v1202_v9 = vld [vmem:[%s1459_s3 + $0x8] sm:$0xff]  }
   0x3   :  { %v69_v4 = vpack.c.bf16 %v66_v2, %v65_v1  ;;  %998 = vmatpush3.bf16.msra.mxu0 %v1184_v3  ;;  %v70_v7 = vpack.c.bf16 %v68_v6, %v67_v5  ;;  %v1196_v8 = vld [vmem:[%s1459_s3] sm:$0xff]   ;;  %v1212_v10 = vld [vmem:[%s1459_s3 + $0x10] sm:$0xff]   ;;  %v1219_v11 = vld [vmem:[%s1459_s3 + $0x18] sm:$0xff]  }
   0x4   :  { %1003 = vmatprep.subr.bf16.mxu1 %v1196_v8  ;;  %v1228_v12 = vld [vmem:[%s1460_s5] sm:$0xff]   ;;  %v1233_v13 = vld [vmem:[%s1460_s5 + $0x8] sm:$0xff]   ;;  %v909_v32 = vld [vmem:[%s1458_s0 + $0x30] sm:$0xff] }
   0x5   :  { %999 = vmatprep.mubr.msk.bf16.mxu0 %vm71_vm1, %v69_v4  ;;  %1004 = vmatpush3.bf16.msra.mxu1 %v1196_v8  ;;  %v1242_v14 = vld [vmem:[%s1461_s2] ss:$0 sm:$0xff]  ;;  %v908_v26 = vld [vmem:[%s1458_s0 + $0x28] sm:$0xff]  ;;  %v910_v33 = vld [vmem:[%s1458_s0 + $0x38] sm:$0xff] }
   0x6   :  { %1000 = vmatmul.mubr.msk.bf16.vlgmr.msra.gmra.mrb[0].mxu0 %vm71_vm1, %v70_v7  ;;  %1005 = vmatprep.subr.bf16.mxu1 %v1202_v9  ;;  %v907_v25 = vld [vmem:[%s1458_s0 + $0x20] sm:$0xff]  ;;  %v312_v34 = vpack.c.bf16 %v910_v33, %v909_v32  ;;  %v1272_v35 = vld [vmem:[%s1460_s5 + $0x10] sm:$0xff]   ;;  %v1281_v36 = vld [vmem:[%s1460_s5 + $0x18] sm:$0xff]  }
   0x7   :  { %1015 = vmatprep.subr.bf16.mxu0 %v1228_v12  ;;  %v311_v31 = vpack.c.bf16 %v908_v26, %v907_v25  ;;  %v1292_v37 = vld [vmem:[%s1462_s4] ss:$0 sm:$0xff]  ;;  %v918_v5 = vld [vmem:[%s1458_s0 + $0x48] sm:$0xff]  ;;  %v919_v7 = vld [vmem:[%s1458_s0 + $0x50] sm:$0xff] }
   0x8   :  { %1016 = vmatpush3.bf16.msra.mxu0 %v1228_v12  ;;  %v917_v4 = vld [vmem:[%s1458_s0 + $0x40] sm:$0xff] }
   0x9   :  { %1006 = vmatpush3.bf16.msra.mxu1 %v1202_v9  ;;  %1017 = vmatprep.subr.bf16.mxu0 %v1233_v13  ;;  %v503_v6 = vpack.c.bf16 %v918_v5, %v917_v4 }
   0xa   :  { %1007 = vmatprep.subr.bf16.mxu1 %v1212_v10 }
   0xc   :  { %1018 = vmatpush3.bf16.msra.mxu0 %v1233_v13 }
   0xd   :  { %1008 = vmatpush3.bf16.msra.mxu1 %v1212_v10  ;;  %1019 = vmatprep.subr.bf16.mxu0 %v1272_v35 }
   0xe   :  { %1009 = vmatprep.subr.bf16.mxu1 %v1219_v11 }
  0x10   :  { %1020 = vmatpush3.bf16.msra.mxu0 %v1272_v35 }
  0x11   :  { %1010 = vmatpush3.bf16.msra.mxu1 %v1219_v11  ;;  %1021 = vmatprep.subr.bf16.mxu0 %v1281_v36 }
  0x12   :  { %1118 = vmatprep.subr.msk.bf16.mxu1 %vm78_vm0, %v1172_v0 }
  0x14   :  { %1022 = vmatpush3.bf16.msra.mxu0 %v1281_v36 }
  0x15   :  { %1033 = vmatprep.subr.bf16.mxu0 %v1196_v8 }
  0xd9   :  { %v1001_v15 = vpop.f32.mrb[0].mxu0 }
  0xda   :  { %v125_v16 = vadd.f32 %v1001_v15, %v1242_v14  ;;  %v116_v17 = vpop.f32.mrb[1].mxu0  ;;  %v920_v15 = vld [vmem:[%s1458_s0 + $0x58] sm:$0xff] }
  0xdb   :  { %v117_v18 = vadd.f32 %v1242_v14, %v116_v17  ;;  %v1002_v19 = vpop.f32.mrb[2].mxu0 }
  0xdc   :  { %v128_v20 = vadd.f32 %v1002_v19, %v1242_v14  ;;  %v119_v21 = vpop.f32.mrb[3].mxu0  ;;  %v133_v23 = vmax.f32 %v125_v16, 0.0  ;;  %v504_v16 = vpack.c.bf16 %v920_v15, %v919_v7 }
  0xdd   :  { %v120_v22 = vadd.f32 %v1242_v14, %v119_v21  ;;  %v131_v27 = vmax.f32 %v117_v18, 0.0 }
  0xde   :  { %v134_v24 = vmax.f32 %v128_v20, 0.0 }
  0xdf   :  { %v132_v28 = vmax.f32 %v120_v22, 0.0 }
  0xe0   :  { %v136_v29 = vpack.c.bf16 %v134_v24, %v133_v23 }
  0xe1   :  { %v135_v30 = vpack.c.bf16 %v132_v28, %v131_v27 }
  0xe3   :  { %1011 = vmatprep.mubr.msk.bf16.mxu1 %vm161_vm2, %v135_v30 }
  0xe4   :  { %1012 = vmatmul.mubr.msk.bf16.vlgmr.msra.gmra.mrb[0].mxu1 %vm161_vm2, %v136_v29 }
  0xe5   :  { %1028 = vmatpush3.bf16.msra.mxu1 %v1184_v3  ;;  %1029 = vmatprep.mubr.msk.bf16.mxu1 %vm71_vm1, %v311_v31 }
  0xe6   :  { %1045 = vmatprep.subr.bf16.mxu1 %v1228_v12 }
  0xec   :  { %1030 = vmatmul.mubr.msk.bf16.vlgmr.msra.gmra.mrb[4].mxu1 %vm71_vm1, %v312_v34 }
  0xed   :  { %1046 = vmatpush3.bf16.msra.mxu1 %v1228_v12 }
  0xee   :  { %1047 = vmatprep.subr.bf16.mxu1 %v1233_v13 }
  0xf1   :  { %1048 = vmatpush3.bf16.msra.mxu1 %v1233_v13 }
  0xf2   :  { %1049 = vmatprep.subr.bf16.mxu1 %v1272_v35 }
  0xf5   :  { %1050 = vmatpush3.bf16.msra.mxu1 %v1272_v35 }
  0xf6   :  { %1051 = vmatprep.subr.bf16.mxu1 %v1281_v36 }
  0xf9   :  { %1052 = vmatpush3.bf16.msra.mxu1 %v1281_v36 }
  0xfa   :  { %1063 = vmatprep.subr.bf16.mxu1 %v1196_v8 }
 0x1b7   :  { %v1013_v38 = vpop.f32.mrb[0].mxu1 }
 0x1b8   :  { %v211_v39 = vadd.f32 %v1013_v38, %v1292_v37  ;;  %v202_v40 = vpop.f32.mrb[1].mxu1 }
 0x1b9   :  { %v203_v41 = vadd.f32 %v1292_v37, %v202_v40  ;;  %v1014_v42 = vpop.f32.mrb[2].mxu1 }
 0x1ba   :  { %v214_v43 = vadd.f32 %v1014_v42, %v1292_v37  ;;  %v205_v44 = vpop.f32.mrb[3].mxu1  ;;  %v219_v46 = vmax.f32 %v211_v39, 0.0 }
 0x1bb   :  { %v206_v45 = vadd.f32 %v1292_v37, %v205_v44  ;;  %v217_v48 = vmax.f32 %v203_v41, 0.0 }
 0x1bc   :  { %v220_v47 = vmax.f32 %v214_v43, 0.0 }
 0x1bd   :  { %v218_v49 = vmax.f32 %v206_v45, 0.0 }
 0x1be   :  { %v222_v50 = vpack.c.bf16 %v220_v47, %v219_v46 }
 0x1bf   :  { %v221_v51 = vpack.c.bf16 %v218_v49, %v217_v48  ;;  %v1031_v52 = vpop.f32.mrb[4].mxu1 }
 0x1c0   :  { %v362_v53 = vadd.f32 %v1031_v52, %v1242_v14  ;;  %v353_v54 = vpop.f32.mrb[5].mxu1  ;;  %v927_v52 = vld [vmem:[%s1458_s0 + $0x60] sm:$0xff] }
 0x1c1   :  { %1023 = vmatprep.mubr.msk.bf16.mxu0 %vm161_vm2, %v221_v51  ;;  %v354_v55 = vadd.f32 %v1242_v14, %v353_v54  ;;  %v1032_v56 = vpop.f32.mrb[6].mxu1 }
 0x1c2   :  { %1024 = vmatmul.mubr.msk.bf16.vlgmr.msra.gmra.mrb[4].mxu0 %vm161_vm2, %v222_v50  ;;  %v370_v57 = vmax.f32 %v362_v53, 0.0  ;;  %v365_v58 = vadd.f32 %v1032_v56, %v1242_v14  ;;  %v356_v59 = vpop.f32.mrb[7].mxu1  ;;  %v928_v53 = vld [vmem:[%s1458_s0 + $0x68] sm:$0xff]  ;;  %v930_v56 = vld [vmem:[%s1458_s0 + $0x78] sm:$0xff] }
 0x1c3   :  { %1034 = vmatpush3.bf16.msra.mxu0 %v1196_v8  ;;  %v368_v60 = vmax.f32 %v354_v55, 0.0  ;;  %v357_v61 = vadd.f32 %v1242_v14, %v356_v59  ;;  %v695_v54 = vpack.c.bf16 %v928_v53, %v927_v52  ;;  %v929_v55 = vld [vmem:[%s1458_s0 + $0x70] sm:$0xff] }
 0x1c4   :  { %v371_v62 = vmax.f32 %v365_v58, 0.0  ;;  %1035 = vmatprep.subr.bf16.mxu0 %v1202_v9 }
 0x1c5   :  { %v369_v63 = vmax.f32 %v357_v61, 0.0 }
 0x1c6   :  { %v373_v1 = vpack.c.bf16 %v371_v62, %v370_v57  ;;  %v696_v57 = vpack.c.bf16 %v930_v56, %v929_v55 }
 0x1c7   :  { %v372_v2 = vpack.c.bf16 %v369_v63, %v368_v60  ;;  %1036 = vmatpush3.bf16.msra.mxu0 %v1202_v9 }
 0x1c8   :  { %1037 = vmatprep.subr.bf16.mxu0 %v1212_v10 }
 0x1c9   :  { %1041 = vmatprep.mubr.msk.bf16.mxu0 %vm161_vm2, %v372_v2 }
 0x1cb   :  { %1038 = vmatpush3.bf16.msra.mxu0 %v1212_v10 }
 0x1cc   :  { %1039 = vmatprep.subr.bf16.mxu0 %v1219_v11 }
 0x1cf   :  { %1040 = vmatpush3.bf16.msra.mxu0 %v1219_v11 }
 0x1d0   :  { %1119 = vmatprep.subr.msk.bf16.mxu0 %vm78_vm0, %v1172_v0 }
 0x1d2   :  { %1042 = vmatmul.mubr.msk.bf16.vlgmr.msra.gmra.mrb[8].mxu0 %vm161_vm2, %v373_v1 }
 0x1d3   :  { %1058 = vmatpush3.bf16.msra.mxu0 %v1184_v3  ;;  %1059 = vmatprep.mubr.msk.bf16.mxu0 %vm71_vm1, %v503_v6 }
 0x1d4   :  { %1075 = vmatprep.subr.bf16.mxu0 %v1228_v12 }
 0x1da   :  { %1060 = vmatmul.mubr.msk.bf16.vlgmr.msra.gmra.mrb[12].mxu0 %vm71_vm1, %v504_v16 }
 0x1db   :  { %1076 = vmatpush3.bf16.msra.mxu0 %v1228_v12 }
 0x1dc   :  { %1077 = vmatprep.subr.bf16.mxu0 %v1233_v13 }
 0x1df   :  { %1078 = vmatpush3.bf16.msra.mxu0 %v1233_v13 }
 0x1e0   :  { %1079 = vmatprep.subr.bf16.mxu0 %v1272_v35 }
 0x1e3   :  { %1080 = vmatpush3.bf16.msra.mxu0 %v1272_v35 }
 0x1e4   :  { %1081 = vmatprep.subr.bf16.mxu0 %v1281_v36 }
 0x1e7   :  { %1082 = vmatpush3.bf16.msra.mxu0 %v1281_v36 }
 0x1e8   :  { %1093 = vmatprep.subr.bf16.mxu0 %v1196_v8 }
 0x295   :  { %v1339_v17 = vpop.f32.mrb[4].mxu0 }
 0x296   :  { %v1341_v18 = vpop.f32.mrb[5].mxu0 }
 0x297   :  { %v1343_v19 = vpop.f32.mrb[6].mxu0 }
 0x298   :  { %v1345_v20 = vpop.f32.mrb[7].mxu0 }
 0x2a5   :  { %v1043_v21 = vpop.f32.mrb[8].mxu0 }
 0x2a6   :  { %v423_v22 = vadd.f32 %v1043_v21, %v1292_v37  ;;  %v414_v23 = vpop.f32.mrb[9].mxu0 }
 0x2a7   :  { %v415_v24 = vadd.f32 %v1292_v37, %v414_v23  ;;  %v1044_v25 = vpop.f32.mrb[10].mxu0 }
 0x2a8   :  { %v426_v26 = vadd.f32 %v1044_v25, %v1292_v37  ;;  %v417_v27 = vpop.f32.mrb[11].mxu0  ;;  %v431_v29 = vmax.f32 %v423_v22, 0.0 }
 0x2a9   :  { %v418_v28 = vadd.f32 %v1292_v37, %v417_v27  ;;  %v429_v31 = vmax.f32 %v415_v24, 0.0 }
 0x2aa   :  { %v432_v30 = vmax.f32 %v426_v26, 0.0 }
 0x2ab   :  { %v430_v32 = vmax.f32 %v418_v28, 0.0 }
 0x2ac   :  { %v434_v33 = vpack.c.bf16 %v432_v30, %v431_v29 }
 0x2ad   :  { %v433_v34 = vpack.c.bf16 %v430_v32, %v429_v31  ;;  %v1061_v38 = vpop.f32.mrb[12].mxu0 }
 0x2ae   :  { %v554_v39 = vadd.f32 %v1061_v38, %v1242_v14  ;;  %v545_v40 = vpop.f32.mrb[13].mxu0 }
 0x2af   :  { %1053 = vmatprep.mubr.msk.bf16.mxu1 %vm161_vm2, %v433_v34  ;;  %v546_v41 = vadd.f32 %v1242_v14, %v545_v40  ;;  %v1062_v42 = vpop.f32.mrb[14].mxu0 }
 0x2b0   :  { %1054 = vmatmul.mubr.msk.bf16.vlgmr.msra.gmra.mrb[8].mxu1 %vm161_vm2, %v434_v33  ;;  %v562_v43 = vmax.f32 %v554_v39, 0.0  ;;  %v557_v44 = vadd.f32 %v1062_v42, %v1242_v14  ;;  %v548_v45 = vpop.f32.mrb[15].mxu0 }
 0x2b1   :  { %1064 = vmatpush3.bf16.msra.mxu1 %v1196_v8  ;;  %v560_v46 = vmax.f32 %v546_v41, 0.0  ;;  %v549_v47 = vadd.f32 %v1242_v14, %v548_v45 }
 0x2b2   :  { %v563_v48 = vmax.f32 %v557_v44, 0.0  ;;  %1065 = vmatprep.subr.bf16.mxu1 %v1202_v9 }
 0x2b3   :  { %v561_v49 = vmax.f32 %v549_v47, 0.0 }
 0x2b4   :  { %v565_v50 = vpack.c.bf16 %v563_v48, %v562_v43 }
 0x2b5   :  { %v564_v51 = vpack.c.bf16 %v561_v49, %v560_v46  ;;  %1066 = vmatpush3.bf16.msra.mxu1 %v1202_v9 }
 0x2b6   :  { %1067 = vmatprep.subr.bf16.mxu1 %v1212_v10 }
 0x2b7   :  { %1071 = vmatprep.mubr.msk.bf16.mxu1 %vm161_vm2, %v564_v51 }
 0x2b9   :  { %1068 = vmatpush3.bf16.msra.mxu1 %v1212_v10 }
 0x2ba   :  { %1069 = vmatprep.subr.bf16.mxu1 %v1219_v11 }
 0x2bd   :  { %1070 = vmatpush3.bf16.msra.mxu1 %v1219_v11 }
 0x2be   :  { %1120 = vmatprep.subr.msk.bf16.mxu1 %vm78_vm0, %v1172_v0  ;;  %v1394_v0 = vld [vmem:[%s1463_s6] ss:$0 sm:$0xff] }
 0x2bf   :  { %v299_v58 = vadd.f32 %v1343_v19, %v1394_v0 }
 0x2c0   :  { %1072 = vmatmul.mubr.msk.bf16.vlgmr.msra.gmra.mrb[12].mxu1 %vm161_vm2, %v565_v50 }
 0x2c1   :  { %1088 = vmatpush3.bf16.msra.mxu1 %v1184_v3  ;;  %1089 = vmatprep.mubr.msk.bf16.mxu1 %vm71_vm1, %v695_v54  ;;  %v296_v3 = vadd.f32 %v1339_v17, %v1394_v0  ;;  %v305_v7 = vmax.f32 %v299_v58, 0.0 }
 0x2c2   :  { %1105 = vmatprep.subr.bf16.mxu1 %v1228_v12 }
 0x2c3   :  { %v304_v62 = vmax.f32 %v296_v3, 0.0 }
 0x2c8   :  { %1090 = vmatmul.mubr.msk.bf16.vlgmr.msra.gmra.mrb[16].mxu1 %vm71_vm1, %v696_v57 }
 0x2c9   :  { %1106 = vmatpush3.bf16.msra.mxu1 %v1228_v12  ;;  %v288_v12 = vadd.f32 %v1394_v0, %v1341_v18 }
 0x2ca   :  { %1107 = vmatprep.subr.bf16.mxu1 %v1233_v13 }
 0x2cb   :  { %v302_v4 = vmax.f32 %v288_v12, 0.0 }
 0x2cd   :  { %1108 = vmatpush3.bf16.msra.mxu1 %v1233_v13 }
 0x2ce   :  { %1109 = vmatprep.subr.bf16.mxu1 %v1272_v35 }
 0x2d1   :  { %1110 = vmatpush3.bf16.msra.mxu1 %v1272_v35 }
 0x2d2   :  { %1111 = vmatprep.subr.bf16.mxu1 %v1281_v36 }
 0x2d5   :  { %1112 = vmatpush3.bf16.msra.mxu1 %v1281_v36  ;;  %v291_v36 = vadd.f32 %v1394_v0, %v1345_v20 }
 0x2d7   :  { %v303_v17 = vmax.f32 %v291_v36, 0.0 }
 0x383   :  { %v1055_v13 = vpop.f32.mrb[8].mxu1 }
 0x384   :  { %v484_v35 = vadd.f32 %v1055_v13, %v1394_v0  ;;  %v475_v59 = vpop.f32.mrb[9].mxu1 }
 0x385   :  { %v476_v60 = vadd.f32 %v1394_v0, %v475_v59  ;;  %v1056_v61 = vpop.f32.mrb[10].mxu1 }
 0x386   :  { %v492_v63 = vmax.f32 %v484_v35, 0.0  ;;  %v487_v1 = vadd.f32 %v1056_v61, %v1394_v0  ;;  %v478_v2 = vpop.f32.mrb[11].mxu1 }
 0x387   :  { %v490_v5 = vmax.f32 %v476_v60, 0.0  ;;  %v479_v6 = vadd.f32 %v1394_v0, %v478_v2 }
 0x388   :  { %v496_v15 = vmax.f32 %v304_v62, %v492_v63  ;;  %v493_v16 = vmax.f32 %v487_v1, 0.0 }
 0x389   :  { %v494_v18 = vmax.f32 %v302_v4, %v490_v5  ;;  %v491_v19 = vmax.f32 %v479_v6, 0.0 }
 0x38a   :  { %v497_v21 = vmax.f32 %v305_v7, %v493_v16 }
 0x38b   :  { %v495_v20 = vmax.f32 %v303_v17, %v491_v19 }
 0x393   :  { %v1073_v22 = vpop.f32.mrb[12].mxu1 }
 0x394   :  { %v615_v23 = vadd.f32 %v1073_v22, %v1292_v37  ;;  %v606_v24 = vpop.f32.mrb[13].mxu1 }
 0x395   :  { %v607_v25 = vadd.f32 %v1292_v37, %v606_v24  ;;  %v1074_v26 = vpop.f32.mrb[14].mxu1 }
 0x396   :  { %v618_v27 = vadd.f32 %v1074_v26, %v1292_v37  ;;  %v609_v28 = vpop.f32.mrb[15].mxu1  ;;  %v623_v30 = vmax.f32 %v615_v23, 0.0 }
 0x397   :  { %v610_v29 = vadd.f32 %v1292_v37, %v609_v28  ;;  %v621_v32 = vmax.f32 %v607_v25, 0.0 }
 0x398   :  { %v624_v31 = vmax.f32 %v618_v27, 0.0 }
 0x399   :  { %v622_v33 = vmax.f32 %v610_v29, 0.0 }
 0x39a   :  { %v626_v34 = vpack.c.bf16 %v624_v31, %v623_v30 }
 0x39b   :  { %v625_v38 = vpack.c.bf16 %v622_v33, %v621_v32  ;;  %v1091_v39 = vpop.f32.mrb[16].mxu1 }
 0x39c   :  { %v746_v40 = vadd.f32 %v1091_v39, %v1242_v14  ;;  %v737_v41 = vpop.f32.mrb[17].mxu1 }
 0x39d   :  { %1083 = vmatprep.mubr.msk.bf16.mxu0 %vm161_vm2, %v625_v38  ;;  %v738_v42 = vadd.f32 %v1242_v14, %v737_v41  ;;  %v1092_v43 = vpop.f32.mrb[18].mxu1 }
 0x39e   :  { %1084 = vmatmul.mubr.msk.bf16.vlgmr.msra.gmra.mrb[16].mxu0 %vm161_vm2, %v626_v34  ;;  %v754_v44 = vmax.f32 %v746_v40, 0.0  ;;  %v749_v45 = vadd.f32 %v1092_v43, %v1242_v14  ;;  %v740_v46 = vpop.f32.mrb[19].mxu1 }
 0x39f   :  { %1094 = vmatpush3.bf16.msra.mxu0 %v1196_v8  ;;  %v752_v47 = vmax.f32 %v738_v42, 0.0  ;;  %v741_v48 = vadd.f32 %v1242_v14, %v740_v46 }
 0x3a0   :  { %v755_v49 = vmax.f32 %v749_v45, 0.0  ;;  %1095 = vmatprep.subr.bf16.mxu0 %v1202_v9 }
 0x3a1   :  { %v753_v50 = vmax.f32 %v741_v48, 0.0 }
 0x3a2   :  { %v757_v51 = vpack.c.bf16 %v755_v49, %v754_v44 }
 0x3a3   :  { %v756_v52 = vpack.c.bf16 %v753_v50, %v752_v47  ;;  %1096 = vmatpush3.bf16.msra.mxu0 %v1202_v9 }
 0x3a4   :  { %1097 = vmatprep.subr.bf16.mxu0 %v1212_v10 }
 0x3a5   :  { %1101 = vmatprep.mubr.msk.bf16.mxu0 %vm161_vm2, %v756_v52 }
 0x3a7   :  { %1098 = vmatpush3.bf16.msra.mxu0 %v1212_v10 }
 0x3a8   :  { %1099 = vmatprep.subr.bf16.mxu0 %v1219_v11 }
 0x3ab   :  { %1100 = vmatpush3.bf16.msra.mxu0 %v1219_v11 }
 0x3ae   :  { %1102 = vmatmul.mubr.msk.bf16.vlgmr.msra.gmra.mrb[20].mxu0 %vm161_vm2, %v757_v51 }
 0x471   :  { %v1085_v8 = vpop.f32.mrb[16].mxu0 }
 0x472   :  { %v676_v14 = vadd.f32 %v1085_v8, %v1394_v0  ;;  %v667_v53 = vpop.f32.mrb[17].mxu0 }
 0x473   :  { %v668_v54 = vadd.f32 %v1394_v0, %v667_v53  ;;  %v1086_v55 = vpop.f32.mrb[18].mxu0 }
 0x474   :  { %v684_v9 = vmax.f32 %v676_v14, 0.0  ;;  %v679_v56 = vadd.f32 %v1086_v55, %v1394_v0  ;;  %v670_v57 = vpop.f32.mrb[19].mxu0 }
 0x475   :  { %v682_v3 = vmax.f32 %v668_v54, 0.0  ;;  %v671_v10 = vadd.f32 %v1394_v0, %v670_v57 }
 0x476   :  { %v688_v12 = vmax.f32 %v496_v15, %v684_v9  ;;  %v685_v13 = vmax.f32 %v679_v56, 0.0 }
 0x477   :  { %v686_v58 = vmax.f32 %v494_v18, %v682_v3  ;;  %v683_v11 = vmax.f32 %v671_v10, 0.0 }
 0x478   :  { %v689_v35 = vmax.f32 %v497_v21, %v685_v13 }
 0x479   :  { %v687_v59 = vmax.f32 %v495_v20, %v683_v11 }
 0x481   :  { %v1103_v36 = vpop.f32.mrb[20].mxu0 }
 0x482   :  { %v807_v60 = vadd.f32 %v1103_v36, %v1292_v37  ;;  %v798_v61 = vpop.f32.mrb[21].mxu0 }
 0x483   :  { %v799_v62 = vadd.f32 %v1292_v37, %v798_v61  ;;  %v1104_v63 = vpop.f32.mrb[22].mxu0 }
 0x484   :  { %v810_v1 = vadd.f32 %v1104_v63, %v1292_v37  ;;  %v801_v2 = vpop.f32.mrb[23].mxu0  ;;  %v815_v5 = vmax.f32 %v807_v60, 0.0 }
 0x485   :  { %v802_v4 = vadd.f32 %v1292_v37, %v801_v2  ;;  %v813_v7 = vmax.f32 %v799_v62, 0.0 }
 0x486   :  { %v816_v6 = vmax.f32 %v810_v1, 0.0 }
 0x487   :  { %v814_v15 = vmax.f32 %v802_v4, 0.0 }
 0x488   :  { %v818_v16 = vpack.c.bf16 %v816_v6, %v815_v5 }
 0x489   :  { %v817_v17 = vpack.c.bf16 %v814_v15, %v813_v7 }
 0x48b   :  { %1113 = vmatprep.mubr.msk.bf16.mxu1 %vm161_vm2, %v817_v17 }
 0x48c   :  { %1114 = vmatmul.mubr.msk.bf16.vlgmr.msra.gmra.mrb[20].mxu1 %vm161_vm2, %v818_v16 }
 0x55f   :  { %v1115_v18 = vpop.f32.mrb[20].mxu1 }
 0x560   :  { %v868_v19 = vadd.f32 %v1115_v18, %v1394_v0  ;;  %v859_v21 = vpop.f32.mrb[21].mxu1 }
 0x561   :  { %v860_v20 = vadd.f32 %v1394_v0, %v859_v21  ;;  %v1116_v22 = vpop.f32.mrb[22].mxu1 }
 0x562   :  { %v876_v23 = vmax.f32 %v868_v19, 0.0  ;;  %v871_v37 = vadd.f32 %v1116_v22, %v1394_v0  ;;  %v862_v24 = vpop.f32.mrb[23].mxu1 }
 0x563   :  { %v874_v25 = vmax.f32 %v860_v20, 0.0  ;;  %v863_v26 = vadd.f32 %v1394_v0, %v862_v24 }
 0x564   :  { %v880_v27 = vmax.f32 %v688_v12, %v876_v23  ;;  %v877_v28 = vmax.f32 %v871_v37, 0.0 }
 0x565   :  { %v878_v29 = vmax.f32 %v686_v58, %v874_v25  ;;  %v875_v30 = vmax.f32 %v863_v26, 0.0 }
 0x566   :  { %884 = vst.msk [vmem:[%s1464_s7 + $0x10] sm:$0xff] %vm161_vm2, %v880_v27  ;;  %v881_v31 = vmax.f32 %v689_v35, %v877_v28 }
 0x567   :  { %882 = vst.msk [vmem:[%s1464_s7] sm:$0xff] %vm161_vm2, %v878_v29  ;;  %v879_v32 = vmax.f32 %v687_v59, %v875_v30 }
 0x568   :  { %885 = vst.msk [vmem:[%s1464_s7 + $0x18] sm:$0xff] %vm161_vm2, %v881_v31 }
 0x569   :  { %883 = vst.msk [vmem:[%s1464_s7 + $0x8] sm:$0xff] %vm161_vm2, %v879_v32 }

// kernel: dgcnn_forward.12
= control target key start
LH: loop header
LB: loop body
LE: loop exit
PB: predicated region body
PF: predicated region fallthrough
CT: control target
= control target key end

     0   :  { %s641_s1 = inlined_call_operand.vmem [shape: bf16[128,128], index: 1, kind: input, shape index: {}]   ;;  %s642_s0 = inlined_call_operand.vmem [shape: f32[4,32,128], index: 0, kind: input, shape index: {}]   ;;  %s643_s2 = inlined_call_operand.vmem [shape: f32[1,128], index: 2, kind: input, shape index: {}]   ;;  %s644_s3 = inlined_call_operand.vmem [shape: f32[32,128], index: 3, kind: output, shape index: {}]  }
   0x1   :  { %v517_v0 = vld [vmem:[%s641_s1] sm:$0xff]   ;;  %v522_v1 = vld [vmem:[%s641_s1 + $0x8] sm:$0xff]   ;;  %v533_v2 = vld [vmem:[%s641_s1 + $0x10] sm:$0xff]  }
   0x2   :  { %406 = vmatprep.subr.bf16.mxu0 %v517_v0  ;;  %426 = vmatprep.subr.bf16.mxu1 %v517_v0  ;;  %v540_v3 = vld [vmem:[%s641_s1 + $0x18] sm:$0xff]   ;;  %v38_v4 = vld [vmem:[%s642_s0] sm:$0xff]  ;;  %v39_v5 = vld [vmem:[%s642_s0 + $0x8] sm:$0xff] }
   0x3   :  { %407 = vmatpush3.bf16.msra.mxu0 %v517_v0  ;;  %427 = vmatpush3.bf16.msra.mxu1 %v517_v0  ;;  %v354_v6 = vld [vmem:[%s642_s0 + $0x20] sm:$0xff]  ;;  %v42_v7 = vpack.c.bf16 %v39_v5, %v38_v4  ;;  %v355_v8 = vld [vmem:[%s642_s0 + $0x28] sm:$0xff]  ;;  %v492_v12 = vld [vmem:[%s641_s1 + $0x30] sm:$0xff]  }
   0x4   :  { %408 = vmatprep.subr.bf16.mxu0 %v522_v1  ;;  %428 = vmatprep.subr.bf16.mxu1 %v522_v1  ;;  %v150_v9 = vpack.c.bf16 %v355_v8, %v354_v6  ;;  %v490_v10 = vld [vmem:[%s641_s1 + $0x20] sm:$0xff]   ;;  %v491_v11 = vld [vmem:[%s641_s1 + $0x28] sm:$0xff]   ;;  %v493_v13 = vld [vmem:[%s641_s1 + $0x38] sm:$0xff]  }
   0x5   :  { %422 = vmatprep.mubr.bf16.mxu0 %v42_v7  ;;  %v40_v14 = vld [vmem:[%s642_s0 + $0x10] sm:$0xff]  ;;  %v41_v15 = vld [vmem:[%s642_s0 + $0x18] sm:$0xff]  ;;  %v358_v18 = vld [vmem:[%s642_s0 + $0x40] sm:$0xff] }
   0x6   :  { %442 = vmatprep.mubr.bf16.mxu1 %v150_v9  ;;  %v356_v16 = vld [vmem:[%s642_s0 + $0x30] sm:$0xff]  ;;  %v357_v17 = vld [vmem:[%s642_s0 + $0x38] sm:$0xff]  ;;  %v43_v19 = vpack.c.bf16 %v41_v15, %v40_v14  ;;  %v359_v21 = vld [vmem:[%s642_s0 + $0x48] sm:$0xff] }
   0x7   :  { %409 = vmatpush3.bf16.msra.mxu0 %v522_v1  ;;  %429 = vmatpush3.bf16.msra.mxu1 %v522_v1  ;;  %v151_v20 = vpack.c.bf16 %v357_v17, %v356_v16  ;;  %v362_v22 = vld [vmem:[%s642_s0 + $0x60] sm:$0xff]  ;;  %v363_v23 = vld [vmem:[%s642_s0 + $0x68] sm:$0xff]  ;;  %v214_v24 = vpack.c.bf16 %v359_v21, %v358_v18  ;;  %v360_v26 = vld [vmem:[%s642_s0 + $0x50] sm:$0xff] }
   0x8   :  { %410 = vmatprep.subr.bf16.mxu0 %v533_v2  ;;  %430 = vmatprep.subr.bf16.mxu1 %v533_v2  ;;  %v278_v25 = vpack.c.bf16 %v363_v23, %v362_v22  ;;  %v361_v27 = vld [vmem:[%s642_s0 + $0x58] sm:$0xff]  ;;  %v364_v28 = vld [vmem:[%s642_s0 + $0x70] sm:$0xff]  ;;  %v345_v32 = vld [vmem:[%s643_s2] ss:$0 sm:$0xff] }
   0x9   :  { %v365_v29 = vld [vmem:[%s642_s0 + $0x78] sm:$0xff]  ;;  %v215_v30 = vpack.c.bf16 %v361_v27, %v360_v26 }
   0xa   :  { %v279_v31 = vpack.c.bf16 %v365_v29, %v364_v28 }
   0xb   :  { %411 = vmatpush3.bf16.msra.mxu0 %v533_v2  ;;  %431 = vmatpush3.bf16.msra.mxu1 %v533_v2 }
   0xc   :  { %412 = vmatprep.subr.bf16.mxu0 %v540_v3  ;;  %432 = vmatprep.subr.bf16.mxu1 %v540_v3 }
   0xf   :  { %413 = vmatpush3.bf16.msra.mxu0 %v540_v3  ;;  %433 = vmatpush3.bf16.msra.mxu1 %v540_v3 }
  0x10   :  { %414 = vmatprep.subr.bf16.mxu0 %v490_v10  ;;  %434 = vmatprep.subr.bf16.mxu1 %v490_v10 }
  0x13   :  { %415 = vmatpush3.bf16.msra.mxu0 %v490_v10  ;;  %435 = vmatpush3.bf16.msra.mxu1 %v490_v10 }
  0x14   :  { %416 = vmatprep.subr.bf16.mxu0 %v491_v11  ;;  %436 = vmatprep.subr.bf16.mxu1 %v491_v11 }
  0x17   :  { %417 = vmatpush3.bf16.msra.mxu0 %v491_v11  ;;  %437 = vmatpush3.bf16.msra.mxu1 %v491_v11 }
  0x18   :  { %418 = vmatprep.subr.bf16.mxu0 %v492_v12  ;;  %438 = vmatprep.subr.bf16.mxu1 %v492_v12 }
  0x1b   :  { %419 = vmatpush3.bf16.msra.mxu0 %v492_v12  ;;  %439 = vmatpush3.bf16.msra.mxu1 %v492_v12 }
  0x1c   :  { %420 = vmatprep.subr.bf16.mxu0 %v493_v13  ;;  %440 = vmatprep.subr.bf16.mxu1 %v493_v13 }
  0x1f   :  { %421 = vmatpush3.bf16.msra.mxu0 %v493_v13  ;;  %441 = vmatpush3.bf16.msra.mxu1 %v493_v13 }
  0x20   :  { %446 = vmatprep.subr.bf16.mxu0 %v517_v0  ;;  %466 = vmatprep.subr.bf16.mxu1 %v517_v0 }
  0x22   :  { %423 = vmatmul.mubr.bf16.vlgmr.msra.gmra.mrb[0].mxu0 %v43_v19  ;;  %443 = vmatmul.mubr.bf16.vlgmr.msra.gmra.mrb[0].mxu1 %v151_v20 }
  0x23   :  { %447 = vmatpush3.bf16.msra.mxu0 %v517_v0  ;;  %467 = vmatpush3.bf16.msra.mxu1 %v517_v0 }
  0x24   :  { %448 = vmatprep.subr.bf16.mxu0 %v522_v1  ;;  %468 = vmatprep.subr.bf16.mxu1 %v522_v1 }
  0x25   :  { %462 = vmatprep.mubr.bf16.mxu0 %v214_v24  ;;  %482 = vmatprep.mubr.bf16.mxu1 %v278_v25 }
  0x27   :  { %449 = vmatpush3.bf16.msra.mxu0 %v522_v1  ;;  %469 = vmatpush3.bf16.msra.mxu1 %v522_v1 }
  0x28   :  { %450 = vmatprep.subr.bf16.mxu0 %v533_v2  ;;  %470 = vmatprep.subr.bf16.mxu1 %v533_v2 }
  0x2b   :  { %451 = vmatpush3.bf16.msra.mxu0 %v533_v2  ;;  %471 = vmatpush3.bf16.msra.mxu1 %v533_v2 }
  0x2c   :  { %452 = vmatprep.subr.bf16.mxu0 %v540_v3  ;;  %472 = vmatprep.subr.bf16.mxu1 %v540_v3 }
  0x2f   :  { %453 = vmatpush3.bf16.msra.mxu0 %v540_v3  ;;  %473 = vmatpush3.bf16.msra.mxu1 %v540_v3 }
  0x30   :  { %454 = vmatprep.subr.bf16.mxu0 %v490_v10  ;;  %474 = vmatprep.subr.bf16.mxu1 %v490_v10 }
  0x33   :  { %455 = vmatpush3.bf16.msra.mxu0 %v490_v10  ;;  %475 = vmatpush3.bf16.msra.mxu1 %v490_v10 }
  0x34   :  { %456 = vmatprep.subr.bf16.mxu0 %v491_v11  ;;  %476 = vmatprep.subr.bf16.mxu1 %v491_v11 }
  0x37   :  { %457 = vmatpush3.bf16.msra.mxu0 %v491_v11  ;;  %477 = vmatpush3.bf16.msra.mxu1 %v491_v11 }
  0x38   :  { %458 = vmatprep.subr.bf16.mxu0 %v492_v12  ;;  %478 = vmatprep.subr.bf16.mxu1 %v492_v12 }
  0x3b   :  { %459 = vmatpush3.bf16.msra.mxu0 %v492_v12  ;;  %479 = vmatpush3.bf16.msra.mxu1 %v492_v12 }
  0x3c   :  { %460 = vmatprep.subr.bf16.mxu0 %v493_v13  ;;  %480 = vmatprep.subr.bf16.mxu1 %v493_v13 }
  0x3f   :  { %461 = vmatpush3.bf16.msra.mxu0 %v493_v13  ;;  %481 = vmatpush3.bf16.msra.mxu1 %v493_v13 }
  0x42   :  { %463 = vmatmul.mubr.bf16.vlgmr.msra.gmra.mrb[4].mxu0 %v215_v30  ;;  %483 = vmatmul.mubr.bf16.vlgmr.msra.gmra.mrb[4].mxu1 %v279_v31 }
  0xf5   :  { %v424_v33 = vpop.f32.mrb[0].mxu0  ;;  %v444_v34 = vpop.f32.mrb[0].mxu1 }
  0xf6   :  { %v135_v35 = vadd.f32 %v424_v33, %v345_v32  ;;  %v195_v36 = vadd.f32 %v444_v34, %v345_v32  ;;  %v126_v37 = vpop.f32.mrb[1].mxu0  ;;  %v186_v38 = vpop.f32.mrb[1].mxu1 }
  0xf7   :  { %v127_v39 = vadd.f32 %v345_v32, %v126_v37  ;;  %v187_v40 = vadd.f32 %v345_v32, %v186_v38  ;;  %v425_v41 = vpop.f32.mrb[2].mxu0  ;;  %v445_v42 = vpop.f32.mrb[2].mxu1 }
  0xf8   :  { %v143_v43 = vmax.f32 %v135_v35, 0.0  ;;  %v203_v44 = vmax.f32 %v195_v36, 0.0  ;;  %v138_v45 = vadd.f32 %v425_v41, %v345_v32  ;;  %v198_v46 = vadd.f32 %v445_v42, %v345_v32  ;;  %v129_v47 = vpop.f32.mrb[3].mxu0  ;;  %v189_v48 = vpop.f32.mrb[3].mxu1 }
  0xf9   :  { %v141_v49 = vmax.f32 %v127_v39, 0.0  ;;  %v201_v50 = vmax.f32 %v187_v40, 0.0  ;;  %v130_v51 = vadd.f32 %v345_v32, %v129_v47  ;;  %v190_v52 = vadd.f32 %v345_v32, %v189_v48 }
  0xfa   :  { %v207_v53 = vmax.f32 %v143_v43, %v203_v44  ;;  %v144_v54 = vmax.f32 %v138_v45, 0.0  ;;  %v204_v55 = vmax.f32 %v198_v46, 0.0 }
  0xfb   :  { %v205_v56 = vmax.f32 %v141_v49, %v201_v50  ;;  %v142_v57 = vmax.f32 %v130_v51, 0.0  ;;  %v202_v58 = vmax.f32 %v190_v52, 0.0 }
  0xfc   :  { %v208_v59 = vmax.f32 %v144_v54, %v204_v55 }
  0xfd   :  { %v206_v60 = vmax.f32 %v142_v57, %v202_v58 }
 0x115   :  { %v464_v61 = vpop.f32.mrb[4].mxu0  ;;  %v484_v62 = vpop.f32.mrb[4].mxu1 }
 0x116   :  { %v259_v63 = vadd.f32 %v464_v61, %v345_v32  ;;  %v323_v0 = vadd.f32 %v484_v62, %v345_v32  ;;  %v250_v1 = vpop.f32.mrb[5].mxu0  ;;  %v314_v2 = vpop.f32.mrb[5].mxu1 }
 0x117   :  { %v251_v3 = vadd.f32 %v345_v32, %v250_v1  ;;  %v315_v4 = vadd.f32 %v345_v32, %v314_v2  ;;  %v465_v5 = vpop.f32.mrb[6].mxu0  ;;  %v485_v6 = vpop.f32.mrb[6].mxu1 }
 0x118   :  { %v267_v7 = vmax.f32 %v259_v63, 0.0  ;;  %v331_v8 = vmax.f32 %v323_v0, 0.0  ;;  %v262_v9 = vadd.f32 %v465_v5, %v345_v32  ;;  %v326_v10 = vadd.f32 %v485_v6, %v345_v32  ;;  %v253_v11 = vpop.f32.mrb[7].mxu0  ;;  %v317_v12 = vpop.f32.mrb[7].mxu1 }
 0x119   :  { %v265_v13 = vmax.f32 %v251_v3, 0.0  ;;  %v329_v14 = vmax.f32 %v315_v4, 0.0  ;;  %v254_v15 = vadd.f32 %v345_v32, %v253_v11  ;;  %v318_v16 = vadd.f32 %v345_v32, %v317_v12 }
 0x11a   :  { %v271_v17 = vmax.f32 %v207_v53, %v267_v7  ;;  %v268_v18 = vmax.f32 %v262_v9, 0.0  ;;  %v332_v23 = vmax.f32 %v326_v10, 0.0 }
 0x11b   :  { %v269_v19 = vmax.f32 %v205_v56, %v265_v13  ;;  %v266_v20 = vmax.f32 %v254_v15, 0.0  ;;  %v330_v26 = vmax.f32 %v318_v16, 0.0 }
 0x11c   :  { %v335_v21 = vmax.f32 %v271_v17, %v331_v8  ;;  %v272_v22 = vmax.f32 %v208_v59, %v268_v18 }
 0x11d   :  { %v333_v24 = vmax.f32 %v269_v19, %v329_v14  ;;  %v270_v25 = vmax.f32 %v206_v60, %v266_v20 }
 0x11e   :  { %339 = vst [vmem:[%s644_s3 + $0x10] sm:$0xff] %v335_v21  ;;  %v336_v27 = vmax.f32 %v272_v22, %v332_v23 }
 0x11f   :  { %337 = vst [vmem:[%s644_s3] sm:$0xff] %v333_v24  ;;  %v334_v28 = vmax.f32 %v270_v25, %v330_v26 }
 0x120   :  { %340 = vst [vmem:[%s644_s3 + $0x18] sm:$0xff] %v336_v27 }
 0x121   :  { %338 = vst [vmem:[%s644_s3 + $0x8] sm:$0xff] %v334_v28 }

// kernel: dgcnn_forward.13
= control target key start
LH: loop header
LB: loop body
LE: loop exit
PB: predicated region body
PF: predicated region fallthrough
CT: control target
= control target key end

     0   :  { %s1238_s12 = smov 0   ;;  %s1240_s13 = smov 0   ;;  %s1522_s0 = inlined_call_operand.vmem [shape: f32[2,16,128], index: 0, kind: input, shape index: {}]   ;;  %s1523_s1 = inlined_call_operand.vmem [shape: bf16[128,1024], index: 1, kind: input, shape index: {}]   ;;  %s1524_s2 = inlined_call_operand.vmem [shape: f32[1,1024], index: 2, kind: input, shape index: {}]   ;;  %s1525_s3 = inlined_call_operand.vmem [shape: f32[2,1,1024], index: 3, kind: output, shape index: {}]  }
   0x1   :  { %s1242_s14 = smov 0  }
   0x2 LB: > { %s25_s15 = sadd.s32 1, %s1210_s13  ;;  %p1095_p0 = scmp.ge.s32.totalorder %s1214_s14, 1  ;;  %s1214_s14 = sphi %s1242_s14, %s13_s14   ;;  %s1210_s13 = sphi %s1240_s13, %s1527_s13   ;;  %s1206_s12 = sphi %s1238_s12, %s1526_s12  }
   0x3   : > { %p27_p1 = scmp.ge.s32.totalorder %s25_s15, 2  ;;  %p156_p2 = scmp.lt.s32.totalorder %s1214_s14, 3 }
   0x5   : > { %s1529_s15 = smov (%p27_p1, %s25_s15), 0  ;;  %p157_p3 = pnand %p1095_p0, %p156_p2 }
   0x6   : > { %v201_v0 = vld [vmem:[%s1523_s1] sm:$0xff] (!%p157_p3)  ;;  %v202_v2 = vld [vmem:[%s1523_s1 + $0x8] sm:$0xff] (!%p157_p3)  ;;  %v1216_v8 = vmov (!%p157_p3), 0   ;;  %p184_p4 = scmp.lt.s32.totalorder (!%p157_p3), %s1206_s12, 1  ;;  %v203_v63 = vld [vmem:[%s1523_s1 + $0x10] sm:$0xff] (!%p157_p3) }
   0x7   : > { %160 = sbr.rel (%p157_p3) target bundleno = 318 (0x13e), region = 32  ;;  %v205_v1 = vld [vmem:[%s1523_s1 + $0x20] sm:$0xff] (!%p157_p3)  ;;  %v206_v4 = vld [vmem:[%s1523_s1 + $0x28] sm:$0xff] (!%p157_p3)  ;;  %659 = vmatprep.mubr.bf16.mxu0 (!%p157_p3), %v1216_v8  ;;  %702 = vmatprep.mubr.bf16.mxu1 (!%p157_p3), %v1216_v8 }
   0x8   : > { %v1100_v3 = vcombine.high (!%p157_p3), %v201_v0, %v205_v1  ;;  %v1099_v5 = vcombine.low (!%p157_p3), %v201_v0, %v205_v1  ;;  %v209_v6 = vld [vmem:[%s1523_s1 + $0x40] sm:$0xff] (!%p157_p3)  ;;  %v1102_v9 = vcombine.high (!%p157_p3), %v202_v2, %v206_v4  ;;  %v1101_v10 = vcombine.low (!%p157_p3), %v202_v2, %v206_v4  ;;  %v210_v12 = vld [vmem:[%s1523_s1 + $0x48] sm:$0xff] (!%p157_p3)  ;;  %v207_v0 = vld [vmem:[%s1523_s1 + $0x30] sm:$0xff] (!%p157_p3) }
   0x9   : > { %v213_v7 = vld [vmem:[%s1523_s1 + $0x60] sm:$0xff] (!%p157_p3)  ;;  %v214_v13 = vld [vmem:[%s1523_s1 + $0x68] sm:$0xff] (!%p157_p3)  ;;  %v204_v1 = vld [vmem:[%s1523_s1 + $0x18] sm:$0xff] (!%p157_p3) }
   0xa   : > { %v1108_v11 = vcombine.high (!%p157_p3), %v209_v6, %v213_v7  ;;  %v217_v14 = vld [vmem:[%s1523_s1 + $0x80] sm:$0xff] (!%p157_p3)  ;;  %627 = vmatprep.subr.bf16.mxu0 (!%p157_p3), %v1100_v3  ;;  %v1110_v15 = vcombine.high (!%p157_p3), %v210_v12, %v214_v13  ;;  %v218_v17 = vld [vmem:[%s1523_s1 + $0x88] sm:$0xff] (!%p157_p3)  ;;  %670 = vmatprep.subr.bf16.mxu1 (!%p157_p3), %v1102_v9  ;;  %v1107_v19 = vcombine.low (!%p157_p3), %v209_v6, %v213_v7  ;;  %v208_v2 = vld [vmem:[%s1523_s1 + $0x38] sm:$0xff] (!%p157_p3) }
   0xb   : > { %v221_v16 = vld [vmem:[%s1523_s1 + $0xa0] sm:$0xff] (!%p157_p3)  ;;  %v222_v18 = vld [vmem:[%s1523_s1 + $0xa8] sm:$0xff] (!%p157_p3)  ;;  %628 = vmatpush1.bf16.msra.mxu0 (!%p157_p3), %v1099_v5  ;;  %671 = vmatpush1.bf16.msra.mxu1 (!%p157_p3), %v1101_v10  ;;  %v1109_v20 = vcombine.low (!%p157_p3), %v210_v12, %v214_v13  ;;  %v1104_v7 = vcombine.high (!%p157_p3), %v203_v63, %v207_v0  ;;  %v1106_v9 = vcombine.high (!%p157_p3), %v204_v1, %v208_v2  ;;  %v211_v10 = vld [vmem:[%s1523_s1 + $0x50] sm:$0xff] (!%p157_p3) }
   0xc   : > { %629 = vmatprep.subr.bf16.mxu0 (!%p157_p3), %v1108_v11  ;;  %v1116_v21 = vcombine.high (!%p157_p3), %v217_v14, %v221_v16  ;;  %672 = vmatprep.subr.bf16.mxu1 (!%p157_p3), %v1110_v15  ;;  %v1118_v22 = vcombine.high (!%p157_p3), %v218_v17, %v222_v18  ;;  %v225_v23 = vld [vmem:[%s1523_s1 + $0xc0] sm:$0xff] (!%p157_p3)  ;;  %v226_v25 = vld [vmem:[%s1523_s1 + $0xc8] sm:$0xff] (!%p157_p3)  ;;  %v1115_v27 = vcombine.low (!%p157_p3), %v217_v14, %v221_v16  ;;  %v215_v11 = vld [vmem:[%s1523_s1 + $0x70] sm:$0xff] (!%p157_p3) }
   0xd   : > { %v229_v24 = vld [vmem:[%s1523_s1 + $0xe0] sm:$0xff] (!%p157_p3)  ;;  %v230_v26 = vld [vmem:[%s1523_s1 + $0xe8] sm:$0xff] (!%p157_p3)  ;;  %v1117_v28 = vcombine.low (!%p157_p3), %v218_v17, %v222_v18  ;;  %v212_v13 = vld [vmem:[%s1523_s1 + $0x58] sm:$0xff] (!%p157_p3)  ;;  %v1103_v15 = vcombine.low (!%p157_p3), %v203_v63, %v207_v0  ;;  %v1105_v16 = vcombine.low (!%p157_p3), %v204_v1, %v208_v2  ;;  %v1112_v17 = vcombine.high (!%p157_p3), %v211_v10, %v215_v11 }
   0xe   : > { %v1124_v29 = vcombine.high %v225_v23, %v229_v24  ;;  %v1126_v30 = vcombine.high %v226_v25, %v230_v26  ;;  %v233_v31 = vld [vmem:[%s1523_s1 + $0x100] sm:$0xff]  ;;  %v234_v33 = vld [vmem:[%s1523_s1 + $0x108] sm:$0xff]  ;;  %v1123_v35 = vcombine.low %v225_v23, %v229_v24  ;;  %v1125_v36 = vcombine.low %v226_v25, %v230_v26  ;;  %s1531_s12 = smov (!%p184_p4, %s1206_s12), 1  ;;  %v216_v14 = vld [vmem:[%s1523_s1 + $0x78] sm:$0xff] }
   0xf   : > { %630 = vmatpush1.bf16.msra.mxu0 %v1107_v19  ;;  %673 = vmatpush1.bf16.msra.mxu1 %v1109_v20  ;;  %v237_v32 = vld [vmem:[%s1523_s1 + $0x120] sm:$0xff]  ;;  %v238_v34 = vld [vmem:[%s1523_s1 + $0x128] sm:$0xff]  ;;  %s1165_s30 = sshll.u32 %s1531_s12, 4  ;;  %v1114_v18 = vcombine.high %v212_v13, %v216_v14  ;;  %v219_v19 = vld [vmem:[%s1523_s1 + $0x90] sm:$0xff]  ;;  %v1111_v23 = vcombine.low %v211_v10, %v215_v11  ;;  %v1113_v24 = vcombine.low %v212_v13, %v216_v14  ;;  %s1098_s8 = sshll.u32 %s1531_s12, 3 }
  0x10   : > { %631 = vmatprep.subr.bf16.mxu0 %v1116_v21  ;;  %674 = vmatprep.subr.bf16.mxu1 %v1118_v22  ;;  %v1132_v37 = vcombine.high %v233_v31, %v237_v32  ;;  %v1134_v38 = vcombine.high %v234_v33, %v238_v34  ;;  %v241_v39 = vld [vmem:[%s1523_s1 + $0x140] sm:$0xff]  ;;  %v242_v41 = vld [vmem:[%s1523_s1 + $0x148] sm:$0xff]  ;;  %v1131_v43 = vcombine.low %v233_v31, %v237_v32  ;;  %s191_s10 = scalar_lea.vmem %s1522_s0, %s1165_s30  ;;  %v223_v20 = vld [vmem:[%s1523_s1 + $0xb0] sm:$0xff]  ;;  %s196_s11 = scalar_lea.vmem %s1525_s3, %s1098_s8 }
  0x11   : > { %v245_v40 = vld [vmem:[%s1523_s1 + $0x160] sm:$0xff]  ;;  %v246_v42 = vld [vmem:[%s1523_s1 + $0x168] sm:$0xff]  ;;  %v1133_v44 = vcombine.low %v234_v33, %v238_v34  ;;  %v220_v21 = vld [vmem:[%s1523_s1 + $0x98] sm:$0xff]  ;;  %v1120_v25 = vcombine.high %v219_v19, %v223_v20  ;;  %v1119_v31 = vcombine.low %v219_v19, %v223_v20 }
  0x12   : > { %v1140_v45 = vcombine.high %v241_v39, %v245_v40  ;;  %v1142_v46 = vcombine.high %v242_v41, %v246_v42  ;;  %v249_v47 = vld [vmem:[%s1523_s1 + $0x180] sm:$0xff]  ;;  %v250_v49 = vld [vmem:[%s1523_s1 + $0x188] sm:$0xff]  ;;  %v1139_v51 = vcombine.low %v241_v39, %v245_v40  ;;  %v1141_v52 = vcombine.low %v242_v41, %v246_v42  ;;  %v224_v22 = vld [vmem:[%s1523_s1 + $0xb8] sm:$0xff] }
  0x13   : > { %632 = vmatpush1.bf16.msra.mxu0 %v1115_v27  ;;  %675 = vmatpush1.bf16.msra.mxu1 %v1117_v28  ;;  %v253_v48 = vld [vmem:[%s1523_s1 + $0x1a0] sm:$0xff]  ;;  %v254_v50 = vld [vmem:[%s1523_s1 + $0x1a8] sm:$0xff]  ;;  %v1122_v26 = vcombine.high %v220_v21, %v224_v22  ;;  %v227_v27 = vld [vmem:[%s1523_s1 + $0xd0] sm:$0xff]  ;;  %v1121_v32 = vcombine.low %v220_v21, %v224_v22 }
  0x14   : > { %633 = vmatprep.subr.bf16.mxu0 %v1124_v29  ;;  %676 = vmatprep.subr.bf16.mxu1 %v1126_v30  ;;  %v1148_v53 = vcombine.high %v249_v47, %v253_v48  ;;  %v1150_v54 = vcombine.high %v250_v49, %v254_v50  ;;  %v257_v55 = vld [vmem:[%s1523_s1 + $0x1c0] sm:$0xff]  ;;  %v258_v57 = vld [vmem:[%s1523_s1 + $0x1c8] sm:$0xff]  ;;  %v1147_v59 = vcombine.low %v249_v47, %v253_v48  ;;  %v231_v28 = vld [vmem:[%s1523_s1 + $0xf0] sm:$0xff] }
  0x15   : > { %v261_v56 = vld [vmem:[%s1523_s1 + $0x1e0] sm:$0xff]  ;;  %v262_v58 = vld [vmem:[%s1523_s1 + $0x1e8] sm:$0xff]  ;;  %v1149_v60 = vcombine.low %v250_v49, %v254_v50  ;;  %v228_v29 = vld [vmem:[%s1523_s1 + $0xd8] sm:$0xff]  ;;  %v1128_v33 = vcombine.high %v227_v27, %v231_v28 }
  0x16   : > { %v1156_v61 = vcombine.high %v257_v55, %v261_v56  ;;  %v1158_v62 = vcombine.high %v258_v57, %v262_v58  ;;  %v1155_v3 = vcombine.low %v257_v55, %v261_v56  ;;  %v198_v4 = vld [vmem:[%s191_s10] sm:$0xff]  ;;  %v199_v5 = vld [vmem:[%s191_s10 + $0x8] sm:$0xff]  ;;  %v1157_v6 = vcombine.low %v258_v57, %v262_v58  ;;  %v232_v30 = vld [vmem:[%s1523_s1 + $0xf8] sm:$0xff] }
  0x17   : > { %634 = vmatpush1.bf16.msra.mxu0 %v1123_v35  ;;  %677 = vmatpush1.bf16.msra.mxu1 %v1125_v36  ;;  %v1382_v12 = vpack.c.bf16 %v199_v5, %v198_v4  ;;  %v1130_v34 = vcombine.high %v228_v29, %v232_v30  ;;  %v235_v35 = vld [vmem:[%s1523_s1 + $0x110] sm:$0xff]  ;;  %v1129_v39 = vcombine.low %v228_v29, %v232_v30  ;;  %v267_v4 = vlaneseq }
  0x18   : > { %635 = vmatprep.subr.bf16.mxu0 %v1132_v37  ;;  %678 = vmatprep.subr.bf16.mxu1 %v1134_v38  ;;  %v239_v36 = vld [vmem:[%s1523_s1 + $0x130] sm:$0xff]  ;;  %v240_v37 = vld [vmem:[%s1523_s1 + $0x138] sm:$0xff]  ;;  %v1127_v38 = vcombine.low %v227_v27, %v231_v28 }
  0x19   : > { %v1136_v40 = vcombine.high %v235_v35, %v239_v36  ;;  %v243_v42 = vld [vmem:[%s1523_s1 + $0x150] sm:$0xff]  ;;  %v1468_v5 = vshrl.u32 %v267_v4, 7 }
  0x1a   : > { %v251_v50 = vld [vmem:[%s1523_s1 + $0x190] sm:$0xff] }
  0x1b   : > { %636 = vmatpush1.bf16.msra.mxu0 %v1131_v43  ;;  %679 = vmatpush1.bf16.msra.mxu1 %v1133_v44  ;;  %v247_v43 = vld [vmem:[%s1523_s1 + $0x170] sm:$0xff]  ;;  %v244_v44 = vld [vmem:[%s1523_s1 + $0x158] sm:$0xff]  ;;  %v273_v10 = vsub.s32 1, %v1468_v5  ;;  %v281_v11 = vsub.s32 3, %v1468_v5 }
  0x1c   : > { %637 = vmatprep.subr.bf16.mxu0 %v1140_v45  ;;  %680 = vmatprep.subr.bf16.mxu1 %v1142_v46  ;;  %v248_v45 = vld [vmem:[%s1523_s1 + $0x178] sm:$0xff]  ;;  %v1135_v46 = vcombine.low %v235_v35, %v239_v36  ;;  %v1144_v48 = vcombine.high %v243_v42, %v247_v43  ;;  %v259_v58 = vld [vmem:[%s1523_s1 + $0x1d0] sm:$0xff] }
  0x1d   : > { %v1146_v49 = vcombine.high %v244_v44, %v248_v45  ;;  %v1145_v55 = vcombine.low %v244_v44, %v248_v45 }
  0x1f   : > { %638 = vmatpush1.bf16.msra.mxu0 %v1139_v51  ;;  %681 = vmatpush1.bf16.msra.mxu1 %v1141_v52  ;;  %v255_v51 = vld [vmem:[%s1523_s1 + $0x1b0] sm:$0xff]  ;;  %v252_v52 = vld [vmem:[%s1523_s1 + $0x198] sm:$0xff] }
  0x20   : > { %639 = vmatprep.subr.bf16.mxu0 %v1148_v53  ;;  %682 = vmatprep.subr.bf16.mxu1 %v1150_v54  ;;  %v256_v53 = vld [vmem:[%s1523_s1 + $0x1b8] sm:$0xff]  ;;  %v1143_v54 = vcombine.low %v243_v42, %v247_v43  ;;  %v1152_v56 = vcombine.high %v251_v50, %v255_v51 }
  0x21   : > { %v1154_v57 = vcombine.high %v252_v52, %v256_v53  ;;  %v1153_v63 = vcombine.low %v252_v52, %v256_v53 }
  0x23   : > { %640 = vmatpush1.bf16.msra.mxu0 %v1147_v59  ;;  %683 = vmatpush1.bf16.msra.mxu1 %v1149_v60  ;;  %v263_v59 = vld [vmem:[%s1523_s1 + $0x1f0] sm:$0xff]  ;;  %v260_v60 = vld [vmem:[%s1523_s1 + $0x1d8] sm:$0xff] }
  0x24   : > { %641 = vmatprep.subr.bf16.mxu0 %v1156_v61  ;;  %684 = vmatprep.subr.bf16.mxu1 %v1158_v62  ;;  %v264_v61 = vld [vmem:[%s1523_s1 + $0x1f8] sm:$0xff]  ;;  %v1151_v62 = vcombine.low %v251_v50, %v255_v51  ;;  %v1160_v0 = vcombine.high %v259_v58, %v263_v59  ;;  %v1159_v2 = vcombine.low %v259_v58, %v263_v59  ;;  %v1217_v50 = vmov 1966171168  }
  0x25   : > { %v1162_v1 = vcombine.high %v260_v60, %v264_v61  ;;  %v913_v51 = vunpack.c.l.s4 %v1217_v50 }
  0x27   : > { %642 = vmatpush1.bf16.msra.mxu0 %v1155_v3  ;;  %685 = vmatpush1.bf16.msra.mxu1 %v1157_v6  ;;  %v1161_v3 = vcombine.low %v260_v60, %v264_v61  ;;  %v269_v6 = vsub.s32 0, %v1468_v5  ;;  %v914_v60 = vunpack.c.0.s8 %v913_v51 }
  0x28   : > { %713 = vmatprep.subr.bf16.mxu0 %v1104_v7  ;;  %756 = vmatprep.subr.bf16.mxu1 %v1106_v9  ;;  %v1474_v7 = vld [vmem:[%s1524_s2] sm:$0xff]  ;;  %v277_v9 = vsub.s32 2, %v1468_v5 }
  0x29   : > { %v270_v13 = vrot.slane %v1474_v7, %v269_v6  ;;  %v274_v14 = vrot.slane %v1474_v7, %v273_v10  ;;  %v1484_v6 = vsub.s32 %v914_v60, %v1468_v5 }
  0x2a   : > { %660 = vmatmul.mubr.bf16.vlgmr.msra.gmra.mrb[0].mxu0 %v1382_v12  ;;  %703 = vmatmul.mubr.bf16.vlgmr.msra.gmra.mrb[0].mxu1 %v1382_v12 }
  0x2b   : > { %714 = vmatpush1.bf16.msra.mxu0 %v1103_v15  ;;  %757 = vmatpush1.bf16.msra.mxu1 %v1105_v16  ;;  %v282_v15 = vrot.slane %v1474_v7, %v281_v11 }
  0x2c   : > { %715 = vmatprep.subr.bf16.mxu0 %v1112_v17  ;;  %758 = vmatprep.subr.bf16.mxu1 %v1114_v18 }
  0x2d   : > { %745 = vmatprep.mubr.bf16.mxu0 %v1216_v8  ;;  %788 = vmatprep.mubr.bf16.mxu1 %v1216_v8  ;;  %v236_v8 = vld [vmem:[%s1523_s1 + $0x118] sm:$0xff] }
  0x2e   : > { %v1138_v41 = vcombine.high %v236_v8, %v240_v37  ;;  %v1137_v47 = vcombine.low %v236_v8, %v240_v37 }
  0x2f   : > { %716 = vmatpush1.bf16.msra.mxu0 %v1111_v23  ;;  %759 = vmatpush1.bf16.msra.mxu1 %v1113_v24 }
  0x30   : > { %717 = vmatprep.subr.bf16.mxu0 %v1120_v25  ;;  %760 = vmatprep.subr.bf16.mxu1 %v1122_v26 }
  0x33   : > { %718 = vmatpush1.bf16.msra.mxu0 %v1119_v31  ;;  %761 = vmatpush1.bf16.msra.mxu1 %v1121_v32 }
  0x34   : > { %719 = vmatprep.subr.bf16.mxu0 %v1128_v33  ;;  %762 = vmatprep.subr.bf16.mxu1 %v1130_v34 }
  0x37   : > { %720 = vmatpush1.bf16.msra.mxu0 %v1127_v38  ;;  %763 = vmatpush1.bf16.msra.mxu1 %v1129_v39 }
  0x38   : > { %721 = vmatprep.subr.bf16.mxu0 %v1136_v40  ;;  %764 = vmatprep.subr.bf16.mxu1 %v1138_v41 }
  0x3b   : > { %722 = vmatpush1.bf16.msra.mxu0 %v1135_v46  ;;  %765 = vmatpush1.bf16.msra.mxu1 %v1137_v47 }
  0x3c   : > { %723 = vmatprep.subr.bf16.mxu0 %v1144_v48  ;;  %766 = vmatprep.subr.bf16.mxu1 %v1146_v49 }
  0x3f   : > { %724 = vmatpush1.bf16.msra.mxu0 %v1143_v54  ;;  %767 = vmatpush1.bf16.msra.mxu1 %v1145_v55 }
  0x40   : > { %725 = vmatprep.subr.bf16.mxu0 %v1152_v56  ;;  %768 = vmatprep.subr.bf16.mxu1 %v1154_v57 }
  0x43   : > { %726 = vmatpush1.bf16.msra.mxu0 %v1151_v62  ;;  %769 = vmatpush1.bf16.msra.mxu1 %v1153_v63 }
  0x44   : > { %727 = vmatprep.subr.bf16.mxu0 %v1160_v0  ;;  %770 = vmatprep.subr.bf16.mxu1 %v1162_v1 }
  0x47   : > { %728 = vmatpush1.bf16.msra.mxu0 %v1159_v2  ;;  %771 = vmatpush1.bf16.msra.mxu1 %v1161_v3 }
  0x4a   : > { %746 = vmatmul.mubr.bf16.vlgmr.msra.gmra.mrb[4].mxu0 %v1382_v12  ;;  %789 = vmatmul.mubr.bf16.vlgmr.msra.gmra.mrb[4].mxu1 %v1382_v12  ;;  %v278_v12 = vrot.slane %v1474_v7, %v277_v9 }
  0xfd   : > { %v661_v16 = vpop.f32.mrb[0].mxu0  ;;  %v704_v18 = vpop.f32.mrb[0].mxu1 }
  0xfe   : > { %v662_v17 = vadd.f32 %v661_v16, %v270_v13  ;;  %v663_v19 = vpop.f32.mrb[1].mxu0  ;;  %v705_v20 = vadd.f32 %v704_v18, %v278_v12  ;;  %v706_v22 = vpop.f32.mrb[1].mxu1  ;;  %v289_v16 = vsub.s32 5, %v1468_v5  ;;  %v297_v18 = vsub.s32 7, %v1468_v5 }
  0xff   : > { %v664_v21 = vadd.f32 %v663_v19, %v274_v14  ;;  %v665_v23 = vpop.f32.mrb[2].mxu0  ;;  %v707_v25 = vadd.f32 %v706_v22, %v282_v15  ;;  %v708_v27 = vpop.f32.mrb[2].mxu1 }
 0x100   : > { %v799_v24 = vmax.f32 %v662_v17, 0.0  ;;  %v666_v26 = vadd.f32 %v665_v23, %v270_v13  ;;  %v667_v28 = vpop.f32.mrb[3].mxu0  ;;  %v801_v29 = vmax.f32 %v705_v20, 0.0  ;;  %v709_v30 = vadd.f32 %v708_v27, %v278_v12  ;;  %v710_v32 = vpop.f32.mrb[3].mxu1 }
 0x101   : > { %v668_v31 = vadd.f32 %v667_v28, %v274_v14  ;;  %v711_v34 = vadd.f32 %v710_v32, %v282_v15  ;;  %v800_v35 = vmax.f32 %v664_v21, 0.0  ;;  %v802_v37 = vmax.f32 %v707_v25, 0.0 }
 0x102   : > { %v807_v33 = vmax.f32 %v666_v26, 0.0  ;;  %v809_v36 = vmax.f32 %v709_v30, 0.0  ;;  %v285_v14 = vsub.s32 4, %v1468_v5  ;;  %v293_v15 = vsub.s32 6, %v1468_v5 }
 0x103   : > { %v808_v8 = vmax.f32 %v668_v31, 0.0  ;;  %v810_v39 = vmax.f32 %v711_v34, 0.0  ;;  %v290_v21 = vrot.slane %v1474_v7, %v289_v16  ;;  %v298_v22 = vrot.slane %v1474_v7, %v297_v18 }
 0x104   : > { %v840_v38 = vmax.f32 %v799_v24, %v807_v33  ;;  %v854_v40 = vmax.f32 %v801_v29, %v809_v36  ;;  %v286_v19 = vrot.slane %v1474_v7, %v285_v14  ;;  %v294_v20 = vrot.slane %v1474_v7, %v293_v15 }
 0x105   : > { %v847_v41 = vmax.f32 %v800_v35, %v808_v8  ;;  %v861_v43 = vmax.f32 %v802_v37, %v810_v39 }
 0x106   : > { %v841_v42 = vrot.slane %v840_v38, 4  ;;  %v855_v44 = vrot.slane %v854_v40, 4 }
 0x107   : > { %v848_v45 = vrot.slane %v847_v41, 4  ;;  %v862_v47 = vrot.slane %v861_v43, 4 }
 0x108   : > { %v842_v46 = vmax.f32 %v840_v38, %v841_v42  ;;  %v856_v48 = vmax.f32 %v854_v40, %v855_v44 }
 0x109   : > { %v849_v49 = vmax.f32 %v847_v41, %v848_v45  ;;  %v863_v53 = vmax.f32 %v861_v43, %v862_v47 }
 0x10a   : > { %v843_v52 = vrot.slane %v842_v46, 2  ;;  %v857_v54 = vrot.slane %v856_v48, 2 }
 0x10b   : > { %v850_v55 = vrot.slane %v849_v49, 2  ;;  %v864_v57 = vrot.slane %v863_v53, 2 }
 0x10c   : > { %v844_v56 = vmax.f32 %v842_v46, %v843_v52  ;;  %v858_v58 = vmax.f32 %v856_v48, %v857_v54 }
 0x10d   : > { %v851_v59 = vmax.f32 %v849_v49, %v850_v55  ;;  %v865_v62 = vmax.f32 %v863_v53, %v864_v57 }
 0x10e   : > { %v845_v61 = vrot.slane %v844_v56, 1  ;;  %v859_v63 = vrot.slane %v858_v58, 1 }
 0x10f   : > { %v852_v0 = vrot.slane %v851_v59, 1  ;;  %v866_v2 = vrot.slane %v865_v62, 1 }
 0x110   : > { %v846_v1 = vmax.f32 %v844_v56, %v845_v61  ;;  %v860_v3 = vmax.f32 %v858_v58, %v859_v63 }
 0x111   : > { %v853_v4 = vmax.f32 %v851_v59, %v852_v0  ;;  %v867_v9 = vmax.f32 %v865_v62, %v866_v2 }
 0x113   : > { %v908_v10 = vcombine.low %v846_v1, %v853_v4  ;;  %v909_v11 = vcombine.low %v860_v3, %v867_v9 }
 0x115   : > { %v1487_v13 = vrot.slane %v908_v10, %v1484_v6  ;;  %v1490_v12 = vrot.slane %v909_v11, %v1484_v6 }
 0x117   : > { %v940_v17 = vcombine.low %v1487_v13, %v1490_v12 }
 0x11d   : > { %v747_v23 = vpop.f32.mrb[4].mxu0  ;;  %v790_v25 = vpop.f32.mrb[4].mxu1 }
 0x11e   : > { %v748_v24 = vadd.f32 %v747_v23, %v286_v19  ;;  %v749_v26 = vpop.f32.mrb[5].mxu0  ;;  %v791_v27 = vadd.f32 %v790_v25, %v294_v20  ;;  %v792_v29 = vpop.f32.mrb[5].mxu1 }
 0x11f   : > { %v750_v28 = vadd.f32 %v749_v26, %v290_v21  ;;  %v751_v30 = vpop.f32.mrb[6].mxu0  ;;  %v793_v31 = vadd.f32 %v792_v29, %v298_v22  ;;  %v794_v33 = vpop.f32.mrb[6].mxu1 }
 0x120   : > { %v752_v32 = vadd.f32 %v751_v30, %v286_v19  ;;  %v753_v5 = vpop.f32.mrb[7].mxu0  ;;  %v795_v34 = vadd.f32 %v794_v33, %v294_v20  ;;  %v796_v36 = vpop.f32.mrb[7].mxu1  ;;  %v803_v8 = vmax.f32 %v748_v24, 0.0  ;;  %v805_v39 = vmax.f32 %v791_v27, 0.0 }
 0x121   : > { %v754_v35 = vadd.f32 %v753_v5, %v290_v21  ;;  %v797_v38 = vadd.f32 %v796_v36, %v298_v22  ;;  %v804_v7 = vmax.f32 %v750_v28, 0.0  ;;  %v806_v42 = vmax.f32 %v793_v31, 0.0 }
 0x122   : > { %v811_v37 = vmax.f32 %v752_v32, 0.0  ;;  %v813_v40 = vmax.f32 %v795_v34, 0.0  ;;  %v948_v20 = vrot.slane %v940_v17, %v1484_v6 }
 0x123   : > { %v812_v41 = vmax.f32 %v754_v35, 0.0  ;;  %v814_v44 = vmax.f32 %v797_v38, 0.0 }
 0x124   : > { %v868_v43 = vmax.f32 %v803_v8, %v811_v37  ;;  %v882_v45 = vmax.f32 %v805_v39, %v813_v40 }
 0x125   : > { %v875_v46 = vmax.f32 %v804_v7, %v812_v41  ;;  %v889_v48 = vmax.f32 %v806_v42, %v814_v44 }
 0x126   : > { %v869_v47 = vrot.slane %v868_v43, 4  ;;  %v883_v49 = vrot.slane %v882_v45, 4 }
 0x127   : > { %v876_v50 = vrot.slane %v875_v46, 4  ;;  %v890_v52 = vrot.slane %v889_v48, 4 }
 0x128   : > { %v870_v51 = vmax.f32 %v868_v43, %v869_v47  ;;  %v884_v53 = vmax.f32 %v882_v45, %v883_v49 }
 0x129   : > { %v877_v54 = vmax.f32 %v875_v46, %v876_v50  ;;  %v891_v56 = vmax.f32 %v889_v48, %v890_v52 }
 0x12a   : > { %v871_v55 = vrot.slane %v870_v51, 2  ;;  %v885_v57 = vrot.slane %v884_v53, 2 }
 0x12b   : > { %v878_v58 = vrot.slane %v877_v54, 2  ;;  %v892_v60 = vrot.slane %v891_v56, 2 }
 0x12c   : > { %v872_v59 = vmax.f32 %v870_v51, %v871_v55  ;;  %v886_v61 = vmax.f32 %v884_v53, %v885_v57 }
 0x12d   : > { %v879_v62 = vmax.f32 %v877_v54, %v878_v58  ;;  %v893_v0 = vmax.f32 %v891_v56, %v892_v60 }
 0x12e   : > { %v873_v63 = vrot.slane %v872_v59, 1  ;;  %v887_v1 = vrot.slane %v886_v61, 1 }
 0x12f   : > { %v880_v2 = vrot.slane %v879_v62, 1  ;;  %v894_v4 = vrot.slane %v893_v0, 1 }
 0x130   : > { %v874_v3 = vmax.f32 %v872_v59, %v873_v63  ;;  %v888_v9 = vmax.f32 %v886_v61, %v887_v1 }
 0x131   : > { %v881_v10 = vmax.f32 %v879_v62, %v880_v2  ;;  %v895_v11 = vmax.f32 %v893_v0, %v894_v4 }
 0x133   : > { %v910_v14 = vcombine.low %v874_v3, %v881_v10  ;;  %v911_v15 = vcombine.low %v888_v9, %v895_v11 }
 0x135   : > { %v932_v16 = vrot.slane %v910_v14, %v1484_v6  ;;  %v939_v18 = vrot.slane %v911_v15, %v1484_v6 }
 0x137   : > { %v941_v19 = vcombine.low %v932_v16, %v939_v18 }
 0x139   : > { %v955_v21 = vrot.slane %v941_v19, %v1484_v6 }
 0x13b   : > { %v956_v22 = vcombine.low %v948_v20, %v955_v21 }
 0x13d   : > { %958 = vst [vmem:[%s196_s11] sm:$0xff] %v956_v22 }
 0x13e PF: > { %s13_s14 = sadd.s32 1, %s1214_s14   ;;  %s1526_s12 = smov %s1210_s13 }
 0x13f   : > { %p10_p5 = scmp.ge.s32.totalorder %s13_s14, 4   ;;  %s1527_s13 = smov %s1529_s15 }
 0x141   :  { %12 = sbr.rel (!%p10_p5) target bundleno = 2 (0x2), region = 70 }

// kernel: dgcnn_forward.15
= control target key start
LH: loop header
LB: loop body
LE: loop exit
PB: predicated region body
PF: predicated region fallthrough
CT: control target
= control target key end

     0   :  { %s905_s1 = inlined_call_operand.vmem [shape: bf16[512,256], index: 1, kind: input, shape index: {}]   ;;  %s906_s0 = inlined_call_operand.vmem [shape: f32[8,512], index: 0, kind: input, shape index: {}]   ;;  %s907_s2 = inlined_call_operand.vmem [shape: f32[1,256], index: 2, kind: input, shape index: {}]   ;;  %s908_s3 = inlined_call_operand.vmem [shape: f32[8,256], index: 3, kind: output, shape index: {}]  }
   0x1   :  { %v576_v0 = vld [vmem:[%s905_s1 + $0x4] ss:$8 sps:$4 sm:$0xff]   ;;  %v580_v2 = vld [vmem:[%s905_s1] ss:$8 sps:$4 sm:$0xff]   ;;  %v582_v4 = vld [vmem:[%s905_s1 + $0x14] ss:$8 sps:$4 sm:$0xff]  }
   0x2   :  { %v578_v1 = vld [vmem:[%s905_s1 + $0x104] ss:$8 sps:$4 sm:$0xff]   ;;  %418 = vmatprep.subr.bf16.mxu1 %v576_v0  ;;  %v581_v3 = vld [vmem:[%s905_s1 + $0x100] ss:$8 sps:$4 sm:$0xff]   ;;  %v584_v5 = vld [vmem:[%s905_s1 + $0x114] ss:$8 sps:$4 sm:$0xff]  }
   0x3   :  { %459 = vmatprep.subr.bf16.mxu0 %v578_v1  ;;  %419 = vmatpush1.bf16.msra.mxu1 %v580_v2  ;;  %v586_v6 = vld [vmem:[%s905_s1 + $0x10] ss:$8 sps:$4 sm:$0xff]   ;;  %v588_v8 = vld [vmem:[%s905_s1 + $0x24] ss:$8 sps:$4 sm:$0xff]   ;;  %v592_v10 = vld [vmem:[%s905_s1 + $0x20] ss:$8 sps:$4 sm:$0xff]  }
   0x4   :  { %460 = vmatpush1.bf16.msra.mxu0 %v581_v3  ;;  %420 = vmatprep.subr.bf16.mxu1 %v582_v4  ;;  %v587_v7 = vld [vmem:[%s905_s1 + $0x110] ss:$8 sps:$4 sm:$0xff]   ;;  %v590_v9 = vld [vmem:[%s905_s1 + $0x124] ss:$8 sps:$4 sm:$0xff]   ;;  %v593_v11 = vld [vmem:[%s905_s1 + $0x120] ss:$8 sps:$4 sm:$0xff]  }
   0x5   :  { %461 = vmatprep.subr.bf16.mxu0 %v584_v5  ;;  %v594_v12 = vld [vmem:[%s905_s1 + $0x34] ss:$8 sps:$4 sm:$0xff]   ;;  %v598_v14 = vld [vmem:[%s905_s1 + $0x30] ss:$8 sps:$4 sm:$0xff]   ;;  %v600_v16 = vld [vmem:[%s905_s1 + $0x44] ss:$8 sps:$4 sm:$0xff]  }
   0x6   :  { %v596_v13 = vld [vmem:[%s905_s1 + $0x134] ss:$8 sps:$4 sm:$0xff]   ;;  %v599_v15 = vld [vmem:[%s905_s1 + $0x130] ss:$8 sps:$4 sm:$0xff]   ;;  %v602_v17 = vld [vmem:[%s905_s1 + $0x144] ss:$8 sps:$4 sm:$0xff]  }
   0x7   :  { %421 = vmatpush1.bf16.msra.mxu1 %v586_v6  ;;  %v604_v18 = vld [vmem:[%s905_s1 + $0x40] ss:$8 sps:$4 sm:$0xff]   ;;  %v606_v20 = vld [vmem:[%s905_s1 + $0x54] ss:$8 sps:$4 sm:$0xff]   ;;  %v610_v22 = vld [vmem:[%s905_s1 + $0x50] ss:$8 sps:$4 sm:$0xff]  }
   0x8   :  { %462 = vmatpush1.bf16.msra.mxu0 %v587_v7  ;;  %422 = vmatprep.subr.bf16.mxu1 %v588_v8  ;;  %v605_v19 = vld [vmem:[%s905_s1 + $0x140] ss:$8 sps:$4 sm:$0xff]   ;;  %v608_v21 = vld [vmem:[%s905_s1 + $0x154] ss:$8 sps:$4 sm:$0xff]   ;;  %v611_v23 = vld [vmem:[%s905_s1 + $0x150] ss:$8 sps:$4 sm:$0xff]   ;;  %v88_v8 = vlaneseq }
   0x9   :  { %463 = vmatprep.subr.bf16.mxu0 %v590_v9  ;;  %v612_v24 = vld [vmem:[%s905_s1 + $0x64] ss:$8 sps:$4 sm:$0xff]   ;;  %v616_v26 = vld [vmem:[%s905_s1 + $0x60] ss:$8 sps:$4 sm:$0xff]   ;;  %v618_v28 = vld [vmem:[%s905_s1 + $0x74] ss:$8 sps:$4 sm:$0xff]  }
   0xa   :  { %v614_v25 = vld [vmem:[%s905_s1 + $0x164] ss:$8 sps:$4 sm:$0xff]   ;;  %v617_v27 = vld [vmem:[%s905_s1 + $0x160] ss:$8 sps:$4 sm:$0xff]   ;;  %v620_v29 = vld [vmem:[%s905_s1 + $0x174] ss:$8 sps:$4 sm:$0xff]  }
   0xb   :  { %423 = vmatpush1.bf16.msra.mxu1 %v592_v10  ;;  %v622_v30 = vld [vmem:[%s905_s1 + $0x70] ss:$8 sps:$4 sm:$0xff]   ;;  %v624_v32 = vld [vmem:[%s905_s1 + $0x84] ss:$8 sps:$4 sm:$0xff]   ;;  %v628_v34 = vld [vmem:[%s905_s1 + $0x80] ss:$8 sps:$4 sm:$0xff]  }
   0xc   :  { %464 = vmatpush1.bf16.msra.mxu0 %v593_v11  ;;  %424 = vmatprep.subr.bf16.mxu1 %v594_v12  ;;  %v623_v31 = vld [vmem:[%s905_s1 + $0x170] ss:$8 sps:$4 sm:$0xff]   ;;  %v626_v33 = vld [vmem:[%s905_s1 + $0x184] ss:$8 sps:$4 sm:$0xff]   ;;  %v629_v35 = vld [vmem:[%s905_s1 + $0x180] ss:$8 sps:$4 sm:$0xff]  }
   0xd   :  { %465 = vmatprep.subr.bf16.mxu0 %v596_v13  ;;  %v630_v36 = vld [vmem:[%s905_s1 + $0x94] ss:$8 sps:$4 sm:$0xff]   ;;  %v634_v38 = vld [vmem:[%s905_s1 + $0x90] ss:$8 sps:$4 sm:$0xff]   ;;  %v636_v40 = vld [vmem:[%s905_s1 + $0xa4] ss:$8 sps:$4 sm:$0xff]  }
   0xe   :  { %v632_v37 = vld [vmem:[%s905_s1 + $0x194] ss:$8 sps:$4 sm:$0xff]   ;;  %v635_v39 = vld [vmem:[%s905_s1 + $0x190] ss:$8 sps:$4 sm:$0xff]   ;;  %v638_v41 = vld [vmem:[%s905_s1 + $0x1a4] ss:$8 sps:$4 sm:$0xff]  }
   0xf   :  { %425 = vmatpush1.bf16.msra.mxu1 %v598_v14  ;;  %v640_v42 = vld [vmem:[%s905_s1 + $0xa0] ss:$8 sps:$4 sm:$0xff]   ;;  %v642_v44 = vld [vmem:[%s905_s1 + $0xb4] ss:$8 sps:$4 sm:$0xff]   ;;  %v646_v49 = vld [vmem:[%s905_s1 + $0xb0] ss:$8 sps:$4 sm:$0xff]  }
  0x10   :  { %466 = vmatpush1.bf16.msra.mxu0 %v599_v15  ;;  %426 = vmatprep.subr.bf16.mxu1 %v600_v16  ;;  %v641_v43 = vld [vmem:[%s905_s1 + $0x1a0] ss:$8 sps:$4 sm:$0xff]   ;;  %v644_v45 = vld [vmem:[%s905_s1 + $0x1b4] ss:$8 sps:$4 sm:$0xff]   ;;  %v647_v50 = vld [vmem:[%s905_s1 + $0x1b0] ss:$8 sps:$4 sm:$0xff]  }
  0x11   :  { %467 = vmatprep.subr.bf16.mxu0 %v602_v17  ;;  %v15_v46 = vld [vmem:[%s906_s0 + $0x8] sm:$0xff]  ;;  %v17_v48 = vld [vmem:[%s906_s0 + $0x18] sm:$0xff]  ;;  %v14_v4 = vld [vmem:[%s906_s0] sm:$0xff]  ;;  %v89_v9 = vshrl.u32 %v88_v8, 7 }
  0x12   :  { %v19_v47 = vpack.c.bf16 %v15_v46, %v15_v46  ;;  %v21_v51 = vpack.c.bf16 %v17_v48, %v17_v48  ;;  %v648_v52 = vld [vmem:[%s905_s1 + $0xc4] ss:$8 sps:$4 sm:$0xff]   ;;  %v652_v54 = vld [vmem:[%s905_s1 + $0xc0] ss:$8 sps:$4 sm:$0xff]   ;;  %v654_v56 = vld [vmem:[%s905_s1 + $0xd4] ss:$8 sps:$4 sm:$0xff]   ;;  %v18_v6 = vpack.c.bf16 %v14_v4, %v14_v4 }
  0x13   :  { %427 = vmatpush1.bf16.msra.mxu1 %v604_v18  ;;  %v650_v53 = vld [vmem:[%s905_s1 + $0x1c4] ss:$8 sps:$4 sm:$0xff]   ;;  %v653_v55 = vld [vmem:[%s905_s1 + $0x1c0] ss:$8 sps:$4 sm:$0xff]   ;;  %v656_v57 = vld [vmem:[%s905_s1 + $0x1d4] ss:$8 sps:$4 sm:$0xff]  }
  0x14   :  { %468 = vmatpush1.bf16.msra.mxu0 %v605_v19  ;;  %428 = vmatprep.subr.bf16.mxu1 %v606_v20  ;;  %v658_v58 = vld [vmem:[%s905_s1 + $0xd0] ss:$8 sps:$4 sm:$0xff]   ;;  %v660_v60 = vld [vmem:[%s905_s1 + $0xe4] ss:$8 sps:$4 sm:$0xff]   ;;  %v664_v62 = vld [vmem:[%s905_s1 + $0xe0] ss:$8 sps:$4 sm:$0xff]  }
  0x15   :  { %469 = vmatprep.subr.bf16.mxu0 %v608_v21  ;;  %450 = vmatprep.mubr.bf16.mxu1 %v19_v47  ;;  %v659_v59 = vld [vmem:[%s905_s1 + $0x1d0] ss:$8 sps:$4 sm:$0xff]   ;;  %v662_v61 = vld [vmem:[%s905_s1 + $0x1e4] ss:$8 sps:$4 sm:$0xff]   ;;  %v665_v63 = vld [vmem:[%s905_s1 + $0x1e0] ss:$8 sps:$4 sm:$0xff]  }
  0x16   :  { %491 = vmatprep.mubr.bf16.mxu0 %v21_v51  ;;  %v666_v0 = vld [vmem:[%s905_s1 + $0xf4] ss:$8 sps:$4 sm:$0xff]   ;;  %v670_v2 = vld [vmem:[%s905_s1 + $0xf0] ss:$8 sps:$4 sm:$0xff]   ;;  %v90_v10 = vsub.s32 0, %v89_v9  ;;  %v94_v12 = vsub.s32 1, %v89_v9 }
  0x17   :  { %429 = vmatpush1.bf16.msra.mxu1 %v610_v22  ;;  %v668_v1 = vld [vmem:[%s905_s1 + $0x1f4] ss:$8 sps:$4 sm:$0xff]   ;;  %v671_v3 = vld [vmem:[%s905_s1 + $0x1f0] ss:$8 sps:$4 sm:$0xff]   ;;  %v86_v11 = vld [vmem:[%s907_s2] sm:$0x3] }
  0x18   :  { %470 = vmatpush1.bf16.msra.mxu0 %v611_v23  ;;  %430 = vmatprep.subr.bf16.mxu1 %v612_v24  ;;  %v16_v5 = vld [vmem:[%s906_s0 + $0x10] sm:$0xff]  ;;  %v91_v13 = vrot.slane %v86_v11, %v90_v10  ;;  %v95_v14 = vrot.slane %v86_v11, %v94_v12 }
  0x19   :  { %471 = vmatprep.subr.bf16.mxu0 %v614_v25  ;;  %v20_v7 = vpack.c.bf16 %v16_v5, %v16_v5 }
  0x1b   :  { %431 = vmatpush1.bf16.msra.mxu1 %v616_v26 }
  0x1c   :  { %472 = vmatpush1.bf16.msra.mxu0 %v617_v27  ;;  %432 = vmatprep.subr.bf16.mxu1 %v618_v28 }
  0x1d   :  { %473 = vmatprep.subr.bf16.mxu0 %v620_v29 }
  0x1f   :  { %433 = vmatpush1.bf16.msra.mxu1 %v622_v30 }
  0x20   :  { %474 = vmatpush1.bf16.msra.mxu0 %v623_v31  ;;  %434 = vmatprep.subr.bf16.mxu1 %v624_v32 }
  0x21   :  { %475 = vmatprep.subr.bf16.mxu0 %v626_v33 }
  0x23   :  { %435 = vmatpush1.bf16.msra.mxu1 %v628_v34 }
  0x24   :  { %476 = vmatpush1.bf16.msra.mxu0 %v629_v35  ;;  %436 = vmatprep.subr.bf16.mxu1 %v630_v36 }
  0x25   :  { %477 = vmatprep.subr.bf16.mxu0 %v632_v37 }
  0x27   :  { %437 = vmatpush1.bf16.msra.mxu1 %v634_v38 }
  0x28   :  { %478 = vmatpush1.bf16.msra.mxu0 %v635_v39  ;;  %438 = vmatprep.subr.bf16.mxu1 %v636_v40 }
  0x29   :  { %479 = vmatprep.subr.bf16.mxu0 %v638_v41 }
  0x2b   :  { %439 = vmatpush1.bf16.msra.mxu1 %v640_v42 }
  0x2c   :  { %480 = vmatpush1.bf16.msra.mxu0 %v641_v43  ;;  %440 = vmatprep.subr.bf16.mxu1 %v642_v44 }
  0x2d   :  { %481 = vmatprep.subr.bf16.mxu0 %v644_v45 }
  0x2f   :  { %441 = vmatpush1.bf16.msra.mxu1 %v646_v49 }
  0x30   :  { %482 = vmatpush1.bf16.msra.mxu0 %v647_v50  ;;  %442 = vmatprep.subr.bf16.mxu1 %v648_v52 }
  0x31   :  { %483 = vmatprep.subr.bf16.mxu0 %v650_v53 }
  0x33   :  { %443 = vmatpush1.bf16.msra.mxu1 %v652_v54 }
  0x34   :  { %484 = vmatpush1.bf16.msra.mxu0 %v653_v55  ;;  %444 = vmatprep.subr.bf16.mxu1 %v654_v56 }
  0x35   :  { %485 = vmatprep.subr.bf16.mxu0 %v656_v57 }
  0x37   :  { %445 = vmatpush1.bf16.msra.mxu1 %v658_v58 }
  0x38   :  { %486 = vmatpush1.bf16.msra.mxu0 %v659_v59  ;;  %446 = vmatprep.subr.bf16.mxu1 %v660_v60 }
  0x39   :  { %487 = vmatprep.subr.bf16.mxu0 %v662_v61 }
  0x3b   :  { %447 = vmatpush1.bf16.msra.mxu1 %v664_v62 }
  0x3c   :  { %488 = vmatpush1.bf16.msra.mxu0 %v665_v63  ;;  %448 = vmatprep.subr.bf16.mxu1 %v666_v0 }
  0x3d   :  { %489 = vmatprep.subr.bf16.mxu0 %v668_v1 }
  0x3f   :  { %449 = vmatpush1.bf16.msra.mxu1 %v670_v2 }
  0x40   :  { %490 = vmatpush1.bf16.msra.mxu0 %v671_v3 }
  0x42   :  { %451 = vmatmul.mubr.bf16.vlgmr.msra.gmra.mrb[0].mxu1 %v18_v6 }
  0x43   :  { %492 = vmatmul.mubr.bf16.vlgmr.msra.gmra.mrb[0].mxu0 %v20_v7 }
 0x115   :  { %v452_v15 = vpop.f32.mrb[0].mxu1 }
 0x116   :  { %v493_v16 = vpop.f32.mrb[0].mxu0  ;;  %v453_v17 = vadd.f32 %v452_v15, %v91_v13  ;;  %v454_v18 = vpop.f32.mrb[1].mxu1 }
 0x117   :  { %v495_v19 = vpop.f32.mrb[1].mxu0  ;;  %v455_v20 = vadd.f32 %v454_v18, %v95_v14  ;;  %v456_v21 = vpop.f32.mrb[2].mxu1 }
 0x118   :  { %v497_v22 = vpop.f32.mrb[2].mxu0  ;;  %v494_v23 = vadd.f32 %v493_v16, %v453_v17  ;;  %v457_v24 = vpop.f32.mrb[3].mxu1 }
 0x119   :  { %v498_v25 = vpop.f32.mrb[3].mxu0  ;;  %v496_v26 = vadd.f32 %v495_v19, %v455_v20 }
 0x11a   :  { %v500_v27 = vmax.f32 %v494_v23, 0.0 }
 0x11b   :  { %v501_v28 = vmax.f32 %v496_v26, 0.0 }
 0x11c   :  { %502 = vst [vmem:[%s908_s3] sm:$0xff] %v500_v27 }
 0x11d   :  { %503 = vst [vmem:[%s908_s3 + $0x8] sm:$0xff] %v501_v28 }

// kernel: dgcnn_forward.16
= control target key start
LH: loop header
LB: loop body
LE: loop exit
PB: predicated region body
PF: predicated region fallthrough
CT: control target
= control target key end

     0   :  { %vm194_vm0 = vcmask 80896   ;;  %s335_s1 = inlined_call_operand.vmem [shape: bf16[256,10], index: 1, kind: input, shape index: {}]   ;;  %s336_s0 = inlined_call_operand.vmem [shape: f32[8,256], index: 0, kind: input, shape index: {}]   ;;  %s337_s2 = inlined_call_operand.vmem [shape: f32[1,10], index: 2, kind: input, shape index: {}]   ;;  %s338_s3 = inlined_call_operand.vmem [shape: f32[8,10], index: 3, kind: output, shape index: {}]  }
   0x1   :  { %v239_v0 = vld [vmem:[%s335_s1 + $0x40] sm:$0xff]   ;;  %v241_v2 = vld [vmem:[%s335_s1 + $0x48] sm:$0xff]   ;;  %v243_v4 = vld [vmem:[%s335_s1 + $0x50] sm:$0xff]  }
   0x2   :  { %v240_v1 = vld [vmem:[%s335_s1] sm:$0xff]   ;;  %217 = vmatprep.subr.bf16.mxu0 %v239_v0  ;;  %v242_v3 = vld [vmem:[%s335_s1 + $0x8] sm:$0xff]   ;;  %v244_v5 = vld [vmem:[%s335_s1 + $0x10] sm:$0xff]  }
   0x3   :  { %218 = vmatpush3.bf16.msra.mxu0 %v240_v1  ;;  %v245_v6 = vld [vmem:[%s335_s1 + $0x58] sm:$0xff]   ;;  %v247_v8 = vld [vmem:[%s335_s1 + $0x60] sm:$0xff]   ;;  %v249_v10 = vld [vmem:[%s335_s1 + $0x68] sm:$0xff]  }
   0x4   :  { %219 = vmatprep.subr.bf16.mxu0 %v241_v2  ;;  %v246_v7 = vld [vmem:[%s335_s1 + $0x18] sm:$0xff]   ;;  %v248_v9 = vld [vmem:[%s335_s1 + $0x20] sm:$0xff]   ;;  %v16_v11 = vld [vmem:[%s336_s0 + $0x8] sm:$0xff] }
   0x5   :  { %v18_v12 = vpack.c.bf16 %v16_v11, %v16_v11  ;;  %v250_v13 = vld [vmem:[%s335_s1 + $0x28] sm:$0xff]   ;;  %v251_v14 = vld [vmem:[%s335_s1 + $0x70] sm:$0xff]   ;;  %v253_v16 = vld [vmem:[%s335_s1 + $0x78] sm:$0xff]  }
   0x6   :  { %v252_v15 = vld [vmem:[%s335_s1 + $0x30] sm:$0xff]   ;;  %v254_v17 = vld [vmem:[%s335_s1 + $0x38] sm:$0xff]   ;;  %v15_v18 = vld [vmem:[%s336_s0] sm:$0xff] }
   0x7   :  { %220 = vmatpush3.bf16.msra.mxu0 %v242_v3  ;;  %186 = vmatprep.mubr.bf16.mxu0 %v18_v12  ;;  %v17_v19 = vpack.c.bf16 %v15_v18, %v15_v18  ;;  %v200_v21 = vld [vmem:[%s337_s2] ss:$0 sm:$0xff] }
   0x8   :  { %221 = vmatprep.subr.bf16.mxu0 %v243_v4 }
   0xb   :  { %222 = vmatpush3.bf16.msra.mxu0 %v244_v5 }
   0xc   :  { %223 = vmatprep.subr.bf16.mxu0 %v245_v6 }
   0xf   :  { %224 = vmatpush3.bf16.msra.mxu0 %v246_v7 }
  0x10   :  { %225 = vmatprep.subr.bf16.mxu0 %v247_v8 }
  0x13   :  { %226 = vmatpush3.bf16.msra.mxu0 %v248_v9 }
  0x14   :  { %227 = vmatprep.subr.bf16.mxu0 %v249_v10 }
  0x17   :  { %228 = vmatpush3.bf16.msra.mxu0 %v250_v13 }
  0x18   :  { %229 = vmatprep.subr.bf16.mxu0 %v251_v14 }
  0x1b   :  { %230 = vmatpush3.bf16.msra.mxu0 %v252_v15 }
  0x1c   :  { %231 = vmatprep.subr.bf16.mxu0 %v253_v16 }
  0x1f   :  { %232 = vmatpush3.bf16.msra.mxu0 %v254_v17 }
  0x22   :  { %187 = vmatmul.mubr.bf16.vlgmr.msra.gmra.mrb[0].mxu0 %v17_v19 }
  0xf5   :  { %v233_v20 = vpop.f32.mrb[0].mxu0 }
  0xf6   :  { %v234_v22 = vpop.f32.mrb[1].mxu0 }
  0xf7   :  { %v235_v23 = vadd.f32 %v234_v22, %v233_v20  ;;  %v236_v24 = vpop.f32.mrb[2].mxu0 }
  0xf8   :  { %v237_v25 = vpop.f32.mrb[3].mxu0 }
  0xf9   :  { %v189_v26 = vadd.f32 %v235_v23, %v200_v21 }
  0xfb   :  { %195 = vst.msk [vmem:[%s338_s3] sm:$0xff] %vm194_vm0, %v189_v26 }

// kernel: dgcnn_forward.17
= control target key start
LH: loop header
LB: loop body
LE: loop exit
PB: predicated region body
PF: predicated region fallthrough
CT: control target
= control target key end

     0   :  { %vm10_vm0 = vcmask 74752   ;;  %s96_s0 = inlined_call_operand.vmem [shape: f32[2,10], index: 0, kind: input, shape index: {}]   ;;  %s97_s1 = inlined_call_operand.hbm [shape: f32[2,10], index: 1, kind: output, shape index: {}]  }
   0x1   :  { %v9_v0 = vld [vmem:[%s96_s0] sm:$0x3] }
   0x2   :  { %6 = vsyncpa [#allocation3], 0  ;;  %v11_v1 = vsel %vm10_vm0, %v9_v0, -inf  ;;  %s67_s8 = smov [#allocation2]  }
   0x3   :  { %12 = vmax.xlane.f32.xlu0 %v11_v1  ;;  %s30_s9 = sshll.u32 %s67_s8, 4  ;;  %s31_s9 = int_to_ptr.vmem [resolvable:$true] %s30_s9 }
   0x4   :  { %s43_s0 = scalar_lea.vmem %s31_s9, 32  ;;  %p48_p1 = scmp.lt.s32.totalorder %s31_s9, %s31_s9 }
   0x5   :  { %p44_p0 = scmp.ne.s32.totalorder %s31_s9, %s43_s0  ;;  %p49_p2 = scmp.lt.s32.totalorder %s43_s0, %s43_s0 }
   0x7   :  { %p50_p3 = por %p49_p2, %p48_p1 }
   0x9   :  { %p51_p4 = pnand %p50_p3, %p44_p0 }
  0x90   :  { %v13_v2 = vpop.xlane.xlu0 %12 }
  0x91   :  { %v14_v3 = vsub.f32 %v9_v0, %v13_v2 }
  0x93   :  { %v15_v4 = vmul.f32 1.442695, %v14_v3 }
  0x95   :  { %39 = vpow2.f32 %v15_v4 }
  0x9f   :  { %v40_v5 = vpop.eup %39 }
  0xa0   :  { %v17_v6 = vsel %vm10_vm0, %v40_v5, 0.0 }
  0xa1   :  { %18 = vadd.xlane.f32.xlu0 %v17_v6 }
 0x12e   :  { %v19_v7 = vpop.xlane.xlu0 %18 }
 0x12f   :  { %41 = vlog2.f32 %v19_v7 }
 0x139   :  { %v42_v8 = vpop.eup %41 }
 0x13a   :  { %v21_v9 = vmul.f32 0.6931472, %v42_v8 }
 0x13c   :  { %v22_v10 = vsub.f32 %v14_v3, %v21_v9 }
 0x13e   :  { %23 = vst.msk [vmem:[#allocation2] sm:$0x3] %vm10_vm0, %v22_v10 }
 0x13f   :  { %54 = shalt.err (!%p51_p4)
}
 0x140   :  { %s55_s12 = scalar_lea.hbm %s97_s1, 32 }
 0x141   :  { %p56_p5 = scmp.ne.s32.totalorder %s97_s1, %s55_s12  ;;  %p59_p6 = scmp.lt.u32.totalorder %s55_s12, %s97_s1 }
 0x143   :  { %p61_p7 = pnand %p59_p6, %p56_p5 }
 0x145   :  { %64 = shalt.err (!%p61_p7)
}
 0x146   :  { %33 = dma.vmem_to_hbm [thread:$0]  %s31_s9, 32, %s97_s1, [#allocation3]  }
 0x147   :  { %65 = dma.done.wait [#allocation3], 32  }
 0x148   :  { %66 = vsyncadd [#allocation3], 4294967264 }
 0x149   :  { %37 = vsyncpa [#allocation3], 1 }

// kernel: dgcnn_forward.14
= control target key start
LH: loop header
LB: loop body
LE: loop exit
PB: predicated region body
PF: predicated region fallthrough
CT: control target
= control target key end

     0   :  { %s3423_s1 = inlined_call_operand.vmem [shape: bf16[1024,512], index: 1, kind: input, shape index: {}]   ;;  %s3424_s0 = inlined_call_operand.vmem [shape: f32[8,1024], index: 0, kind: input, shape index: {}]   ;;  %s3425_s2 = inlined_call_operand.vmem [shape: f32[1,512], index: 2, kind: input, shape index: {}]   ;;  %s3426_s3 = inlined_call_operand.vmem [shape: f32[8,512], index: 3, kind: output, shape index: {}]  }
   0x1   :  { %v2212_v0 = vld [vmem:[%s3423_s1 + $0x4] ss:$16 sps:$4 sm:$0xff]   ;;  %v2214_v1 = vld [vmem:[%s3423_s1 + $0xc] ss:$16 sps:$4 sm:$0xff]   ;;  %v2216_v2 = vld [vmem:[%s3423_s1] ss:$16 sps:$4 sm:$0xff]  }
   0x2   :  { %1588 = vmatprep.subr.bf16.mxu0 %v2212_v0  ;;  %v2217_v3 = vld [vmem:[%s3423_s1 + $0x8] ss:$16 sps:$4 sm:$0xff]   ;;  %1752 = vmatprep.subr.bf16.mxu1 %v2214_v1  ;;  %v2218_v4 = vld [vmem:[%s3423_s1 + $0x24] ss:$16 sps:$4 sm:$0xff]   ;;  %v2220_v5 = vld [vmem:[%s3423_s1 + $0x2c] ss:$16 sps:$4 sm:$0xff]  }
   0x3   :  { %1589 = vmatpush1.bf16.msra.mxu0 %v2216_v2  ;;  %1753 = vmatpush1.bf16.msra.mxu1 %v2217_v3  ;;  %v2222_v6 = vld [vmem:[%s3423_s1 + $0x20] ss:$16 sps:$4 sm:$0xff]   ;;  %v2223_v7 = vld [vmem:[%s3423_s1 + $0x28] ss:$16 sps:$4 sm:$0xff]   ;;  %v2224_v8 = vld [vmem:[%s3423_s1 + $0x44] ss:$16 sps:$4 sm:$0xff]  }
   0x4   :  { %1590 = vmatprep.subr.bf16.mxu0 %v2218_v4  ;;  %1754 = vmatprep.subr.bf16.mxu1 %v2220_v5  ;;  %v2226_v9 = vld [vmem:[%s3423_s1 + $0x4c] ss:$16 sps:$4 sm:$0xff]   ;;  %v2228_v10 = vld [vmem:[%s3423_s1 + $0x40] ss:$16 sps:$4 sm:$0xff]   ;;  %v2229_v11 = vld [vmem:[%s3423_s1 + $0x48] ss:$16 sps:$4 sm:$0xff]  }
   0x5   :  { %v2230_v12 = vld [vmem:[%s3423_s1 + $0x64] ss:$16 sps:$4 sm:$0xff]   ;;  %v2232_v13 = vld [vmem:[%s3423_s1 + $0x6c] ss:$16 sps:$4 sm:$0xff]   ;;  %v2234_v14 = vld [vmem:[%s3423_s1 + $0x60] ss:$16 sps:$4 sm:$0xff]  }
   0x6   :  { %v2235_v15 = vld [vmem:[%s3423_s1 + $0x68] ss:$16 sps:$4 sm:$0xff]   ;;  %v2236_v16 = vld [vmem:[%s3423_s1 + $0x84] ss:$16 sps:$4 sm:$0xff]   ;;  %v2238_v17 = vld [vmem:[%s3423_s1 + $0x8c] ss:$16 sps:$4 sm:$0xff]  }
   0x7   :  { %1591 = vmatpush1.bf16.msra.mxu0 %v2222_v6  ;;  %1755 = vmatpush1.bf16.msra.mxu1 %v2223_v7  ;;  %v2240_v18 = vld [vmem:[%s3423_s1 + $0x80] ss:$16 sps:$4 sm:$0xff]   ;;  %v2241_v19 = vld [vmem:[%s3423_s1 + $0x88] ss:$16 sps:$4 sm:$0xff]   ;;  %v2242_v20 = vld [vmem:[%s3423_s1 + $0xa4] ss:$16 sps:$4 sm:$0xff]  }
   0x8   :  { %1592 = vmatprep.subr.bf16.mxu0 %v2224_v8  ;;  %1756 = vmatprep.subr.bf16.mxu1 %v2226_v9  ;;  %v2244_v21 = vld [vmem:[%s3423_s1 + $0xac] ss:$16 sps:$4 sm:$0xff]   ;;  %v2246_v22 = vld [vmem:[%s3423_s1 + $0xa0] ss:$16 sps:$4 sm:$0xff]   ;;  %v2247_v23 = vld [vmem:[%s3423_s1 + $0xa8] ss:$16 sps:$4 sm:$0xff]  }
   0x9   :  { %v2248_v24 = vld [vmem:[%s3423_s1 + $0xc4] ss:$16 sps:$4 sm:$0xff]   ;;  %v2250_v25 = vld [vmem:[%s3423_s1 + $0xcc] ss:$16 sps:$4 sm:$0xff]   ;;  %v2252_v26 = vld [vmem:[%s3423_s1 + $0xc0] ss:$16 sps:$4 sm:$0xff]  }
   0xa   :  { %v2253_v27 = vld [vmem:[%s3423_s1 + $0xc8] ss:$16 sps:$4 sm:$0xff]   ;;  %v2254_v28 = vld [vmem:[%s3423_s1 + $0xe4] ss:$16 sps:$4 sm:$0xff]   ;;  %v2256_v29 = vld [vmem:[%s3423_s1 + $0xec] ss:$16 sps:$4 sm:$0xff]  }
   0xb   :  { %1593 = vmatpush1.bf16.msra.mxu0 %v2228_v10  ;;  %1757 = vmatpush1.bf16.msra.mxu1 %v2229_v11  ;;  %v2258_v30 = vld [vmem:[%s3423_s1 + $0xe0] ss:$16 sps:$4 sm:$0xff]   ;;  %v2259_v31 = vld [vmem:[%s3423_s1 + $0xe8] ss:$16 sps:$4 sm:$0xff]   ;;  %v2260_v32 = vld [vmem:[%s3423_s1 + $0x104] ss:$16 sps:$4 sm:$0xff]  }
   0xc   :  { %1594 = vmatprep.subr.bf16.mxu0 %v2230_v12  ;;  %1758 = vmatprep.subr.bf16.mxu1 %v2232_v13  ;;  %v2262_v33 = vld [vmem:[%s3423_s1 + $0x10c] ss:$16 sps:$4 sm:$0xff]   ;;  %v2264_v34 = vld [vmem:[%s3423_s1 + $0x100] ss:$16 sps:$4 sm:$0xff]   ;;  %v2265_v35 = vld [vmem:[%s3423_s1 + $0x108] ss:$16 sps:$4 sm:$0xff]  }
   0xd   :  { %v2266_v36 = vld [vmem:[%s3423_s1 + $0x124] ss:$16 sps:$4 sm:$0xff]   ;;  %v2268_v37 = vld [vmem:[%s3423_s1 + $0x12c] ss:$16 sps:$4 sm:$0xff]   ;;  %v2270_v38 = vld [vmem:[%s3423_s1 + $0x120] ss:$16 sps:$4 sm:$0xff]  }
   0xe   :  { %v2271_v39 = vld [vmem:[%s3423_s1 + $0x128] ss:$16 sps:$4 sm:$0xff]   ;;  %v2272_v40 = vld [vmem:[%s3423_s1 + $0x144] ss:$16 sps:$4 sm:$0xff]   ;;  %v2274_v41 = vld [vmem:[%s3423_s1 + $0x14c] ss:$16 sps:$4 sm:$0xff]  }
   0xf   :  { %1595 = vmatpush1.bf16.msra.mxu0 %v2234_v14  ;;  %1759 = vmatpush1.bf16.msra.mxu1 %v2235_v15  ;;  %v2276_v42 = vld [vmem:[%s3423_s1 + $0x140] ss:$16 sps:$4 sm:$0xff]   ;;  %v2277_v43 = vld [vmem:[%s3423_s1 + $0x148] ss:$16 sps:$4 sm:$0xff]   ;;  %v2278_v44 = vld [vmem:[%s3423_s1 + $0x164] ss:$16 sps:$4 sm:$0xff]  }
  0x10   :  { %1596 = vmatprep.subr.bf16.mxu0 %v2236_v16  ;;  %1760 = vmatprep.subr.bf16.mxu1 %v2238_v17  ;;  %v2280_v45 = vld [vmem:[%s3423_s1 + $0x16c] ss:$16 sps:$4 sm:$0xff]   ;;  %v2282_v47 = vld [vmem:[%s3423_s1 + $0x160] ss:$16 sps:$4 sm:$0xff]   ;;  %v2283_v49 = vld [vmem:[%s3423_s1 + $0x168] ss:$16 sps:$4 sm:$0xff]  }
  0x11   :  { %v15_v46 = vld [vmem:[%s3424_s0 + $0x8] sm:$0xff]  ;;  %v2284_v50 = vld [vmem:[%s3423_s1 + $0x184] ss:$16 sps:$4 sm:$0xff]   ;;  %v2288_v52 = vld [vmem:[%s3423_s1 + $0x180] ss:$16 sps:$4 sm:$0xff]  }
  0x12   :  { %v23_v48 = vpack.c.bf16 %v15_v46, %v15_v46  ;;  %v2286_v51 = vld [vmem:[%s3423_s1 + $0x18c] ss:$16 sps:$4 sm:$0xff]   ;;  %v2289_v53 = vld [vmem:[%s3423_s1 + $0x188] ss:$16 sps:$4 sm:$0xff]   ;;  %v2290_v54 = vld [vmem:[%s3423_s1 + $0x1a4] ss:$16 sps:$4 sm:$0xff]  }
  0x13   :  { %1597 = vmatpush1.bf16.msra.mxu0 %v2240_v18  ;;  %1761 = vmatpush1.bf16.msra.mxu1 %v2241_v19  ;;  %v2292_v55 = vld [vmem:[%s3423_s1 + $0x1ac] ss:$16 sps:$4 sm:$0xff]   ;;  %v2294_v56 = vld [vmem:[%s3423_s1 + $0x1a0] ss:$16 sps:$4 sm:$0xff]   ;;  %v2295_v57 = vld [vmem:[%s3423_s1 + $0x1a8] ss:$16 sps:$4 sm:$0xff]  }
  0x14   :  { %1598 = vmatprep.subr.bf16.mxu0 %v2242_v20  ;;  %1762 = vmatprep.subr.bf16.mxu1 %v2244_v21  ;;  %v2296_v58 = vld [vmem:[%s3423_s1 + $0x1c4] ss:$16 sps:$4 sm:$0xff]   ;;  %v2298_v59 = vld [vmem:[%s3423_s1 + $0x1cc] ss:$16 sps:$4 sm:$0xff]   ;;  %v2300_v60 = vld [vmem:[%s3423_s1 + $0x1c0] ss:$16 sps:$4 sm:$0xff]  }
  0x15   :  { %1620 = vmatprep.mubr.bf16.mxu0 %v23_v48  ;;  %1784 = vmatprep.mubr.bf16.mxu1 %v23_v48  ;;  %v2301_v61 = vld [vmem:[%s3423_s1 + $0x1c8] ss:$16 sps:$4 sm:$0xff]   ;;  %v2302_v62 = vld [vmem:[%s3423_s1 + $0x1e4] ss:$16 sps:$4 sm:$0xff]   ;;  %v2304_v63 = vld [vmem:[%s3423_s1 + $0x1ec] ss:$16 sps:$4 sm:$0xff]  }
  0x16   :  { %v2306_v0 = vld [vmem:[%s3423_s1 + $0x1e0] ss:$16 sps:$4 sm:$0xff]   ;;  %v2307_v1 = vld [vmem:[%s3423_s1 + $0x1e8] ss:$16 sps:$4 sm:$0xff]   ;;  %v2310_v3 = vld [vmem:[%s3423_s1 + $0x204] ss:$16 sps:$4 sm:$0xff]  }
  0x17   :  { %1599 = vmatpush1.bf16.msra.mxu0 %v2246_v22  ;;  %1763 = vmatpush1.bf16.msra.mxu1 %v2247_v23  ;;  %v14_v2 = vld [vmem:[%s3424_s0] sm:$0xff]  ;;  %v2313_v4 = vld [vmem:[%s3423_s1 + $0x20c] ss:$16 sps:$4 sm:$0xff]   ;;  %v2311_v7 = vld [vmem:[%s3423_s1 + $0x208] ss:$16 sps:$4 sm:$0xff]  }
  0x18   :  { %1600 = vmatprep.subr.bf16.mxu0 %v2248_v24  ;;  %1764 = vmatprep.subr.bf16.mxu1 %v2250_v25  ;;  %v22_v5 = vpack.c.bf16 %v14_v2, %v14_v2  ;;  %v2308_v6 = vld [vmem:[%s3423_s1 + $0x200] ss:$16 sps:$4 sm:$0xff]   ;;  %v2316_v8 = vld [vmem:[%s3423_s1 + $0x224] ss:$16 sps:$4 sm:$0xff]   ;;  %v2319_v9 = vld [vmem:[%s3423_s1 + $0x22c] ss:$16 sps:$4 sm:$0xff]  }
  0x19   :  { %v2314_v10 = vld [vmem:[%s3423_s1 + $0x220] ss:$16 sps:$4 sm:$0xff]   ;;  %v2317_v11 = vld [vmem:[%s3423_s1 + $0x228] ss:$16 sps:$4 sm:$0xff]   ;;  %v2322_v12 = vld [vmem:[%s3423_s1 + $0x244] ss:$16 sps:$4 sm:$0xff]  }
  0x1a   :  { %v2325_v13 = vld [vmem:[%s3423_s1 + $0x24c] ss:$16 sps:$4 sm:$0xff]   ;;  %v2320_v14 = vld [vmem:[%s3423_s1 + $0x240] ss:$16 sps:$4 sm:$0xff]   ;;  %v2323_v15 = vld [vmem:[%s3423_s1 + $0x248] ss:$16 sps:$4 sm:$0xff]  }
  0x1b   :  { %1601 = vmatpush1.bf16.msra.mxu0 %v2252_v26  ;;  %1765 = vmatpush1.bf16.msra.mxu1 %v2253_v27  ;;  %v2328_v16 = vld [vmem:[%s3423_s1 + $0x264] ss:$16 sps:$4 sm:$0xff]   ;;  %v2331_v17 = vld [vmem:[%s3423_s1 + $0x26c] ss:$16 sps:$4 sm:$0xff]   ;;  %v2326_v18 = vld [vmem:[%s3423_s1 + $0x260] ss:$16 sps:$4 sm:$0xff]  }
  0x1c   :  { %1602 = vmatprep.subr.bf16.mxu0 %v2254_v28  ;;  %1766 = vmatprep.subr.bf16.mxu1 %v2256_v29  ;;  %v2329_v19 = vld [vmem:[%s3423_s1 + $0x268] ss:$16 sps:$4 sm:$0xff]   ;;  %v2334_v20 = vld [vmem:[%s3423_s1 + $0x284] ss:$16 sps:$4 sm:$0xff]   ;;  %v2337_v21 = vld [vmem:[%s3423_s1 + $0x28c] ss:$16 sps:$4 sm:$0xff]  }
  0x1d   :  { %v2332_v22 = vld [vmem:[%s3423_s1 + $0x280] ss:$16 sps:$4 sm:$0xff]   ;;  %v2335_v23 = vld [vmem:[%s3423_s1 + $0x288] ss:$16 sps:$4 sm:$0xff]   ;;  %v2340_v24 = vld [vmem:[%s3423_s1 + $0x2a4] ss:$16 sps:$4 sm:$0xff]  }
  0x1e   :  { %v2343_v25 = vld [vmem:[%s3423_s1 + $0x2ac] ss:$16 sps:$4 sm:$0xff]   ;;  %v2338_v26 = vld [vmem:[%s3423_s1 + $0x2a0] ss:$16 sps:$4 sm:$0xff]   ;;  %v2341_v27 = vld [vmem:[%s3423_s1 + $0x2a8] ss:$16 sps:$4 sm:$0xff]  }
  0x1f   :  { %1603 = vmatpush1.bf16.msra.mxu0 %v2258_v30  ;;  %1767 = vmatpush1.bf16.msra.mxu1 %v2259_v31  ;;  %v2346_v28 = vld [vmem:[%s3423_s1 + $0x2c4] ss:$16 sps:$4 sm:$0xff]   ;;  %v2349_v29 = vld [vmem:[%s3423_s1 + $0x2cc] ss:$16 sps:$4 sm:$0xff]   ;;  %v2344_v31 = vld [vmem:[%s3423_s1 + $0x2c0] ss:$16 sps:$4 sm:$0xff]  }
  0x20   :  { %1604 = vmatprep.subr.bf16.mxu0 %v2260_v32  ;;  %1768 = vmatprep.subr.bf16.mxu1 %v2262_v33  ;;  %v17_v30 = vld [vmem:[%s3424_s0 + $0x18] sm:$0xff]  ;;  %v2370_v46 = vld [vmem:[%s3423_s1 + $0x344] ss:$16 sps:$4 sm:$0xff]   ;;  %v2368_v48 = vld [vmem:[%s3423_s1 + $0x340] ss:$16 sps:$4 sm:$0xff]  }
  0x21   :  { %v25_v32 = vpack.c.bf16 %v17_v30, %v17_v30  ;;  %v2347_v33 = vld [vmem:[%s3423_s1 + $0x2c8] ss:$16 sps:$4 sm:$0xff]   ;;  %v2400_v2 = vld [vmem:[%s3423_s1 + $0x3e4] ss:$16 sps:$4 sm:$0xff]  }
  0x22   :  { %v2436_v30 = vld [vmem:[%s3423_s1 + $0x4a4] ss:$16 sps:$4 sm:$0xff]  }
  0x23   :  { %1605 = vmatpush1.bf16.msra.mxu0 %v2264_v34  ;;  %1769 = vmatpush1.bf16.msra.mxu1 %v2265_v35  ;;  %v2352_v34 = vld [vmem:[%s3423_s1 + $0x2e4] ss:$16 sps:$4 sm:$0xff]   ;;  %v2355_v35 = vld [vmem:[%s3423_s1 + $0x2ec] ss:$16 sps:$4 sm:$0xff]  }
  0x24   :  { %1606 = vmatprep.subr.bf16.mxu0 %v2266_v36  ;;  %1770 = vmatprep.subr.bf16.mxu1 %v2268_v37  ;;  %v2350_v36 = vld [vmem:[%s3423_s1 + $0x2e0] ss:$16 sps:$4 sm:$0xff]   ;;  %v2353_v37 = vld [vmem:[%s3423_s1 + $0x2e8] ss:$16 sps:$4 sm:$0xff]  }
  0x27   :  { %1607 = vmatpush1.bf16.msra.mxu0 %v2270_v38  ;;  %1771 = vmatpush1.bf16.msra.mxu1 %v2271_v39  ;;  %v2358_v38 = vld [vmem:[%s3423_s1 + $0x304] ss:$16 sps:$4 sm:$0xff]   ;;  %v2361_v39 = vld [vmem:[%s3423_s1 + $0x30c] ss:$16 sps:$4 sm:$0xff]  }
  0x28   :  { %1608 = vmatprep.subr.bf16.mxu0 %v2272_v40  ;;  %1772 = vmatprep.subr.bf16.mxu1 %v2274_v41  ;;  %v2356_v40 = vld [vmem:[%s3423_s1 + $0x300] ss:$16 sps:$4 sm:$0xff]   ;;  %v2359_v41 = vld [vmem:[%s3423_s1 + $0x308] ss:$16 sps:$4 sm:$0xff]  }
  0x2b   :  { %1609 = vmatpush1.bf16.msra.mxu0 %v2276_v42  ;;  %1773 = vmatpush1.bf16.msra.mxu1 %v2277_v43  ;;  %v2364_v42 = vld [vmem:[%s3423_s1 + $0x324] ss:$16 sps:$4 sm:$0xff]   ;;  %v2367_v43 = vld [vmem:[%s3423_s1 + $0x32c] ss:$16 sps:$4 sm:$0xff]  }
  0x2c   :  { %1610 = vmatprep.subr.bf16.mxu0 %v2278_v44  ;;  %1774 = vmatprep.subr.bf16.mxu1 %v2280_v45  ;;  %v2362_v44 = vld [vmem:[%s3423_s1 + $0x320] ss:$16 sps:$4 sm:$0xff]   ;;  %v2365_v45 = vld [vmem:[%s3423_s1 + $0x328] ss:$16 sps:$4 sm:$0xff]  }
  0x2f   :  { %1611 = vmatpush1.bf16.msra.mxu0 %v2282_v47  ;;  %1775 = vmatpush1.bf16.msra.mxu1 %v2283_v49  ;;  %v2373_v47 = vld [vmem:[%s3423_s1 + $0x34c] ss:$16 sps:$4 sm:$0xff]   ;;  %v2371_v49 = vld [vmem:[%s3423_s1 + $0x348] ss:$16 sps:$4 sm:$0xff]  }
  0x30   :  { %1612 = vmatprep.subr.bf16.mxu0 %v2284_v50  ;;  %1776 = vmatprep.subr.bf16.mxu1 %v2286_v51  ;;  %v2376_v50 = vld [vmem:[%s3423_s1 + $0x364] ss:$16 sps:$4 sm:$0xff]   ;;  %v2379_v51 = vld [vmem:[%s3423_s1 + $0x36c] ss:$16 sps:$4 sm:$0xff]  }
  0x33   :  { %1613 = vmatpush1.bf16.msra.mxu0 %v2288_v52  ;;  %1777 = vmatpush1.bf16.msra.mxu1 %v2289_v53  ;;  %v2374_v52 = vld [vmem:[%s3423_s1 + $0x360] ss:$16 sps:$4 sm:$0xff]   ;;  %v2377_v53 = vld [vmem:[%s3423_s1 + $0x368] ss:$16 sps:$4 sm:$0xff]  }
  0x34   :  { %1614 = vmatprep.subr.bf16.mxu0 %v2290_v54  ;;  %1778 = vmatprep.subr.bf16.mxu1 %v2292_v55  ;;  %v2382_v54 = vld [vmem:[%s3423_s1 + $0x384] ss:$16 sps:$4 sm:$0xff]   ;;  %v2385_v55 = vld [vmem:[%s3423_s1 + $0x38c] ss:$16 sps:$4 sm:$0xff]  }
  0x37   :  { %1615 = vmatpush1.bf16.msra.mxu0 %v2294_v56  ;;  %1779 = vmatpush1.bf16.msra.mxu1 %v2295_v57  ;;  %v2380_v56 = vld [vmem:[%s3423_s1 + $0x380] ss:$16 sps:$4 sm:$0xff]   ;;  %v2383_v57 = vld [vmem:[%s3423_s1 + $0x388] ss:$16 sps:$4 sm:$0xff]  }
  0x38   :  { %1616 = vmatprep.subr.bf16.mxu0 %v2296_v58  ;;  %1780 = vmatprep.subr.bf16.mxu1 %v2298_v59  ;;  %v2388_v58 = vld [vmem:[%s3423_s1 + $0x3a4] ss:$16 sps:$4 sm:$0xff]   ;;  %v2391_v59 = vld [vmem:[%s3423_s1 + $0x3ac] ss:$16 sps:$4 sm:$0xff]  }
  0x3b   :  { %1617 = vmatpush1.bf16.msra.mxu0 %v2300_v60  ;;  %1781 = vmatpush1.bf16.msra.mxu1 %v2301_v61  ;;  %v2386_v60 = vld [vmem:[%s3423_s1 + $0x3a0] ss:$16 sps:$4 sm:$0xff]   ;;  %v2389_v61 = vld [vmem:[%s3423_s1 + $0x3a8] ss:$16 sps:$4 sm:$0xff]  }
  0x3c   :  { %1618 = vmatprep.subr.bf16.mxu0 %v2302_v62  ;;  %1782 = vmatprep.subr.bf16.mxu1 %v2304_v63  ;;  %v2394_v62 = vld [vmem:[%s3423_s1 + $0x3c4] ss:$16 sps:$4 sm:$0xff]   ;;  %v2397_v63 = vld [vmem:[%s3423_s1 + $0x3cc] ss:$16 sps:$4 sm:$0xff]  }
  0x3f   :  { %1619 = vmatpush1.bf16.msra.mxu0 %v2306_v0  ;;  %1783 = vmatpush1.bf16.msra.mxu1 %v2307_v1  ;;  %v2392_v0 = vld [vmem:[%s3423_s1 + $0x3c0] ss:$16 sps:$4 sm:$0xff]   ;;  %v2395_v1 = vld [vmem:[%s3423_s1 + $0x3c8] ss:$16 sps:$4 sm:$0xff]  }
  0x40   :  { %1629 = vmatprep.subr.bf16.mxu0 %v2310_v3  ;;  %1793 = vmatprep.subr.bf16.mxu1 %v2313_v4  ;;  %v2403_v3 = vld [vmem:[%s3423_s1 + $0x3ec] ss:$16 sps:$4 sm:$0xff]   ;;  %v2398_v4 = vld [vmem:[%s3423_s1 + $0x3e0] ss:$16 sps:$4 sm:$0xff]  }
  0x42   :  { %1621 = vmatmul.mubr.bf16.vlgmr.msra.gmra.mrb[0].mxu0 %v22_v5  ;;  %1785 = vmatmul.mubr.bf16.vlgmr.msra.gmra.mrb[0].mxu1 %v22_v5  ;;  %v2401_v5 = vld [vmem:[%s3423_s1 + $0x3e8] ss:$16 sps:$4 sm:$0xff]  }
  0x43   :  { %1630 = vmatpush1.bf16.msra.mxu0 %v2308_v6  ;;  %1794 = vmatpush1.bf16.msra.mxu1 %v2311_v7  ;;  %v2406_v6 = vld [vmem:[%s3423_s1 + $0x404] ss:$16 sps:$4 sm:$0xff]  }
  0x44   :  { %1631 = vmatprep.subr.bf16.mxu0 %v2316_v8  ;;  %1795 = vmatprep.subr.bf16.mxu1 %v2319_v9  ;;  %v16_v7 = vld [vmem:[%s3424_s0 + $0x10] sm:$0xff]  ;;  %v2409_v8 = vld [vmem:[%s3423_s1 + $0x40c] ss:$16 sps:$4 sm:$0xff]  }
  0x45   :  { %1661 = vmatprep.mubr.bf16.mxu0 %v25_v32  ;;  %1825 = vmatprep.mubr.bf16.mxu1 %v25_v32  ;;  %v2404_v9 = vld [vmem:[%s3423_s1 + $0x400] ss:$16 sps:$4 sm:$0xff]  }
  0x46   :  { %v2434_v32 = vld [vmem:[%s3423_s1 + $0x4a0] ss:$16 sps:$4 sm:$0xff]  }
  0x47   :  { %1632 = vmatpush1.bf16.msra.mxu0 %v2314_v10  ;;  %1796 = vmatpush1.bf16.msra.mxu1 %v2317_v11  ;;  %v2407_v10 = vld [vmem:[%s3423_s1 + $0x408] ss:$16 sps:$4 sm:$0xff]   ;;  %v24_v11 = vpack.c.bf16 %v16_v7, %v16_v7  ;;  %v2499_v7 = vld [vmem:[%s3423_s1 + $0x5ec] ss:$16 sps:$4 sm:$0xff]  }
  0x48   :  { %1633 = vmatprep.subr.bf16.mxu0 %v2322_v12  ;;  %1797 = vmatprep.subr.bf16.mxu1 %v2325_v13  ;;  %v2412_v12 = vld [vmem:[%s3423_s1 + $0x424] ss:$16 sps:$4 sm:$0xff]   ;;  %v2415_v13 = vld [vmem:[%s3423_s1 + $0x42c] ss:$16 sps:$4 sm:$0xff]  }
  0x4b   :  { %1634 = vmatpush1.bf16.msra.mxu0 %v2320_v14  ;;  %1798 = vmatpush1.bf16.msra.mxu1 %v2323_v15  ;;  %v19_v14 = vld [vmem:[%s3424_s0 + $0x28] sm:$0xff] }
  0x4c   :  { %1635 = vmatprep.subr.bf16.mxu0 %v2328_v16  ;;  %1799 = vmatprep.subr.bf16.mxu1 %v2331_v17  ;;  %v27_v15 = vpack.c.bf16 %v19_v14, %v19_v14  ;;  %v2410_v16 = vld [vmem:[%s3423_s1 + $0x420] ss:$16 sps:$4 sm:$0xff]   ;;  %v2413_v17 = vld [vmem:[%s3423_s1 + $0x428] ss:$16 sps:$4 sm:$0xff]  }
  0x4d   :  { %v21_v14 = vld [vmem:[%s3424_s0 + $0x38] sm:$0xff] }
  0x4f   :  { %1636 = vmatpush1.bf16.msra.mxu0 %v2326_v18  ;;  %1800 = vmatpush1.bf16.msra.mxu1 %v2329_v19  ;;  %v2418_v18 = vld [vmem:[%s3423_s1 + $0x444] ss:$16 sps:$4 sm:$0xff]   ;;  %v2421_v19 = vld [vmem:[%s3423_s1 + $0x44c] ss:$16 sps:$4 sm:$0xff]  }
  0x50   :  { %1637 = vmatprep.subr.bf16.mxu0 %v2334_v20  ;;  %1801 = vmatprep.subr.bf16.mxu1 %v2337_v21  ;;  %v2416_v20 = vld [vmem:[%s3423_s1 + $0x440] ss:$16 sps:$4 sm:$0xff]   ;;  %v2419_v21 = vld [vmem:[%s3423_s1 + $0x448] ss:$16 sps:$4 sm:$0xff]  }
  0x53   :  { %1638 = vmatpush1.bf16.msra.mxu0 %v2332_v22  ;;  %1802 = vmatpush1.bf16.msra.mxu1 %v2335_v23  ;;  %v2424_v22 = vld [vmem:[%s3423_s1 + $0x464] ss:$16 sps:$4 sm:$0xff]   ;;  %v2427_v23 = vld [vmem:[%s3423_s1 + $0x46c] ss:$16 sps:$4 sm:$0xff]  }
  0x54   :  { %1639 = vmatprep.subr.bf16.mxu0 %v2340_v24  ;;  %1803 = vmatprep.subr.bf16.mxu1 %v2343_v25  ;;  %v2422_v24 = vld [vmem:[%s3423_s1 + $0x460] ss:$16 sps:$4 sm:$0xff]   ;;  %v2425_v25 = vld [vmem:[%s3423_s1 + $0x468] ss:$16 sps:$4 sm:$0xff]  }
  0x57   :  { %1640 = vmatpush1.bf16.msra.mxu0 %v2338_v26  ;;  %1804 = vmatpush1.bf16.msra.mxu1 %v2341_v27  ;;  %v2430_v26 = vld [vmem:[%s3423_s1 + $0x484] ss:$16 sps:$4 sm:$0xff]   ;;  %v2433_v27 = vld [vmem:[%s3423_s1 + $0x48c] ss:$16 sps:$4 sm:$0xff]  }
  0x58   :  { %1641 = vmatprep.subr.bf16.mxu0 %v2346_v28  ;;  %1805 = vmatprep.subr.bf16.mxu1 %v2349_v29  ;;  %v2428_v28 = vld [vmem:[%s3423_s1 + $0x480] ss:$16 sps:$4 sm:$0xff]   ;;  %v2431_v29 = vld [vmem:[%s3423_s1 + $0x488] ss:$16 sps:$4 sm:$0xff]  }
  0x5b   :  { %1642 = vmatpush1.bf16.msra.mxu0 %v2344_v31  ;;  %1806 = vmatpush1.bf16.msra.mxu1 %v2347_v33  ;;  %v2439_v31 = vld [vmem:[%s3423_s1 + $0x4ac] ss:$16 sps:$4 sm:$0xff]   ;;  %v2437_v33 = vld [vmem:[%s3423_s1 + $0x4a8] ss:$16 sps:$4 sm:$0xff]  }
  0x5c   :  { %1643 = vmatprep.subr.bf16.mxu0 %v2352_v34  ;;  %1807 = vmatprep.subr.bf16.mxu1 %v2355_v35  ;;  %v2442_v34 = vld [vmem:[%s3423_s1 + $0x4c4] ss:$16 sps:$4 sm:$0xff]   ;;  %v2445_v35 = vld [vmem:[%s3423_s1 + $0x4cc] ss:$16 sps:$4 sm:$0xff]  }
  0x5f   :  { %1644 = vmatpush1.bf16.msra.mxu0 %v2350_v36  ;;  %1808 = vmatpush1.bf16.msra.mxu1 %v2353_v37  ;;  %v2440_v36 = vld [vmem:[%s3423_s1 + $0x4c0] ss:$16 sps:$4 sm:$0xff]   ;;  %v2443_v37 = vld [vmem:[%s3423_s1 + $0x4c8] ss:$16 sps:$4 sm:$0xff]  }
  0x60   :  { %1645 = vmatprep.subr.bf16.mxu0 %v2358_v38  ;;  %1809 = vmatprep.subr.bf16.mxu1 %v2361_v39  ;;  %v2448_v38 = vld [vmem:[%s3423_s1 + $0x4e4] ss:$16 sps:$4 sm:$0xff]   ;;  %v2451_v39 = vld [vmem:[%s3423_s1 + $0x4ec] ss:$16 sps:$4 sm:$0xff]  }
  0x63   :  { %1646 = vmatpush1.bf16.msra.mxu0 %v2356_v40  ;;  %1810 = vmatpush1.bf16.msra.mxu1 %v2359_v41  ;;  %v2446_v40 = vld [vmem:[%s3423_s1 + $0x4e0] ss:$16 sps:$4 sm:$0xff]   ;;  %v2449_v41 = vld [vmem:[%s3423_s1 + $0x4e8] ss:$16 sps:$4 sm:$0xff]  }
  0x64   :  { %1647 = vmatprep.subr.bf16.mxu0 %v2364_v42  ;;  %1811 = vmatprep.subr.bf16.mxu1 %v2367_v43  ;;  %v2454_v42 = vld [vmem:[%s3423_s1 + $0x504] ss:$16 sps:$4 sm:$0xff]   ;;  %v2457_v43 = vld [vmem:[%s3423_s1 + $0x50c] ss:$16 sps:$4 sm:$0xff]  }
  0x67   :  { %1648 = vmatpush1.bf16.msra.mxu0 %v2362_v44  ;;  %1812 = vmatpush1.bf16.msra.mxu1 %v2365_v45  ;;  %v2452_v44 = vld [vmem:[%s3423_s1 + $0x500] ss:$16 sps:$4 sm:$0xff]   ;;  %v2455_v45 = vld [vmem:[%s3423_s1 + $0x508] ss:$16 sps:$4 sm:$0xff]  }
  0x68   :  { %1649 = vmatprep.subr.bf16.mxu0 %v2370_v46  ;;  %1813 = vmatprep.subr.bf16.mxu1 %v2373_v47  ;;  %v2460_v46 = vld [vmem:[%s3423_s1 + $0x524] ss:$16 sps:$4 sm:$0xff]   ;;  %v2463_v47 = vld [vmem:[%s3423_s1 + $0x52c] ss:$16 sps:$4 sm:$0xff]  }
  0x6b   :  { %1650 = vmatpush1.bf16.msra.mxu0 %v2368_v48  ;;  %1814 = vmatpush1.bf16.msra.mxu1 %v2371_v49  ;;  %v2458_v48 = vld [vmem:[%s3423_s1 + $0x520] ss:$16 sps:$4 sm:$0xff]   ;;  %v2461_v49 = vld [vmem:[%s3423_s1 + $0x528] ss:$16 sps:$4 sm:$0xff]  }
  0x6c   :  { %1651 = vmatprep.subr.bf16.mxu0 %v2376_v50  ;;  %1815 = vmatprep.subr.bf16.mxu1 %v2379_v51  ;;  %v2466_v50 = vld [vmem:[%s3423_s1 + $0x544] ss:$16 sps:$4 sm:$0xff]   ;;  %v2469_v51 = vld [vmem:[%s3423_s1 + $0x54c] ss:$16 sps:$4 sm:$0xff]  }
  0x6f   :  { %1652 = vmatpush1.bf16.msra.mxu0 %v2374_v52  ;;  %1816 = vmatpush1.bf16.msra.mxu1 %v2377_v53  ;;  %v2464_v52 = vld [vmem:[%s3423_s1 + $0x540] ss:$16 sps:$4 sm:$0xff]   ;;  %v2467_v53 = vld [vmem:[%s3423_s1 + $0x548] ss:$16 sps:$4 sm:$0xff]  }
  0x70   :  { %1653 = vmatprep.subr.bf16.mxu0 %v2382_v54  ;;  %1817 = vmatprep.subr.bf16.mxu1 %v2385_v55  ;;  %v2472_v54 = vld [vmem:[%s3423_s1 + $0x564] ss:$16 sps:$4 sm:$0xff]   ;;  %v2475_v55 = vld [vmem:[%s3423_s1 + $0x56c] ss:$16 sps:$4 sm:$0xff]  }
  0x73   :  { %1654 = vmatpush1.bf16.msra.mxu0 %v2380_v56  ;;  %1818 = vmatpush1.bf16.msra.mxu1 %v2383_v57  ;;  %v2470_v56 = vld [vmem:[%s3423_s1 + $0x560] ss:$16 sps:$4 sm:$0xff]   ;;  %v2473_v57 = vld [vmem:[%s3423_s1 + $0x568] ss:$16 sps:$4 sm:$0xff]  }
  0x74   :  { %1655 = vmatprep.subr.bf16.mxu0 %v2388_v58  ;;  %1819 = vmatprep.subr.bf16.mxu1 %v2391_v59  ;;  %v2478_v58 = vld [vmem:[%s3423_s1 + $0x584] ss:$16 sps:$4 sm:$0xff]   ;;  %v2481_v59 = vld [vmem:[%s3423_s1 + $0x58c] ss:$16 sps:$4 sm:$0xff]  }
  0x77   :  { %1656 = vmatpush1.bf16.msra.mxu0 %v2386_v60  ;;  %1820 = vmatpush1.bf16.msra.mxu1 %v2389_v61  ;;  %v2476_v60 = vld [vmem:[%s3423_s1 + $0x580] ss:$16 sps:$4 sm:$0xff]   ;;  %v2479_v61 = vld [vmem:[%s3423_s1 + $0x588] ss:$16 sps:$4 sm:$0xff]  }
  0x78   :  { %1657 = vmatprep.subr.bf16.mxu0 %v2394_v62  ;;  %1821 = vmatprep.subr.bf16.mxu1 %v2397_v63  ;;  %v2484_v62 = vld [vmem:[%s3423_s1 + $0x5a4] ss:$16 sps:$4 sm:$0xff]   ;;  %v2487_v63 = vld [vmem:[%s3423_s1 + $0x5ac] ss:$16 sps:$4 sm:$0xff]  }
  0x7b   :  { %1658 = vmatpush1.bf16.msra.mxu0 %v2392_v0  ;;  %1822 = vmatpush1.bf16.msra.mxu1 %v2395_v1  ;;  %v2482_v0 = vld [vmem:[%s3423_s1 + $0x5a0] ss:$16 sps:$4 sm:$0xff]   ;;  %v2485_v1 = vld [vmem:[%s3423_s1 + $0x5a8] ss:$16 sps:$4 sm:$0xff]  }
  0x7c   :  { %1659 = vmatprep.subr.bf16.mxu0 %v2400_v2  ;;  %1823 = vmatprep.subr.bf16.mxu1 %v2403_v3  ;;  %v2490_v2 = vld [vmem:[%s3423_s1 + $0x5c4] ss:$16 sps:$4 sm:$0xff]   ;;  %v2493_v3 = vld [vmem:[%s3423_s1 + $0x5cc] ss:$16 sps:$4 sm:$0xff]  }
  0x7f   :  { %1660 = vmatpush1.bf16.msra.mxu0 %v2398_v4  ;;  %1824 = vmatpush1.bf16.msra.mxu1 %v2401_v5  ;;  %v2488_v4 = vld [vmem:[%s3423_s1 + $0x5c0] ss:$16 sps:$4 sm:$0xff]   ;;  %v2491_v5 = vld [vmem:[%s3423_s1 + $0x5c8] ss:$16 sps:$4 sm:$0xff]  }
  0x80   :  { %1670 = vmatprep.subr.bf16.mxu0 %v2406_v6  ;;  %1834 = vmatprep.subr.bf16.mxu1 %v2409_v8  ;;  %v2496_v6 = vld [vmem:[%s3423_s1 + $0x5e4] ss:$16 sps:$4 sm:$0xff]   ;;  %v2494_v8 = vld [vmem:[%s3423_s1 + $0x5e0] ss:$16 sps:$4 sm:$0xff]  }
  0x82   :  { %1662 = vmatmul.mubr.bf16.vlgmr.msra.gmra.mrb[0].mxu0 %v24_v11  ;;  %1826 = vmatmul.mubr.bf16.vlgmr.msra.gmra.mrb[0].mxu1 %v24_v11  ;;  %v2502_v11 = vld [vmem:[%s3423_s1 + $0x604] ss:$16 sps:$4 sm:$0xff]  }
  0x83   :  { %1671 = vmatpush1.bf16.msra.mxu0 %v2404_v9  ;;  %1835 = vmatpush1.bf16.msra.mxu1 %v2407_v10  ;;  %v2497_v9 = vld [vmem:[%s3423_s1 + $0x5e8] ss:$16 sps:$4 sm:$0xff]   ;;  %v18_v10 = vld [vmem:[%s3424_s0 + $0x20] sm:$0xff] }
  0x84   :  { %1672 = vmatprep.subr.bf16.mxu0 %v2412_v12  ;;  %1836 = vmatprep.subr.bf16.mxu1 %v2415_v13  ;;  %v2505_v12 = vld [vmem:[%s3423_s1 + $0x60c] ss:$16 sps:$4 sm:$0xff]   ;;  %v26_v13 = vpack.c.bf16 %v18_v10, %v18_v10  ;;  %v2592_v10 = vld [vmem:[%s3423_s1 + $0x7e4] ss:$16 sps:$4 sm:$0xff]  }
  0x85   :  { %1702 = vmatprep.mubr.bf16.mxu0 %v27_v15  ;;  %1866 = vmatprep.mubr.bf16.mxu1 %v27_v15  ;;  %v2500_v15 = vld [vmem:[%s3423_s1 + $0x600] ss:$16 sps:$4 sm:$0xff]  }
  0x87   :  { %1673 = vmatpush1.bf16.msra.mxu0 %v2410_v16  ;;  %1837 = vmatpush1.bf16.msra.mxu1 %v2413_v17  ;;  %v2503_v16 = vld [vmem:[%s3423_s1 + $0x608] ss:$16 sps:$4 sm:$0xff]   ;;  %v2508_v17 = vld [vmem:[%s3423_s1 + $0x624] ss:$16 sps:$4 sm:$0xff]  }
  0x88   :  { %1674 = vmatprep.subr.bf16.mxu0 %v2418_v18  ;;  %1838 = vmatprep.subr.bf16.mxu1 %v2421_v19  ;;  %v2511_v18 = vld [vmem:[%s3423_s1 + $0x62c] ss:$16 sps:$4 sm:$0xff]   ;;  %v29_v19 = vpack.c.bf16 %v21_v14, %v21_v14  ;;  %v20_v14 = vld [vmem:[%s3424_s0 + $0x30] sm:$0xff] }
  0x8b   :  { %1675 = vmatpush1.bf16.msra.mxu0 %v2416_v20  ;;  %1839 = vmatpush1.bf16.msra.mxu1 %v2419_v21  ;;  %v2506_v20 = vld [vmem:[%s3423_s1 + $0x620] ss:$16 sps:$4 sm:$0xff]   ;;  %v2509_v21 = vld [vmem:[%s3423_s1 + $0x628] ss:$16 sps:$4 sm:$0xff]  }
  0x8c   :  { %1676 = vmatprep.subr.bf16.mxu0 %v2424_v22  ;;  %1840 = vmatprep.subr.bf16.mxu1 %v2427_v23  ;;  %v2514_v22 = vld [vmem:[%s3423_s1 + $0x644] ss:$16 sps:$4 sm:$0xff]   ;;  %v2517_v23 = vld [vmem:[%s3423_s1 + $0x64c] ss:$16 sps:$4 sm:$0xff]  }
  0x8f   :  { %1677 = vmatpush1.bf16.msra.mxu0 %v2422_v24  ;;  %1841 = vmatpush1.bf16.msra.mxu1 %v2425_v25  ;;  %v2512_v24 = vld [vmem:[%s3423_s1 + $0x640] ss:$16 sps:$4 sm:$0xff]   ;;  %v2515_v25 = vld [vmem:[%s3423_s1 + $0x648] ss:$16 sps:$4 sm:$0xff]  }
  0x90   :  { %1678 = vmatprep.subr.bf16.mxu0 %v2430_v26  ;;  %1842 = vmatprep.subr.bf16.mxu1 %v2433_v27  ;;  %v2520_v26 = vld [vmem:[%s3423_s1 + $0x664] ss:$16 sps:$4 sm:$0xff]   ;;  %v2523_v27 = vld [vmem:[%s3423_s1 + $0x66c] ss:$16 sps:$4 sm:$0xff]  }
  0x93   :  { %1679 = vmatpush1.bf16.msra.mxu0 %v2428_v28  ;;  %1843 = vmatpush1.bf16.msra.mxu1 %v2431_v29  ;;  %v2518_v28 = vld [vmem:[%s3423_s1 + $0x660] ss:$16 sps:$4 sm:$0xff]   ;;  %v2521_v29 = vld [vmem:[%s3423_s1 + $0x668] ss:$16 sps:$4 sm:$0xff]  }
  0x94   :  { %1680 = vmatprep.subr.bf16.mxu0 %v2436_v30  ;;  %1844 = vmatprep.subr.bf16.mxu1 %v2439_v31  ;;  %v2526_v30 = vld [vmem:[%s3423_s1 + $0x684] ss:$16 sps:$4 sm:$0xff]   ;;  %v2529_v31 = vld [vmem:[%s3423_s1 + $0x68c] ss:$16 sps:$4 sm:$0xff]  }
  0x97   :  { %1681 = vmatpush1.bf16.msra.mxu0 %v2434_v32  ;;  %1845 = vmatpush1.bf16.msra.mxu1 %v2437_v33  ;;  %v2524_v32 = vld [vmem:[%s3423_s1 + $0x680] ss:$16 sps:$4 sm:$0xff]   ;;  %v2527_v33 = vld [vmem:[%s3423_s1 + $0x688] ss:$16 sps:$4 sm:$0xff]  }
  0x98   :  { %1682 = vmatprep.subr.bf16.mxu0 %v2442_v34  ;;  %1846 = vmatprep.subr.bf16.mxu1 %v2445_v35  ;;  %v2532_v34 = vld [vmem:[%s3423_s1 + $0x6a4] ss:$16 sps:$4 sm:$0xff]   ;;  %v2535_v35 = vld [vmem:[%s3423_s1 + $0x6ac] ss:$16 sps:$4 sm:$0xff]  }
  0x9b   :  { %1683 = vmatpush1.bf16.msra.mxu0 %v2440_v36  ;;  %1847 = vmatpush1.bf16.msra.mxu1 %v2443_v37  ;;  %v2530_v36 = vld [vmem:[%s3423_s1 + $0x6a0] ss:$16 sps:$4 sm:$0xff]   ;;  %v2533_v37 = vld [vmem:[%s3423_s1 + $0x6a8] ss:$16 sps:$4 sm:$0xff]  }
  0x9c   :  { %1684 = vmatprep.subr.bf16.mxu0 %v2448_v38  ;;  %1848 = vmatprep.subr.bf16.mxu1 %v2451_v39  ;;  %v2538_v38 = vld [vmem:[%s3423_s1 + $0x6c4] ss:$16 sps:$4 sm:$0xff]   ;;  %v2541_v39 = vld [vmem:[%s3423_s1 + $0x6cc] ss:$16 sps:$4 sm:$0xff]  }
  0x9f   :  { %1685 = vmatpush1.bf16.msra.mxu0 %v2446_v40  ;;  %1849 = vmatpush1.bf16.msra.mxu1 %v2449_v41  ;;  %v2536_v40 = vld [vmem:[%s3423_s1 + $0x6c0] ss:$16 sps:$4 sm:$0xff]   ;;  %v2539_v41 = vld [vmem:[%s3423_s1 + $0x6c8] ss:$16 sps:$4 sm:$0xff]  }
  0xa0   :  { %1686 = vmatprep.subr.bf16.mxu0 %v2454_v42  ;;  %1850 = vmatprep.subr.bf16.mxu1 %v2457_v43  ;;  %v2544_v42 = vld [vmem:[%s3423_s1 + $0x6e4] ss:$16 sps:$4 sm:$0xff]   ;;  %v2547_v43 = vld [vmem:[%s3423_s1 + $0x6ec] ss:$16 sps:$4 sm:$0xff]  }
  0xa3   :  { %1687 = vmatpush1.bf16.msra.mxu0 %v2452_v44  ;;  %1851 = vmatpush1.bf16.msra.mxu1 %v2455_v45  ;;  %v2542_v44 = vld [vmem:[%s3423_s1 + $0x6e0] ss:$16 sps:$4 sm:$0xff]   ;;  %v2545_v45 = vld [vmem:[%s3423_s1 + $0x6e8] ss:$16 sps:$4 sm:$0xff]  }
  0xa4   :  { %1688 = vmatprep.subr.bf16.mxu0 %v2460_v46  ;;  %1852 = vmatprep.subr.bf16.mxu1 %v2463_v47  ;;  %v2550_v46 = vld [vmem:[%s3423_s1 + $0x704] ss:$16 sps:$4 sm:$0xff]   ;;  %v2553_v47 = vld [vmem:[%s3423_s1 + $0x70c] ss:$16 sps:$4 sm:$0xff]  }
  0xa7   :  { %1689 = vmatpush1.bf16.msra.mxu0 %v2458_v48  ;;  %1853 = vmatpush1.bf16.msra.mxu1 %v2461_v49  ;;  %v2548_v48 = vld [vmem:[%s3423_s1 + $0x700] ss:$16 sps:$4 sm:$0xff]   ;;  %v2551_v49 = vld [vmem:[%s3423_s1 + $0x708] ss:$16 sps:$4 sm:$0xff]  }
  0xa8   :  { %1690 = vmatprep.subr.bf16.mxu0 %v2466_v50  ;;  %1854 = vmatprep.subr.bf16.mxu1 %v2469_v51  ;;  %v2556_v50 = vld [vmem:[%s3423_s1 + $0x724] ss:$16 sps:$4 sm:$0xff]   ;;  %v2559_v51 = vld [vmem:[%s3423_s1 + $0x72c] ss:$16 sps:$4 sm:$0xff]  }
  0xab   :  { %1691 = vmatpush1.bf16.msra.mxu0 %v2464_v52  ;;  %1855 = vmatpush1.bf16.msra.mxu1 %v2467_v53  ;;  %v2554_v52 = vld [vmem:[%s3423_s1 + $0x720] ss:$16 sps:$4 sm:$0xff]   ;;  %v2557_v53 = vld [vmem:[%s3423_s1 + $0x728] ss:$16 sps:$4 sm:$0xff]  }
  0xac   :  { %1692 = vmatprep.subr.bf16.mxu0 %v2472_v54  ;;  %1856 = vmatprep.subr.bf16.mxu1 %v2475_v55  ;;  %v2562_v54 = vld [vmem:[%s3423_s1 + $0x744] ss:$16 sps:$4 sm:$0xff]   ;;  %v2565_v55 = vld [vmem:[%s3423_s1 + $0x74c] ss:$16 sps:$4 sm:$0xff]  }
  0xaf   :  { %1693 = vmatpush1.bf16.msra.mxu0 %v2470_v56  ;;  %1857 = vmatpush1.bf16.msra.mxu1 %v2473_v57  ;;  %v2560_v56 = vld [vmem:[%s3423_s1 + $0x740] ss:$16 sps:$4 sm:$0xff]   ;;  %v2563_v57 = vld [vmem:[%s3423_s1 + $0x748] ss:$16 sps:$4 sm:$0xff]  }
  0xb0   :  { %1694 = vmatprep.subr.bf16.mxu0 %v2478_v58  ;;  %1858 = vmatprep.subr.bf16.mxu1 %v2481_v59  ;;  %v2568_v58 = vld [vmem:[%s3423_s1 + $0x764] ss:$16 sps:$4 sm:$0xff]   ;;  %v2571_v59 = vld [vmem:[%s3423_s1 + $0x76c] ss:$16 sps:$4 sm:$0xff]  }
  0xb3   :  { %1695 = vmatpush1.bf16.msra.mxu0 %v2476_v60  ;;  %1859 = vmatpush1.bf16.msra.mxu1 %v2479_v61  ;;  %v2566_v60 = vld [vmem:[%s3423_s1 + $0x760] ss:$16 sps:$4 sm:$0xff]   ;;  %v2569_v61 = vld [vmem:[%s3423_s1 + $0x768] ss:$16 sps:$4 sm:$0xff]  }
  0xb4   :  { %1696 = vmatprep.subr.bf16.mxu0 %v2484_v62  ;;  %1860 = vmatprep.subr.bf16.mxu1 %v2487_v63  ;;  %v2574_v62 = vld [vmem:[%s3423_s1 + $0x784] ss:$16 sps:$4 sm:$0xff]   ;;  %v2577_v63 = vld [vmem:[%s3423_s1 + $0x78c] ss:$16 sps:$4 sm:$0xff]  }
  0xb7   :  { %1697 = vmatpush1.bf16.msra.mxu0 %v2482_v0  ;;  %1861 = vmatpush1.bf16.msra.mxu1 %v2485_v1  ;;  %v2572_v0 = vld [vmem:[%s3423_s1 + $0x780] ss:$16 sps:$4 sm:$0xff]   ;;  %v2575_v1 = vld [vmem:[%s3423_s1 + $0x788] ss:$16 sps:$4 sm:$0xff]  }
  0xb8   :  { %1698 = vmatprep.subr.bf16.mxu0 %v2490_v2  ;;  %1862 = vmatprep.subr.bf16.mxu1 %v2493_v3  ;;  %v2580_v2 = vld [vmem:[%s3423_s1 + $0x7a4] ss:$16 sps:$4 sm:$0xff]   ;;  %v2583_v3 = vld [vmem:[%s3423_s1 + $0x7ac] ss:$16 sps:$4 sm:$0xff]  }
  0xbb   :  { %1699 = vmatpush1.bf16.msra.mxu0 %v2488_v4  ;;  %1863 = vmatpush1.bf16.msra.mxu1 %v2491_v5  ;;  %v2578_v4 = vld [vmem:[%s3423_s1 + $0x7a0] ss:$16 sps:$4 sm:$0xff]   ;;  %v2581_v5 = vld [vmem:[%s3423_s1 + $0x7a8] ss:$16 sps:$4 sm:$0xff]  }
  0xbc   :  { %1700 = vmatprep.subr.bf16.mxu0 %v2496_v6  ;;  %1864 = vmatprep.subr.bf16.mxu1 %v2499_v7  ;;  %v2586_v6 = vld [vmem:[%s3423_s1 + $0x7c4] ss:$16 sps:$4 sm:$0xff]   ;;  %v2589_v7 = vld [vmem:[%s3423_s1 + $0x7cc] ss:$16 sps:$4 sm:$0xff]  }
  0xbf   :  { %1701 = vmatpush1.bf16.msra.mxu0 %v2494_v8  ;;  %1865 = vmatpush1.bf16.msra.mxu1 %v2497_v9  ;;  %v2584_v8 = vld [vmem:[%s3423_s1 + $0x7c0] ss:$16 sps:$4 sm:$0xff]   ;;  %v2587_v9 = vld [vmem:[%s3423_s1 + $0x7c8] ss:$16 sps:$4 sm:$0xff]  }
  0xc0   :  { %1711 = vmatprep.subr.bf16.mxu0 %v2502_v11  ;;  %1875 = vmatprep.subr.bf16.mxu1 %v2505_v12  ;;  %v2595_v11 = vld [vmem:[%s3423_s1 + $0x7ec] ss:$16 sps:$4 sm:$0xff]   ;;  %v2590_v12 = vld [vmem:[%s3423_s1 + $0x7e0] ss:$16 sps:$4 sm:$0xff]  }
  0xc2   :  { %1703 = vmatmul.mubr.bf16.vlgmr.msra.gmra.mrb[0].mxu0 %v26_v13  ;;  %1867 = vmatmul.mubr.bf16.vlgmr.msra.gmra.mrb[0].mxu1 %v26_v13  ;;  %v2593_v13 = vld [vmem:[%s3423_s1 + $0x7e8] ss:$16 sps:$4 sm:$0xff]  }
  0xc3   :  { %1712 = vmatpush1.bf16.msra.mxu0 %v2500_v15  ;;  %1876 = vmatpush1.bf16.msra.mxu1 %v2503_v16  ;;  %v28_v15 = vpack.c.bf16 %v20_v14, %v20_v14  ;;  %v288_v16 = vlaneseq }
  0xc4   :  { %1713 = vmatprep.subr.bf16.mxu0 %v2508_v17  ;;  %1877 = vmatprep.subr.bf16.mxu1 %v2511_v18 }
  0xc5   :  { %1743 = vmatprep.mubr.bf16.mxu0 %v29_v19  ;;  %1907 = vmatprep.mubr.bf16.mxu1 %v29_v19  ;;  %v289_v17 = vshrl.u32 %v288_v16, 7 }
  0xc7   :  { %1714 = vmatpush1.bf16.msra.mxu0 %v2506_v20  ;;  %1878 = vmatpush1.bf16.msra.mxu1 %v2509_v21  ;;  %v290_v18 = vsub.s32 0, %v289_v17  ;;  %v298_v19 = vsub.s32 2, %v289_v17  ;;  %v286_v20 = vld [vmem:[%s3425_s2] sm:$0xf]  ;;  %v294_v21 = vsub.s32 1, %v289_v17 }
  0xc8   :  { %1715 = vmatprep.subr.bf16.mxu0 %v2514_v22  ;;  %1879 = vmatprep.subr.bf16.mxu1 %v2517_v23  ;;  %v302_v22 = vsub.s32 3, %v289_v17 }
  0xc9   :  { %v291_v23 = vrot.slane %v286_v20, %v290_v18 }
  0xcb   :  { %1716 = vmatpush1.bf16.msra.mxu0 %v2512_v24  ;;  %1880 = vmatpush1.bf16.msra.mxu1 %v2515_v25  ;;  %v299_v24 = vrot.slane %v286_v20, %v298_v19  ;;  %v295_v25 = vrot.slane %v286_v20, %v294_v21 }
  0xcc   :  { %1717 = vmatprep.subr.bf16.mxu0 %v2520_v26  ;;  %1881 = vmatprep.subr.bf16.mxu1 %v2523_v27  ;;  %v303_v26 = vrot.slane %v286_v20, %v302_v22 }
  0xcf   :  { %1718 = vmatpush1.bf16.msra.mxu0 %v2518_v28  ;;  %1882 = vmatpush1.bf16.msra.mxu1 %v2521_v29 }
  0xd0   :  { %1719 = vmatprep.subr.bf16.mxu0 %v2526_v30  ;;  %1883 = vmatprep.subr.bf16.mxu1 %v2529_v31 }
  0xd3   :  { %1720 = vmatpush1.bf16.msra.mxu0 %v2524_v32  ;;  %1884 = vmatpush1.bf16.msra.mxu1 %v2527_v33 }
  0xd4   :  { %1721 = vmatprep.subr.bf16.mxu0 %v2532_v34  ;;  %1885 = vmatprep.subr.bf16.mxu1 %v2535_v35 }
  0xd7   :  { %1722 = vmatpush1.bf16.msra.mxu0 %v2530_v36  ;;  %1886 = vmatpush1.bf16.msra.mxu1 %v2533_v37 }
  0xd8   :  { %1723 = vmatprep.subr.bf16.mxu0 %v2538_v38  ;;  %1887 = vmatprep.subr.bf16.mxu1 %v2541_v39 }
  0xdb   :  { %1724 = vmatpush1.bf16.msra.mxu0 %v2536_v40  ;;  %1888 = vmatpush1.bf16.msra.mxu1 %v2539_v41 }
  0xdc   :  { %1725 = vmatprep.subr.bf16.mxu0 %v2544_v42  ;;  %1889 = vmatprep.subr.bf16.mxu1 %v2547_v43 }
  0xdf   :  { %1726 = vmatpush1.bf16.msra.mxu0 %v2542_v44  ;;  %1890 = vmatpush1.bf16.msra.mxu1 %v2545_v45 }
  0xe0   :  { %1727 = vmatprep.subr.bf16.mxu0 %v2550_v46  ;;  %1891 = vmatprep.subr.bf16.mxu1 %v2553_v47 }
  0xe3   :  { %1728 = vmatpush1.bf16.msra.mxu0 %v2548_v48  ;;  %1892 = vmatpush1.bf16.msra.mxu1 %v2551_v49 }
  0xe4   :  { %1729 = vmatprep.subr.bf16.mxu0 %v2556_v50  ;;  %1893 = vmatprep.subr.bf16.mxu1 %v2559_v51 }
  0xe7   :  { %1730 = vmatpush1.bf16.msra.mxu0 %v2554_v52  ;;  %1894 = vmatpush1.bf16.msra.mxu1 %v2557_v53 }
  0xe8   :  { %1731 = vmatprep.subr.bf16.mxu0 %v2562_v54  ;;  %1895 = vmatprep.subr.bf16.mxu1 %v2565_v55 }
  0xeb   :  { %1732 = vmatpush1.bf16.msra.mxu0 %v2560_v56  ;;  %1896 = vmatpush1.bf16.msra.mxu1 %v2563_v57 }
  0xec   :  { %1733 = vmatprep.subr.bf16.mxu0 %v2568_v58  ;;  %1897 = vmatprep.subr.bf16.mxu1 %v2571_v59 }
  0xef   :  { %1734 = vmatpush1.bf16.msra.mxu0 %v2566_v60  ;;  %1898 = vmatpush1.bf16.msra.mxu1 %v2569_v61 }
  0xf0   :  { %1735 = vmatprep.subr.bf16.mxu0 %v2574_v62  ;;  %1899 = vmatprep.subr.bf16.mxu1 %v2577_v63 }
  0xf3   :  { %1736 = vmatpush1.bf16.msra.mxu0 %v2572_v0  ;;  %1900 = vmatpush1.bf16.msra.mxu1 %v2575_v1 }
  0xf4   :  { %1737 = vmatprep.subr.bf16.mxu0 %v2580_v2  ;;  %1901 = vmatprep.subr.bf16.mxu1 %v2583_v3 }
  0xf7   :  { %1738 = vmatpush1.bf16.msra.mxu0 %v2578_v4  ;;  %1902 = vmatpush1.bf16.msra.mxu1 %v2581_v5 }
  0xf8   :  { %1739 = vmatprep.subr.bf16.mxu0 %v2586_v6  ;;  %1903 = vmatprep.subr.bf16.mxu1 %v2589_v7 }
  0xfb   :  { %1740 = vmatpush1.bf16.msra.mxu0 %v2584_v8  ;;  %1904 = vmatpush1.bf16.msra.mxu1 %v2587_v9 }
  0xfc   :  { %1741 = vmatprep.subr.bf16.mxu0 %v2592_v10  ;;  %1905 = vmatprep.subr.bf16.mxu1 %v2595_v11 }
  0xff   :  { %1742 = vmatpush1.bf16.msra.mxu0 %v2590_v12  ;;  %1906 = vmatpush1.bf16.msra.mxu1 %v2593_v13 }
 0x102   :  { %1744 = vmatmul.mubr.bf16.vlgmr.msra.gmra.mrb[0].mxu0 %v28_v15  ;;  %1908 = vmatmul.mubr.bf16.vlgmr.msra.gmra.mrb[0].mxu1 %v28_v15 }
 0x1d5   :  { %v1745_v27 = vpop.f32.mrb[0].mxu0  ;;  %v1909_v28 = vpop.f32.mrb[0].mxu1 }
 0x1d6   :  { %v2184_v29 = vadd.f32 %v1745_v27, %v291_v23  ;;  %v2186_v30 = vadd.f32 %v1909_v28, %v299_v24  ;;  %v1747_v31 = vpop.f32.mrb[1].mxu0  ;;  %v1911_v32 = vpop.f32.mrb[1].mxu1 }
 0x1d7   :  { %v2185_v33 = vadd.f32 %v1747_v31, %v295_v25  ;;  %v2187_v34 = vadd.f32 %v1911_v32, %v303_v26  ;;  %v1749_v35 = vpop.f32.mrb[2].mxu0  ;;  %v1913_v36 = vpop.f32.mrb[2].mxu1 }
 0x1d8   :  { %v1916_v37 = vmax.f32 %v2184_v29, 0.0  ;;  %v1918_v38 = vmax.f32 %v2186_v30, 0.0  ;;  %v1750_v39 = vpop.f32.mrb[3].mxu0  ;;  %v1914_v40 = vpop.f32.mrb[3].mxu1 }
 0x1d9   :  { %v1917_v41 = vmax.f32 %v2185_v33, 0.0  ;;  %v1919_v42 = vmax.f32 %v2187_v34, 0.0 }
 0x1da   :  { %1920 = vst [vmem:[%s3426_s3] sm:$0xff] %v1916_v37  ;;  %1922 = vst [vmem:[%s3426_s3 + $0x10] sm:$0xff] %v1918_v38 }
 0x1db   :  { %1921 = vst [vmem:[%s3426_s3 + $0x8] sm:$0xff] %v1917_v41  ;;  %1923 = vst [vmem:[%s3426_s3 + $0x18] sm:$0xff] %v1919_v42 }

</bundles_post_ra>
